<compile_context>
chip_gen: v7x
topology: tpu7x:2x2x1
jax: 0.10.0
libtpu: 0.0.40
codegen_flags: <defaults>
</compile_context>

<pallas_src>
import jax
import jax.numpy as jnp
from jax.experimental import pallas as pl
from jax.experimental.pallas import tpu as pltpu


# ----------------------------- Pallas kernels ------------------------------

def _mm_bias_relu_kernel(x_ref, w_ref, b_ref, o_ref):
    x = x_ref[...].astype(jnp.bfloat16)                      # bf16 MXU inputs
    acc = jnp.dot(x, w_ref[...], preferred_element_type=jnp.float32)
    o_ref[...] = jnp.maximum(acc + b_ref[...], 0.0)          # f32 epilogue


def _fc_head_kernel(x_ref, w1_ref, b1_ref, w2_ref, b2_ref, vels_ref, probs_ref):
    # fc1: matmul + bias + ReLU (f32 accumulate / epilogue)
    x = x_ref[...].astype(jnp.bfloat16)
    h = jnp.dot(x, w1_ref[...], preferred_element_type=jnp.float32)
    h = jnp.maximum(h + b1_ref[...], 0.0)
    vels_ref[...] = h
    # fc2: matmul + bias + softmax, intermediate kept on-chip (no HBM re-read)
    logits = jnp.dot(h.astype(jnp.bfloat16), w2_ref[...],
                     preferred_element_type=jnp.float32) + b2_ref[...]
    m = jnp.max(logits, axis=-1, keepdims=True)
    e = jnp.exp(logits - m)
    probs_ref[...] = e / jnp.sum(e, axis=-1, keepdims=True)


# ----------------------------- Pallas wrappers ------------------------------

def _pick_tm(m, cap=512):
    """Largest sublane-aligned (mult-of-8) tile <= cap dividing m; else full m."""
    if m <= cap:
        return m
    for tm in range(cap - cap % 8, 0, -8):
        if m % tm == 0:
            return tm
    return m


def matmul_bias_relu(x, w_bf16, b_f32):
    """(M,K) @ (K,N) + b -> ReLU, M-tiled 'parallel' grid, fused in one kernel."""
    M, K = x.shape
    N = w_bf16.shape[1]
    tm = _pick_tm(M)
    return pl.pallas_call(
        _mm_bias_relu_kernel,
        out_shape=jax.ShapeDtypeStruct((M, N), jnp.float32),
        grid=(M // tm,),
        in_specs=[
            pl.BlockSpec((tm, K), lambda i: (i, 0)),
            pl.BlockSpec((K, N), lambda i: (0, 0)),
            pl.BlockSpec((1, N), lambda i: (0, 0)),
        ],
        out_specs=pl.BlockSpec((tm, N), lambda i: (i, 0)),
        compiler_params=pltpu.CompilerParams(
            dimension_semantics=("parallel",)),
    )(x, w_bf16, b_f32)


def fc_head(flat, w1, b1, w2, b2):
    """Fused fc1(+ReLU) and fc2(+softmax) in a single pallas_call."""
    M, K1 = flat.shape
    N1 = w1.shape[1]
    N2 = w2.shape[1]
    tm = _pick_tm(M)
    return pl.pallas_call(
        _fc_head_kernel,
        out_shape=(jax.ShapeDtypeStruct((M, N1), jnp.float32),
                   jax.ShapeDtypeStruct((M, N2), jnp.float32)),
        grid=(M // tm,),
        in_specs=[
            pl.BlockSpec((tm, K1), lambda i: (i, 0)),
            pl.BlockSpec((K1, N1), lambda i: (0, 0)),
            pl.BlockSpec((1, N1), lambda i: (0, 0)),
            pl.BlockSpec((N1, N2), lambda i: (0, 0)),
            pl.BlockSpec((1, N2), lambda i: (0, 0)),
        ],
        out_specs=(pl.BlockSpec((tm, N1), lambda i: (i, 0)),
                   pl.BlockSpec((tm, N2), lambda i: (i, 0))),
        compiler_params=pltpu.CompilerParams(
            dimension_semantics=("parallel",)),
    )(flat, w1, b1, w2, b2)


# ------------------------------- JAX glue -----------------------------------

def conv2d_relu(x_nhwc, wmat_bf16, b_f32, k, stride, out_ch):
    """PyTorch-semantics valid-padding Conv2d + ReLU in NHWC.

    Patch extraction is one XLA depthwise-identity conv whose channel order is
    (C, kh, kw) == PyTorch weight flatten order; the matmul/bias/ReLU is the
    fused Pallas kernel with 128-padded (lane-dense) output channels.
    """
    patches = jax.lax.conv_general_dilated_patches(
        x_nhwc, filter_shape=(k, k), window_strides=(stride, stride),
        padding="VALID", dimension_numbers=("NHWC", "HWIO", "NHWC"))
    B, oh, ow, kk = patches.shape
    out = matmul_bias_relu(patches.reshape(B * oh * ow, kk), wmat_bf16, b_f32)
    return out.reshape(B, oh, ow, -1)[..., :out_ch]          # drop channel padding


def policy_conv_net_forward(kp, x_nchw):
    x = jnp.transpose(x_nchw, (0, 2, 3, 1))                   # one-time NCHW->NHWC
    x = conv2d_relu(x, kp["conv1_w"], kp["conv1_b"], k=8, stride=4, out_ch=32)
    x = conv2d_relu(x, kp["conv2_w"], kp["conv2_b"], k=4, stride=2, out_ch=64)
    x = conv2d_relu(x, kp["conv3_w"], kp["conv3_b"], k=3, stride=1, out_ch=64)
    B = x.shape[0]
    flat = x.reshape(B, -1)            # NHWC flatten; fc1_w rows pre-permuted to match
    vels, probs = fc_head(flat, kp["fc1_w"], kp["fc1_b"], kp["fc2_w"], kp["fc2_b"])
    return vels, probs


# --------------------------- parameter handling ------------------------------

def init_params_torch_layout(key):
    """Random params in PyTorch layout: conv (O,C,kh,kw), fc (out,in)."""
    ks = jax.random.split(key, 10)

    def u(k, shape, fan_in):
        bound = 1.0 / jnp.sqrt(jnp.float32(fan_in))
        return jax.random.uniform(k, shape, jnp.float32, -bound, bound)

    return {
        "conv1_w": u(ks[0], (32, 4, 8, 8), 4 * 8 * 8),
        "conv1_b": u(ks[1], (32,), 4 * 8 * 8),
        "conv2_w": u(ks[2], (64, 32, 4, 4), 32 * 4 * 4),
        "conv2_b": u(ks[3], (64,), 32 * 4 * 4),
        "conv3_w": u(ks[4], (64, 64, 3, 3), 64 * 3 * 3),
        "conv3_b": u(ks[5], (64,), 64 * 3 * 3),
        "fc1_w": u(ks[6], (512, 7 * 7 * 64), 7 * 7 * 64),
        "fc1_b": u(ks[7], (512,), 7 * 7 * 64),
        "fc2_w": u(ks[8], (2, 512), 512),
        "fc2_b": u(ks[9], (2,), 512),
    }
    # TODO(synk): dropout(0.2) is inactive in eval-mode forward; not applied here.


def prepare_params(p):
    """One-time conversion: PyTorch layout -> kernel layout (bf16, padded, permuted)."""
    def conv_prep(w, b):
        o, c, kh, kw = w.shape
        n_pad = ((o + 127) // 128) * 128                       # lane-dense output
        wmat = w.reshape(o, c * kh * kw).T                     # (C*kh*kw, O), (C,kh,kw) order
        wmat = jnp.pad(wmat, ((0, 0), (0, n_pad - o)))
        bias = jnp.pad(b, (0, n_pad - o)).reshape(1, n_pad).astype(jnp.float32)
        return wmat.astype(jnp.bfloat16), bias

    c1w, c1b = conv_prep(p["conv1_w"], p["conv1_b"])
    c2w, c2b = conv_prep(p["conv2_w"], p["conv2_b"])
    c3w, c3b = conv_prep(p["conv3_w"], p["conv3_b"])

    # fc1 expects the NCHW flatten (c,h,w); we feed the NHWC flatten (h,w,c),
    # so permute the input-feature axis of the weight once here.
    out_f, in_f = p["fc1_w"].shape                              # (512, 3136)
    c3 = p["conv3_w"].shape[0]                                  # 64
    side = int(round((in_f // c3) ** 0.5))                      # 7
    w1 = (p["fc1_w"].reshape(out_f, c3, side, side)
          .transpose(2, 3, 1, 0).reshape(in_f, out_f))          # (3136, 512), NHWC rows
    return {
        "conv1_w": c1w, "conv1_b": c1b,
        "conv2_w": c2w, "conv2_b": c2b,
        "conv3_w": c3w, "conv3_b": c3b,
        "fc1_w": w1.astype(jnp.bfloat16),
        "fc1_b": p["fc1_b"].reshape(1, out_f).astype(jnp.float32),
        "fc2_w": p["fc2_w"].T.astype(jnp.bfloat16),             # (512, 2)
        "fc2_b": p["fc2_b"].reshape(1, -1).astype(jnp.float32),
    }


# ------------------------------ pure-JAX reference ---------------------------

def reference_forward(p, x_nchw):
    dn = ("NCHW", "OIHW", "NCHW")
    x = jax.lax.conv_general_dilated(x_nchw, p["conv1_w"], (4, 4), "VALID",
                                     dimension_numbers=dn)
    x = jax.nn.relu(x + p["conv1_b"][None, :, None, None])
    x = jax.lax.conv_general_dilated(x, p["conv2_w"], (2, 2), "VALID",
                                     dimension_numbers=dn)
    x = jax.nn.relu(x + p["conv2_b"][None, :, None, None])
    x = jax.lax.conv_general_dilated(x, p["conv3_w"], (1, 1), "VALID",
                                     dimension_numbers=dn)
    x = jax.nn.relu(x + p["conv3_b"][None, :, None, None])
    flat = x.reshape(x.shape[0], -1)                            # NCHW flatten (PyTorch)
    vels = jax.nn.relu(flat @ p["fc1_w"].T + p["fc1_b"])
    probs = jax.nn.softmax(vels @ p["fc2_w"].T + p["fc2_b"], axis=-1)
    return vels, probs


# ----------------------------------- main ------------------------------------

if __name__ == "__main__":
    key = jax.random.PRNGKey(0)
    pkey, xkey = jax.random.split(key)
    torch_params = init_params_torch_layout(pkey)
    kernel_params = prepare_params(torch_params)

    # fc1 geometry (7*7*64) implies 84x84 spatial input; batch kept small (2).
    x = jax.random.normal(xkey, (2, 4, 84, 84), dtype=jnp.float32)

    fwd = jax.jit(policy_conv_net_forward)
    vels, probs = fwd(kernel_params, x)
    jax.block_until_ready((vels, probs))

    assert vels.shape == (2, 512) and probs.shape == (2, 2)
    assert bool(jnp.all(jnp.isfinite(vels))) and bool(jnp.all(jnp.isfinite(probs)))
    assert bool(jnp.allclose(jnp.sum(probs, axis=-1), 1.0, atol=1e-5))

    # Cross-check against a plain-XLA PyTorch-layout reference (bf16-MXU tolerance).
    vels_ref, probs_ref = jax.jit(reference_forward)(torch_params, x)
    jax.block_until_ready((vels_ref, probs_ref))
    assert bool(jnp.allclose(vels, vels_ref, rtol=2e-2, atol=2e-2))
    assert bool(jnp.allclose(probs, probs_ref, atol=2e-2))

    print("KERNEL_OK")
</pallas_src>

<mosaic_0001>
module attributes {stable_mosaic.version = 11 : i64} {
  func.func @_mm_bias_relu_kernel(%arg0: i32, %arg1: memref<400x256xf32, #tpu.memory_space<vmem>>, %arg2: memref<256x128xbf16, #tpu.memory_space<vmem>>, %arg3: memref<1x128xf32, #tpu.memory_space<vmem>>, %arg4: memref<400x128xf32, #tpu.memory_space<vmem>>) attributes {dimension_semantics = [#tpu.dimension_semantics<parallel>], iteration_bounds = array<i64: 2>, scalar_prefetch = 0 : i64, scratch_operands = 0 : i64, tpu.core_type = #tpu.core_type<tc>, window_params = [{transform_indices = @transform_0, window_bounds = array<i64: 400, 256>}, {pipeline_mode = #tpu.pipeline_mode<synchronous>, transform_indices = @transform_1, window_bounds = array<i64: 256, 128>}, {pipeline_mode = #tpu.pipeline_mode<synchronous>, transform_indices = @transform_2, window_bounds = array<i64: 1, 128>}, {transform_indices = @transform_3, window_bounds = array<i64: 400, 128>}]} {
    %c0 = arith.constant 0 : index
    %c0_0 = arith.constant 0 : index
    %0 = vector.load %arg1[%c0, %c0_0] : memref<400x256xf32, #tpu.memory_space<vmem>>, vector<400x256xf32>
    %1 = arith.truncf %0 : vector<400x256xf32> to vector<400x256xbf16>
    %c0_1 = arith.constant 0 : index
    %c0_2 = arith.constant 0 : index
    %2 = vector.load %arg2[%c0_1, %c0_2] : memref<256x128xbf16, #tpu.memory_space<vmem>>, vector<256x128xbf16>
    %cst = arith.constant dense<0.000000e+00> : vector<400x128xf32>
    %3 = tpu.matmul %1, %2, %cst {dimension_numbers = #tpu.dot_dimension_numbers<[1], [0], [0], [1], [0, 0, 1, 1], [], []>} : vector<400x256xbf16>, vector<256x128xbf16>, vector<400x128xf32> -> vector<400x128xf32>
    %c0_3 = arith.constant 0 : index
    %c0_4 = arith.constant 0 : index
    %4 = vector.load %arg3[%c0_3, %c0_4] : memref<1x128xf32, #tpu.memory_space<vmem>>, vector<1x128xf32>
    %5 = vector.broadcast %4 : vector<1x128xf32> to vector<400x128xf32>
    %6 = arith.addf %3, %5 : vector<400x128xf32>
    %cst_5 = arith.constant 0.000000e+00 : f32
    %7 = vector.broadcast %cst_5 : f32 to vector<400x128xf32>
    %8 = arith.maximumf %6, %7 : vector<400x128xf32>
    %c0_6 = arith.constant 0 : index
    %c0_7 = arith.constant 0 : index
    %9 = vector.load %arg4[%c0_6, %c0_7] : memref<400x128xf32, #tpu.memory_space<vmem>>, vector<400x128xf32>
    tpu.vector_store %arg4[%c0_6, %c0_7], %8 {strides = array<i32>} : memref<400x128xf32, #tpu.memory_space<vmem>>, vector<400x128xf32>,
    return
  }
  func.func @transform_0(%arg0: i32) -> (i32, i32) {
    %c0_i32 = arith.constant 0 : i32
    %c0_i32_0 = arith.constant 0 : i32
    return %arg0, %c0_i32 : i32, i32
  }
  func.func @transform_1(%arg0: i32) -> (i32, i32) {
    %c0_i32 = arith.constant 0 : i32
    %c0_i32_0 = arith.constant 0 : i32
    %c0_i32_1 = arith.constant 0 : i32
    return %c0_i32, %c0_i32_0 : i32, i32
  }
  func.func @transform_2(%arg0: i32) -> (i32, i32) {
    %c0_i32 = arith.constant 0 : i32
    %c0_i32_0 = arith.constant 0 : i32
    %c0_i32_1 = arith.constant 0 : i32
    return %c0_i32, %c0_i32_0 : i32, i32
  }
  func.func @transform_3(%arg0: i32) -> (i32, i32) {
    %c0_i32 = arith.constant 0 : i32
    %c0_i32_0 = arith.constant 0 : i32
    return %arg0, %c0_i32 : i32, i32
  }
}

module attributes {stable_mosaic.version = 11 : i64} {
  func.func @_mm_bias_relu_kernel(%arg0: i32, %arg1: memref<162x512xf32, #tpu.memory_space<vmem>>, %arg2: memref<512x128xbf16, #tpu.memory_space<vmem>>, %arg3: memref<1x128xf32, #tpu.memory_space<vmem>>, %arg4: memref<162x128xf32, #tpu.memory_space<vmem>>) attributes {dimension_semantics = [#tpu.dimension_semantics<parallel>], iteration_bounds = array<i64: 1>, scalar_prefetch = 0 : i64, scratch_operands = 0 : i64, tpu.core_type = #tpu.core_type<tc>, window_params = [{transform_indices = @transform_0, window_bounds = array<i64: 162, 512>}, {pipeline_mode = #tpu.pipeline_mode<synchronous>, transform_indices = @transform_1, window_bounds = array<i64: 512, 128>}, {pipeline_mode = #tpu.pipeline_mode<synchronous>, transform_indices = @transform_2, window_bounds = array<i64: 1, 128>}, {transform_indices = @transform_3, window_bounds = array<i64: 162, 128>}]} {
    %c0 = arith.constant 0 : index
    %c0_0 = arith.constant 0 : index
    %0 = vector.load %arg1[%c0, %c0_0] : memref<162x512xf32, #tpu.memory_space<vmem>>, vector<162x512xf32>
    %1 = arith.truncf %0 : vector<162x512xf32> to vector<162x512xbf16>
    %c0_1 = arith.constant 0 : index
    %c0_2 = arith.constant 0 : index
    %2 = vector.load %arg2[%c0_1, %c0_2] : memref<512x128xbf16, #tpu.memory_space<vmem>>, vector<512x128xbf16>
    %cst = arith.constant dense<0.000000e+00> : vector<162x128xf32>
    %3 = tpu.matmul %1, %2, %cst {dimension_numbers = #tpu.dot_dimension_numbers<[1], [0], [0], [1], [0, 0, 1, 1], [], []>} : vector<162x512xbf16>, vector<512x128xbf16>, vector<162x128xf32> -> vector<162x128xf32>
    %c0_3 = arith.constant 0 : index
    %c0_4 = arith.constant 0 : index
    %4 = vector.load %arg3[%c0_3, %c0_4] : memref<1x128xf32, #tpu.memory_space<vmem>>, vector<1x128xf32>
    %5 = vector.broadcast %4 : vector<1x128xf32> to vector<162x128xf32>
    %6 = arith.addf %3, %5 : vector<162x128xf32>
    %cst_5 = arith.constant 0.000000e+00 : f32
    %7 = vector.broadcast %cst_5 : f32 to vector<162x128xf32>
    %8 = arith.maximumf %6, %7 : vector<162x128xf32>
    %c0_6 = arith.constant 0 : index
    %c0_7 = arith.constant 0 : index
    %9 = vector.load %arg4[%c0_6, %c0_7] : memref<162x128xf32, #tpu.memory_space<vmem>>, vector<162x128xf32>
    tpu.vector_store %arg4[%c0_6, %c0_7], %8 {strides = array<i32>} : memref<162x128xf32, #tpu.memory_space<vmem>>, vector<162x128xf32>,
    return
  }
  func.func @transform_0(%arg0: i32) -> (i32, i32) {
    %c0_i32 = arith.constant 0 : i32
    %c0_i32_0 = arith.constant 0 : i32
    return %arg0, %c0_i32 : i32, i32
  }
  func.func @transform_1(%arg0: i32) -> (i32, i32) {
    %c0_i32 = arith.constant 0 : i32
    %c0_i32_0 = arith.constant 0 : i32
    %c0_i32_1 = arith.constant 0 : i32
    return %c0_i32, %c0_i32_0 : i32, i32
  }
  func.func @transform_2(%arg0: i32) -> (i32, i32) {
    %c0_i32 = arith.constant 0 : i32
    %c0_i32_0 = arith.constant 0 : i32
    %c0_i32_1 = arith.constant 0 : i32
    return %c0_i32, %c0_i32_0 : i32, i32
  }
  func.func @transform_3(%arg0: i32) -> (i32, i32) {
    %c0_i32 = arith.constant 0 : i32
    %c0_i32_0 = arith.constant 0 : i32
    return %arg0, %c0_i32 : i32, i32
  }
}

module attributes {stable_mosaic.version = 11 : i64} {
  func.func @_mm_bias_relu_kernel(%arg0: i32, %arg1: memref<98x576xf32, #tpu.memory_space<vmem>>, %arg2: memref<576x128xbf16, #tpu.memory_space<vmem>>, %arg3: memref<1x128xf32, #tpu.memory_space<vmem>>, %arg4: memref<98x128xf32, #tpu.memory_space<vmem>>) attributes {dimension_semantics = [#tpu.dimension_semantics<parallel>], iteration_bounds = array<i64: 1>, scalar_prefetch = 0 : i64, scratch_operands = 0 : i64, tpu.core_type = #tpu.core_type<tc>, window_params = [{transform_indices = @transform_0, window_bounds = array<i64: 98, 576>}, {pipeline_mode = #tpu.pipeline_mode<synchronous>, transform_indices = @transform_1, window_bounds = array<i64: 576, 128>}, {pipeline_mode = #tpu.pipeline_mode<synchronous>, transform_indices = @transform_2, window_bounds = array<i64: 1, 128>}, {transform_indices = @transform_3, window_bounds = array<i64: 98, 128>}]} {
    %c0 = arith.constant 0 : index
    %c0_0 = arith.constant 0 : index
    %0 = vector.load %arg1[%c0, %c0_0] : memref<98x576xf32, #tpu.memory_space<vmem>>, vector<98x576xf32>
    %1 = arith.truncf %0 : vector<98x576xf32> to vector<98x576xbf16>
    %c0_1 = arith.constant 0 : index
    %c0_2 = arith.constant 0 : index
    %2 = vector.load %arg2[%c0_1, %c0_2] : memref<576x128xbf16, #tpu.memory_space<vmem>>, vector<576x128xbf16>
    %cst = arith.constant dense<0.000000e+00> : vector<98x128xf32>
    %3 = tpu.matmul %1, %2, %cst {dimension_numbers = #tpu.dot_dimension_numbers<[1], [0], [0], [1], [0, 0, 1, 1], [], []>} : vector<98x576xbf16>, vector<576x128xbf16>, vector<98x128xf32> -> vector<98x128xf32>
    %c0_3 = arith.constant 0 : index
    %c0_4 = arith.constant 0 : index
    %4 = vector.load %arg3[%c0_3, %c0_4] : memref<1x128xf32, #tpu.memory_space<vmem>>, vector<1x128xf32>
    %5 = vector.broadcast %4 : vector<1x128xf32> to vector<98x128xf32>
    %6 = arith.addf %3, %5 : vector<98x128xf32>
    %cst_5 = arith.constant 0.000000e+00 : f32
    %7 = vector.broadcast %cst_5 : f32 to vector<98x128xf32>
    %8 = arith.maximumf %6, %7 : vector<98x128xf32>
    %c0_6 = arith.constant 0 : index
    %c0_7 = arith.constant 0 : index
    %9 = vector.load %arg4[%c0_6, %c0_7] : memref<98x128xf32, #tpu.memory_space<vmem>>, vector<98x128xf32>
    tpu.vector_store %arg4[%c0_6, %c0_7], %8 {strides = array<i32>} : memref<98x128xf32, #tpu.memory_space<vmem>>, vector<98x128xf32>,
    return
  }
  func.func @transform_0(%arg0: i32) -> (i32, i32) {
    %c0_i32 = arith.constant 0 : i32
    %c0_i32_0 = arith.constant 0 : i32
    return %arg0, %c0_i32 : i32, i32
  }
  func.func @transform_1(%arg0: i32) -> (i32, i32) {
    %c0_i32 = arith.constant 0 : i32
    %c0_i32_0 = arith.constant 0 : i32
    %c0_i32_1 = arith.constant 0 : i32
    return %c0_i32, %c0_i32_0 : i32, i32
  }
  func.func @transform_2(%arg0: i32) -> (i32, i32) {
    %c0_i32 = arith.constant 0 : i32
    %c0_i32_0 = arith.constant 0 : i32
    %c0_i32_1 = arith.constant 0 : i32
    return %c0_i32, %c0_i32_0 : i32, i32
  }
  func.func @transform_3(%arg0: i32) -> (i32, i32) {
    %c0_i32 = arith.constant 0 : i32
    %c0_i32_0 = arith.constant 0 : i32
    return %arg0, %c0_i32 : i32, i32
  }
}

module attributes {stable_mosaic.version = 11 : i64} {
  func.func @_fc_head_kernel(%arg0: i32, %arg1: memref<2x3136xf32, #tpu.memory_space<vmem>>, %arg2: memref<3136x512xbf16, #tpu.memory_space<vmem>>, %arg3: memref<1x512xf32, #tpu.memory_space<vmem>>, %arg4: memref<512x2xbf16, #tpu.memory_space<vmem>>, %arg5: memref<1x2xf32, #tpu.memory_space<vmem>>, %arg6: memref<2x512xf32, #tpu.memory_space<vmem>>, %arg7: memref<2x2xf32, #tpu.memory_space<vmem>>) attributes {dimension_semantics = [#tpu.dimension_semantics<parallel>], iteration_bounds = array<i64: 1>, scalar_prefetch = 0 : i64, scratch_operands = 0 : i64, tpu.core_type = #tpu.core_type<tc>, window_params = [{transform_indices = @transform_0, window_bounds = array<i64: 2, 3136>}, {pipeline_mode = #tpu.pipeline_mode<synchronous>, transform_indices = @transform_1, window_bounds = array<i64: 3136, 512>}, {pipeline_mode = #tpu.pipeline_mode<synchronous>, transform_indices = @transform_2, window_bounds = array<i64: 1, 512>}, {pipeline_mode = #tpu.pipeline_mode<synchronous>, transform_indices = @transform_3, window_bounds = array<i64: 512, 2>}, {pipeline_mode = #tpu.pipeline_mode<synchronous>, transform_indices = @transform_4, window_bounds = array<i64: 1, 2>}, {transform_indices = @transform_5, window_bounds = array<i64: 2, 512>}, {transform_indices = @transform_6, window_bounds = array<i64: 2, 2>}]} {
    %c0 = arith.constant 0 : index
    %c0_0 = arith.constant 0 : index
    %0 = vector.load %arg1[%c0, %c0_0] : memref<2x3136xf32, #tpu.memory_space<vmem>>, vector<2x3136xf32>
    %1 = arith.truncf %0 : vector<2x3136xf32> to vector<2x3136xbf16>
    %c0_1 = arith.constant 0 : index
    %c0_2 = arith.constant 0 : index
    %2 = vector.load %arg2[%c0_1, %c0_2] : memref<3136x512xbf16, #tpu.memory_space<vmem>>, vector<3136x512xbf16>
    %cst = arith.constant dense<0.000000e+00> : vector<2x512xf32>
    %3 = tpu.matmul %1, %2, %cst {dimension_numbers = #tpu.dot_dimension_numbers<[1], [0], [0], [1], [0, 0, 1, 1], [], []>} : vector<2x3136xbf16>, vector<3136x512xbf16>, vector<2x512xf32> -> vector<2x512xf32>
    %c0_3 = arith.constant 0 : index
    %c0_4 = arith.constant 0 : index
    %4 = vector.load %arg3[%c0_3, %c0_4] : memref<1x512xf32, #tpu.memory_space<vmem>>, vector<1x512xf32>
    %5 = vector.broadcast %4 : vector<1x512xf32> to vector<2x512xf32>
    %6 = arith.addf %3, %5 : vector<2x512xf32>
    %cst_5 = arith.constant 0.000000e+00 : f32
    %7 = vector.broadcast %cst_5 : f32 to vector<2x512xf32>
    %8 = arith.maximumf %6, %7 : vector<2x512xf32>
    %c0_6 = arith.constant 0 : index
    %c0_7 = arith.constant 0 : index
    %9 = vector.load %arg6[%c0_6, %c0_7] : memref<2x512xf32, #tpu.memory_space<vmem>>, vector<2x512xf32>
    tpu.vector_store %arg6[%c0_6, %c0_7], %8 {strides = array<i32>} : memref<2x512xf32, #tpu.memory_space<vmem>>, vector<2x512xf32>,
    %10 = arith.truncf %8 : vector<2x512xf32> to vector<2x512xbf16>
    %c0_8 = arith.constant 0 : index
    %c0_9 = arith.constant 0 : index
    %11 = vector.load %arg4[%c0_8, %c0_9] : memref<512x2xbf16, #tpu.memory_space<vmem>>, vector<512x2xbf16>
    %cst_10 = arith.constant dense<0.000000e+00> : vector<2x2xf32>
    %12 = tpu.matmul %10, %11, %cst_10 {dimension_numbers = #tpu.dot_dimension_numbers<[1], [0], [0], [1], [0, 0, 1, 1], [], []>} : vector<2x512xbf16>, vector<512x2xbf16>, vector<2x2xf32> -> vector<2x2xf32>
    %c0_11 = arith.constant 0 : index
    %c0_12 = arith.constant 0 : index
    %13 = vector.load %arg5[%c0_11, %c0_12] : memref<1x2xf32, #tpu.memory_space<vmem>>, vector<1x2xf32>
    %14 = vector.broadcast %13 : vector<1x2xf32> to vector<2x2xf32>
    %15 = arith.addf %12, %14 : vector<2x2xf32>
    %cst_13 = arith.constant dense<0xFF800000> : vector<2xf32>
    %16 = vector.multi_reduction <maximumf>, %15, %cst_13 [1] : vector<2x2xf32> to vector<2xf32>
    %17 = vector.shape_cast %16 : vector<2xf32> to vector<2x1xf32>
    %18 = vector.broadcast %17 : vector<2x1xf32> to vector<2x2xf32>
    %19 = arith.subf %15, %18 : vector<2x2xf32>
    %20 = math.exp %19 : vector<2x2xf32>
    %cst_14 = arith.constant dense<0.000000e+00> : vector<2xf32>
    %21 = vector.multi_reduction <add>, %20, %cst_14 [1] : vector<2x2xf32> to vector<2xf32>
    %22 = vector.shape_cast %21 : vector<2xf32> to vector<2x1xf32>
    %23 = vector.broadcast %22 : vector<2x1xf32> to vector<2x2xf32>
    %24 = arith.divf %20, %23 : vector<2x2xf32>
    %c0_15 = arith.constant 0 : index
    %c0_16 = arith.constant 0 : index
    %25 = vector.load %arg7[%c0_15, %c0_16] : memref<2x2xf32, #tpu.memory_space<vmem>>, vector<2x2xf32>
    tpu.vector_store %arg7[%c0_15, %c0_16], %24 {strides = array<i32>} : memref<2x2xf32, #tpu.memory_space<vmem>>, vector<2x2xf32>,
    return
  }
  func.func @transform_0(%arg0: i32) -> (i32, i32) {
    %c0_i32 = arith.constant 0 : i32
    %c0_i32_0 = arith.constant 0 : i32
    return %arg0, %c0_i32 : i32, i32
  }
  func.func @transform_1(%arg0: i32) -> (i32, i32) {
    %c0_i32 = arith.constant 0 : i32
    %c0_i32_0 = arith.constant 0 : i32
    %c0_i32_1 = arith.constant 0 : i32
    return %c0_i32, %c0_i32_0 : i32, i32
  }
  func.func @transform_2(%arg0: i32) -> (i32, i32) {
    %c0_i32 = arith.constant 0 : i32
    %c0_i32_0 = arith.constant 0 : i32
    %c0_i32_1 = arith.constant 0 : i32
    return %c0_i32, %c0_i32_0 : i32, i32
  }
  func.func @transform_3(%arg0: i32) -> (i32, i32) {
    %c0_i32 = arith.constant 0 : i32
    %c0_i32_0 = arith.constant 0 : i32
    %c0_i32_1 = arith.constant 0 : i32
    return %c0_i32, %c0_i32_0 : i32, i32
  }
  func.func @transform_4(%arg0: i32) -> (i32, i32) {
    %c0_i32 = arith.constant 0 : i32
    %c0_i32_0 = arith.constant 0 : i32
    %c0_i32_1 = arith.constant 0 : i32
    return %c0_i32, %c0_i32_0 : i32, i32
  }
  func.func @transform_5(%arg0: i32) -> (i32, i32) {
    %c0_i32 = arith.constant 0 : i32
    %c0_i32_0 = arith.constant 0 : i32
    return %arg0, %c0_i32 : i32, i32
  }
  func.func @transform_6(%arg0: i32) -> (i32, i32) {
    %c0_i32 = arith.constant 0 : i32
    %c0_i32_0 = arith.constant 0 : i32
    return %arg0, %c0_i32 : i32, i32
  }
}

</mosaic_0001>

<bundles_post_ra>
// kernel: policy_conv_net_forward.4
= control target key start
LH: loop header
LB: loop body
LE: loop exit
PB: predicated region body
PF: predicated region fallthrough
CT: control target
= control target key end

     0   :  { %s966_s12 = smov 0   ;;  %s1276_s0 = inlined_call_operand.vmem [shape: f32[800,256], index: 0, kind: input, shape index: {}]   ;;  %s1277_s1 = inlined_call_operand.vmem [shape: bf16[256,128], index: 1, kind: input, shape index: {}]   ;;  %s1278_s2 = inlined_call_operand.vmem [shape: f32[1,128], index: 2, kind: input, shape index: {}]   ;;  %s1279_s3 = inlined_call_operand.vmem [shape: f32[800,128], index: 3, kind: output, shape index: {}]  }
   0x1 LB: > { %s852_s13 = sadd.s32 4294967295, %s943_s12   ;;  %p856_p0 = scmp.ge.s32.totalorder %s943_s12, 1  ;;  %s943_s12 = sphi %s966_s12, %s13_s12  }
   0x2   : > { %p139_p1 = scmp.lt.s32.totalorder %s943_s12, 3 }
   0x4   : > { %p140_p2 = pnand %p856_p0, %p139_p1 }
   0x5   : > { %v921_v0 = vld [vmem:[%s1277_s1] sm:$0xff] (!%p140_p2)   ;;  %v945_v1 = vmov (!%p140_p2), 0   ;;  %s164_s16 = smul.u32 (!%p140_p2), 50, %s852_s13  ;;  %v922_v2 = vld [vmem:[%s1277_s1 + $0x8] sm:$0xff] (!%p140_p2)   ;;  %v923_v3 = vld [vmem:[%s1277_s1 + $0x10] sm:$0xff] (!%p140_p2)  }
   0x6   : > { %143 = sbr.rel (%p140_p2) target bundleno = 385 (0x181), region = 32  ;;  %463 = vmatprep.subr.bf16.mxu0 (!%p140_p2), %v945_v1  ;;  %880 = vmatprep.subr.bf16.mxu1 (!%p140_p2), %v945_v1  ;;  %v924_v4 = vld [vmem:[%s1277_s1 + $0x18] sm:$0xff] (!%p140_p2)   ;;  %v925_v5 = vld [vmem:[%s1277_s1 + $0x20] sm:$0xff] (!%p140_p2)   ;;  %v926_v11 = vld [vmem:[%s1277_s1 + $0x28] sm:$0xff] (!%p140_p2)  }
   0x7   : > { %464 = vmatpush1.bf16.msra.mxu0 (!%p140_p2), %v921_v0  ;;  %896 = vmatpush1.bf16.msra.mxu1 (!%p140_p2), %v921_v0  ;;  %p165_p3 = scmp.lt.s32.totalorder (!%p140_p2), %s164_s16, 99  ;;  %v927_v13 = vld [vmem:[%s1277_s1 + $0x30] sm:$0xff] (!%p140_p2)   ;;  %v928_v14 = vld [vmem:[%s1277_s1 + $0x38] sm:$0xff] (!%p140_p2)   ;;  %v929_v15 = vld [vmem:[%s1277_s1 + $0x40] sm:$0xff] (!%p140_p2)  }
   0x8   : > { %465 = vmatprep.subr.bf16.mxu0 (!%p140_p2), %v945_v1  ;;  %881 = vmatprep.subr.bf16.mxu1 (!%p140_p2), %v945_v1  ;;  %v930_v16 = vld [vmem:[%s1277_s1 + $0x48] sm:$0xff] (!%p140_p2)   ;;  %v931_v17 = vld [vmem:[%s1277_s1 + $0x50] sm:$0xff] (!%p140_p2)   ;;  %v932_v18 = vld [vmem:[%s1277_s1 + $0x58] sm:$0xff] (!%p140_p2)  }
   0x9   : > { %v933_v19 = vld [vmem:[%s1277_s1 + $0x60] sm:$0xff] (!%p140_p2)   ;;  %v934_v20 = vld [vmem:[%s1277_s1 + $0x68] sm:$0xff] (!%p140_p2)   ;;  %v935_v21 = vld [vmem:[%s1277_s1 + $0x70] sm:$0xff] (!%p140_p2)  }
   0xa   : > { %v936_v22 = vld [vmem:[%s1277_s1 + $0x78] sm:$0xff] (!%p140_p2)  }
   0xb   : > { %466 = vmatpush1.bf16.msra.mxu0 (!%p140_p2), %v922_v2  ;;  %897 = vmatpush1.bf16.msra.mxu1 (!%p140_p2), %v922_v2 }
   0xc   : > { %467 = vmatprep.subr.bf16.mxu0 (!%p140_p2), %v945_v1  ;;  %882 = vmatprep.subr.bf16.mxu1 (!%p140_p2), %v945_v1 }
   0xd   : > { %s1281_s16 = smov (!%p165_p3, %s164_s16), 99 }
   0xe   : > { %s879_s23 = sshll.u32 %s1281_s16, 4  ;;  %s859_s29 = sshll.u32 %s1281_s16, 3 }
   0xf   : > { %468 = vmatpush1.bf16.msra.mxu0 %v923_v3  ;;  %898 = vmatpush1.bf16.msra.mxu1 %v923_v3  ;;  %s1000_s26 = scalar_lea.vmem %s1276_s0, %s879_s23 }
  0x10   : > { %469 = vmatprep.subr.bf16.mxu0 %v945_v1  ;;  %883 = vmatprep.subr.bf16.mxu1 %v945_v1  ;;  %v179_v6 = vld [vmem:[%s1000_s26 + $0x8] sm:$0xff]  ;;  %v181_v7 = vld [vmem:[%s1000_s26 + $0x18] sm:$0xff]  ;;  %v178_v23 = vld [vmem:[%s1000_s26] sm:$0xff] }
  0x11   : > { %v279_v8 = vpack.c.bf16 %v181_v7, %v179_v6  ;;  %v231_v9 = vld [vmem:[%s1000_s26 + $0x1a8] sm:$0xff]  ;;  %v233_v10 = vld [vmem:[%s1000_s26 + $0x1b8] sm:$0xff]  ;;  %v180_v24 = vld [vmem:[%s1000_s26 + $0x10] sm:$0xff] }
  0x12   : > { %v305_v12 = vpack.c.bf16 %v233_v10, %v231_v9  ;;  %v230_v25 = vld [vmem:[%s1000_s26 + $0x1a0] sm:$0xff]  ;;  %v232_v26 = vld [vmem:[%s1000_s26 + $0x1b0] sm:$0xff]  ;;  %v183_v27 = vld [vmem:[%s1000_s26 + $0x28] sm:$0xff]  ;;  %v278_v31 = vpack.c.bf16 %v180_v24, %v178_v23 }
  0x13   : > { %470 = vmatpush1.bf16.msra.mxu0 %v924_v4  ;;  %899 = vmatpush1.bf16.msra.mxu1 %v924_v4  ;;  %v185_v28 = vld [vmem:[%s1000_s26 + $0x38] sm:$0xff]  ;;  %v235_v29 = vld [vmem:[%s1000_s26 + $0x1c8] sm:$0xff]  ;;  %v304_v32 = vpack.c.bf16 %v232_v26, %v230_v25  ;;  %v182_v35 = vld [vmem:[%s1000_s26 + $0x20] sm:$0xff] }
  0x14   : > { %471 = vmatprep.subr.bf16.mxu0 %v945_v1  ;;  %884 = vmatprep.subr.bf16.mxu1 %v945_v1  ;;  %v237_v30 = vld [vmem:[%s1000_s26 + $0x1d8] sm:$0xff]  ;;  %v281_v33 = vpack.c.bf16 %v185_v28, %v183_v27  ;;  %v184_v36 = vld [vmem:[%s1000_s26 + $0x30] sm:$0xff]  ;;  %v234_v37 = vld [vmem:[%s1000_s26 + $0x1c0] sm:$0xff] }
  0x15   : > { %495 = vmatprep.mubr.bf16.mxu0 %v279_v8  ;;  %599 = vmatprep.mubr.bf16.mxu1 %v305_v12  ;;  %v307_v34 = vpack.c.bf16 %v237_v30, %v235_v29  ;;  %v236_v38 = vld [vmem:[%s1000_s26 + $0x1d0] sm:$0xff]  ;;  %v187_v39 = vld [vmem:[%s1000_s26 + $0x48] sm:$0xff]  ;;  %v189_v40 = vld [vmem:[%s1000_s26 + $0x58] sm:$0xff]  ;;  %v280_v43 = vpack.c.bf16 %v184_v36, %v182_v35 }
  0x16   : > { %v239_v41 = vld [vmem:[%s1000_s26 + $0x1e8] sm:$0xff]  ;;  %v241_v42 = vld [vmem:[%s1000_s26 + $0x1f8] sm:$0xff]  ;;  %v306_v44 = vpack.c.bf16 %v236_v38, %v234_v37  ;;  %v283_v45 = vpack.c.bf16 %v189_v40, %v187_v39  ;;  %v186_v47 = vld [vmem:[%s1000_s26 + $0x40] sm:$0xff] }
  0x17   : > { %472 = vmatpush1.bf16.msra.mxu0 %v925_v5  ;;  %900 = vmatpush1.bf16.msra.mxu1 %v925_v5  ;;  %v309_v46 = vpack.c.bf16 %v241_v42, %v239_v41  ;;  %v188_v48 = vld [vmem:[%s1000_s26 + $0x50] sm:$0xff]  ;;  %v238_v49 = vld [vmem:[%s1000_s26 + $0x1e0] sm:$0xff]  ;;  %v191_v51 = vld [vmem:[%s1000_s26 + $0x68] sm:$0xff] }
  0x18   : > { %473 = vmatprep.subr.bf16.mxu0 %v945_v1  ;;  %885 = vmatprep.subr.bf16.mxu1 %v945_v1  ;;  %v240_v50 = vld [vmem:[%s1000_s26 + $0x1f0] sm:$0xff]  ;;  %v193_v52 = vld [vmem:[%s1000_s26 + $0x78] sm:$0xff]  ;;  %v243_v53 = vld [vmem:[%s1000_s26 + $0x208] sm:$0xff]  ;;  %v282_v55 = vpack.c.bf16 %v188_v48, %v186_v47 }
  0x19   : > { %v245_v54 = vld [vmem:[%s1000_s26 + $0x218] sm:$0xff]  ;;  %v308_v56 = vpack.c.bf16 %v240_v50, %v238_v49  ;;  %v285_v57 = vpack.c.bf16 %v193_v52, %v191_v51  ;;  %v190_v59 = vld [vmem:[%s1000_s26 + $0x60] sm:$0xff]  ;;  %v192_v60 = vld [vmem:[%s1000_s26 + $0x70] sm:$0xff] }
  0x1a   : > { %v311_v58 = vpack.c.bf16 %v245_v54, %v243_v53  ;;  %v242_v61 = vld [vmem:[%s1000_s26 + $0x200] sm:$0xff]  ;;  %v244_v62 = vld [vmem:[%s1000_s26 + $0x210] sm:$0xff]  ;;  %v195_v63 = vld [vmem:[%s1000_s26 + $0x88] sm:$0xff]  ;;  %v284_v3 = vpack.c.bf16 %v192_v60, %v190_v59 }
  0x1b   : > { %474 = vmatpush1.bf16.msra.mxu0 %v926_v11  ;;  %901 = vmatpush1.bf16.msra.mxu1 %v926_v11  ;;  %v197_v0 = vld [vmem:[%s1000_s26 + $0x98] sm:$0xff]  ;;  %v310_v4 = vpack.c.bf16 %v244_v62, %v242_v61  ;;  %v194_v7 = vld [vmem:[%s1000_s26 + $0x80] sm:$0xff]  ;;  %v196_v8 = vld [vmem:[%s1000_s26 + $0x90] sm:$0xff] }
  0x1c   : > { %475 = vmatprep.subr.bf16.mxu0 %v945_v1  ;;  %886 = vmatprep.subr.bf16.mxu1 %v945_v1  ;;  %v249_v2 = vld [vmem:[%s1000_s26 + $0x238] sm:$0xff]  ;;  %v287_v5 = vpack.c.bf16 %v197_v0, %v195_v63  ;;  %v246_v9 = vld [vmem:[%s1000_s26 + $0x220] sm:$0xff]  ;;  %v248_v10 = vld [vmem:[%s1000_s26 + $0x230] sm:$0xff] }
  0x1d   : > { %v199_v11 = vld [vmem:[%s1000_s26 + $0xa8] sm:$0xff]  ;;  %v201_v12 = vld [vmem:[%s1000_s26 + $0xb8] sm:$0xff] }
  0x1e   : > { %v203_v23 = vld [vmem:[%s1000_s26 + $0xc8] sm:$0xff]  ;;  %v205_v24 = vld [vmem:[%s1000_s26 + $0xd8] sm:$0xff] }
  0x1f   : > { %476 = vmatpush1.bf16.msra.mxu0 %v927_v13  ;;  %902 = vmatpush1.bf16.msra.mxu1 %v927_v13  ;;  %v251_v13 = vld [vmem:[%s1000_s26 + $0x248] sm:$0xff]  ;;  %v257_v26 = vld [vmem:[%s1000_s26 + $0x278] sm:$0xff]  ;;  %v291_v29 = vpack.c.bf16 %v205_v24, %v203_v23 }
  0x20   : > { %477 = vmatprep.subr.bf16.mxu0 %v945_v1  ;;  %887 = vmatprep.subr.bf16.mxu1 %v945_v1  ;;  %v255_v25 = vld [vmem:[%s1000_s26 + $0x268] sm:$0xff]  ;;  %v209_v36 = vld [vmem:[%s1000_s26 + $0xf8] sm:$0xff] }
  0x21   : > { %v317_v30 = vpack.c.bf16 %v257_v26, %v255_v25  ;;  %v207_v35 = vld [vmem:[%s1000_s26 + $0xe8] sm:$0xff]  ;;  %v261_v38 = vld [vmem:[%s1000_s26 + $0x298] sm:$0xff] }
  0x22   : > { %v259_v37 = vld [vmem:[%s1000_s26 + $0x288] sm:$0xff]  ;;  %v293_v41 = vpack.c.bf16 %v209_v36, %v207_v35  ;;  %v213_v48 = vld [vmem:[%s1000_s26 + $0x118] sm:$0xff]  ;;  %v226_v36 = vld [vmem:[%s1000_s26 + $0x180] sm:$0xff] }
  0x23   : > { %478 = vmatpush1.bf16.msra.mxu0 %v928_v14  ;;  %903 = vmatpush1.bf16.msra.mxu1 %v928_v14  ;;  %v253_v14 = vld [vmem:[%s1000_s26 + $0x258] sm:$0xff]  ;;  %v319_v42 = vpack.c.bf16 %v261_v38, %v259_v37  ;;  %v211_v47 = vld [vmem:[%s1000_s26 + $0x108] sm:$0xff]  ;;  %v228_v37 = vld [vmem:[%s1000_s26 + $0x190] sm:$0xff] }
  0x24   : > { %479 = vmatprep.subr.bf16.mxu0 %v945_v1  ;;  %888 = vmatprep.subr.bf16.mxu1 %v945_v1  ;;  %v263_v49 = vld [vmem:[%s1000_s26 + $0x2a8] sm:$0xff]  ;;  %v265_v50 = vld [vmem:[%s1000_s26 + $0x2b8] sm:$0xff]  ;;  %v295_v53 = vpack.c.bf16 %v213_v48, %v211_v47  ;;  %v302_v38 = vpack.c.bf16 %v228_v37, %v226_v36 }
  0x25   : > { %v321_v54 = vpack.c.bf16 %v265_v50, %v263_v49  ;;  %v215_v59 = vld [vmem:[%s1000_s26 + $0x128] sm:$0xff]  ;;  %v217_v60 = vld [vmem:[%s1000_s26 + $0x138] sm:$0xff] }
  0x26   : > { %v267_v61 = vld [vmem:[%s1000_s26 + $0x2c8] sm:$0xff]  ;;  %v269_v62 = vld [vmem:[%s1000_s26 + $0x2d8] sm:$0xff] }
  0x27   : > { %480 = vmatpush1.bf16.msra.mxu0 %v929_v15  ;;  %904 = vmatpush1.bf16.msra.mxu1 %v929_v15  ;;  %v286_v15 = vpack.c.bf16 %v196_v8, %v194_v7  ;;  %v219_v7 = vld [vmem:[%s1000_s26 + $0x148] sm:$0xff]  ;;  %v221_v8 = vld [vmem:[%s1000_s26 + $0x158] sm:$0xff] }
  0x28   : > { %481 = vmatprep.subr.bf16.mxu0 %v945_v1  ;;  %889 = vmatprep.subr.bf16.mxu1 %v945_v1 }
  0x2b   : > { %482 = vmatpush1.bf16.msra.mxu0 %v930_v16  ;;  %905 = vmatpush1.bf16.msra.mxu1 %v930_v16  ;;  %v312_v16 = vpack.c.bf16 %v248_v10, %v246_v9  ;;  %v271_v9 = vld [vmem:[%s1000_s26 + $0x2e8] sm:$0xff]  ;;  %v273_v10 = vld [vmem:[%s1000_s26 + $0x2f8] sm:$0xff] }
  0x2c   : > { %483 = vmatprep.subr.bf16.mxu0 %v945_v1  ;;  %890 = vmatprep.subr.bf16.mxu1 %v945_v1 }
  0x2f   : > { %484 = vmatpush1.bf16.msra.mxu0 %v931_v17  ;;  %906 = vmatpush1.bf16.msra.mxu1 %v931_v17  ;;  %v289_v17 = vpack.c.bf16 %v201_v12, %v199_v11 }
  0x30   : > { %485 = vmatprep.subr.bf16.mxu0 %v945_v1  ;;  %891 = vmatprep.subr.bf16.mxu1 %v945_v1 }
  0x33   : > { %486 = vmatpush1.bf16.msra.mxu0 %v932_v18  ;;  %907 = vmatpush1.bf16.msra.mxu1 %v932_v18  ;;  %v315_v18 = vpack.c.bf16 %v253_v14, %v251_v13  ;;  %v299_v13 = vpack.c.bf16 %v221_v8, %v219_v7  ;;  %v325_v14 = vpack.c.bf16 %v273_v10, %v271_v9 }
  0x34   : > { %487 = vmatprep.subr.bf16.mxu0 %v945_v1  ;;  %892 = vmatprep.subr.bf16.mxu1 %v945_v1 }
  0x37   : > { %488 = vmatpush1.bf16.msra.mxu0 %v933_v19  ;;  %908 = vmatpush1.bf16.msra.mxu1 %v933_v19  ;;  %v198_v19 = vld [vmem:[%s1000_s26 + $0xa0] sm:$0xff] }
  0x38   : > { %489 = vmatprep.subr.bf16.mxu0 %v945_v1  ;;  %893 = vmatprep.subr.bf16.mxu1 %v945_v1 }
  0x3b   : > { %490 = vmatpush1.bf16.msra.mxu0 %v934_v20  ;;  %909 = vmatpush1.bf16.msra.mxu1 %v934_v20  ;;  %v200_v20 = vld [vmem:[%s1000_s26 + $0xb0] sm:$0xff] }
  0x3c   : > { %491 = vmatprep.subr.bf16.mxu0 %v945_v1  ;;  %894 = vmatprep.subr.bf16.mxu1 %v945_v1  ;;  %v288_v27 = vpack.c.bf16 %v200_v20, %v198_v19  ;;  %v223_v19 = vld [vmem:[%s1000_s26 + $0x168] sm:$0xff]  ;;  %v225_v20 = vld [vmem:[%s1000_s26 + $0x178] sm:$0xff] }
  0x3d   : > { %v301_v25 = vpack.c.bf16 %v225_v20, %v223_v19 }
  0x3f   : > { %492 = vmatpush1.bf16.msra.mxu0 %v935_v21  ;;  %910 = vmatpush1.bf16.msra.mxu1 %v935_v21  ;;  %v250_v21 = vld [vmem:[%s1000_s26 + $0x240] sm:$0xff] }
  0x40   : > { %493 = vmatprep.subr.bf16.mxu0 %v945_v1  ;;  %895 = vmatprep.subr.bf16.mxu1 %v945_v1  ;;  %v247_v1 = vld [vmem:[%s1000_s26 + $0x228] sm:$0xff] }
  0x41   : > { %v313_v6 = vpack.c.bf16 %v249_v2, %v247_v1  ;;  %v297_v1 = vpack.c.bf16 %v217_v60, %v215_v59  ;;  %v323_v2 = vpack.c.bf16 %v269_v62, %v267_v61 }
  0x43   : > { %494 = vmatpush1.bf16.msra.mxu0 %v936_v22  ;;  %911 = vmatpush1.bf16.msra.mxu1 %v936_v22  ;;  %v252_v22 = vld [vmem:[%s1000_s26 + $0x250] sm:$0xff] }
  0x44   : > { %v314_v28 = vpack.c.bf16 %v252_v22, %v250_v21  ;;  %v275_v21 = vld [vmem:[%s1000_s26 + $0x308] sm:$0xff]  ;;  %v277_v22 = vld [vmem:[%s1000_s26 + $0x318] sm:$0xff] }
  0x45   : > { %v327_v26 = vpack.c.bf16 %v277_v22, %v275_v21 }
  0x46   : > { %496 = vmatmul.mubr.bf16.vlgmr.msra.gmra.mrb[0].mxu0 %v278_v31  ;;  %600 = vmatmul.mubr.bf16.vlgmr.msra.gmra.mrb[0].mxu1 %v304_v32  ;;  %v202_v31 = vld [vmem:[%s1000_s26 + $0xc0] sm:$0xff]  ;;  %v204_v32 = vld [vmem:[%s1000_s26 + $0xd0] sm:$0xff] }
  0x47   : > { %503 = vmatprep.mubr.bf16.mxu0 %v281_v33  ;;  %607 = vmatprep.mubr.bf16.mxu1 %v307_v34  ;;  %v254_v33 = vld [vmem:[%s1000_s26 + $0x260] sm:$0xff]  ;;  %v256_v34 = vld [vmem:[%s1000_s26 + $0x270] sm:$0xff]  ;;  %v290_v39 = vpack.c.bf16 %v204_v32, %v202_v31  ;;  %v227_v31 = vld [vmem:[%s1000_s26 + $0x188] sm:$0xff] }
  0x48   : > { %v316_v40 = vpack.c.bf16 %v256_v34, %v254_v33  ;;  %v229_v32 = vld [vmem:[%s1000_s26 + $0x198] sm:$0xff] }
  0x49   : > { %v303_v35 = vpack.c.bf16 %v229_v32, %v227_v31 }
  0x4e   : > { %504 = vmatmul.mubr.bf16.gmra.mrb[4].mxu0 %v280_v43  ;;  %608 = vmatmul.mubr.bf16.gmra.mrb[4].mxu1 %v306_v44  ;;  %v206_v43 = vld [vmem:[%s1000_s26 + $0xe0] sm:$0xff]  ;;  %v208_v44 = vld [vmem:[%s1000_s26 + $0xf0] sm:$0xff] }
  0x4f   : > { %511 = vmatprep.mubr.bf16.mxu0 %v283_v45  ;;  %615 = vmatprep.mubr.bf16.mxu1 %v309_v46  ;;  %v258_v45 = vld [vmem:[%s1000_s26 + $0x280] sm:$0xff]  ;;  %v260_v46 = vld [vmem:[%s1000_s26 + $0x290] sm:$0xff]  ;;  %v292_v51 = vpack.c.bf16 %v208_v44, %v206_v43 }
  0x50   : > { %v318_v52 = vpack.c.bf16 %v260_v46, %v258_v45 }
  0x56   : > { %512 = vmatmul.mubr.bf16.gmra.mrb[8].mxu0 %v282_v55  ;;  %616 = vmatmul.mubr.bf16.gmra.mrb[8].mxu1 %v308_v56  ;;  %v210_v55 = vld [vmem:[%s1000_s26 + $0x100] sm:$0xff]  ;;  %v212_v56 = vld [vmem:[%s1000_s26 + $0x110] sm:$0xff] }
  0x57   : > { %519 = vmatprep.mubr.bf16.mxu0 %v285_v57  ;;  %623 = vmatprep.mubr.bf16.mxu1 %v311_v58  ;;  %v262_v57 = vld [vmem:[%s1000_s26 + $0x2a0] sm:$0xff]  ;;  %v264_v58 = vld [vmem:[%s1000_s26 + $0x2b0] sm:$0xff]  ;;  %v294_v63 = vpack.c.bf16 %v212_v56, %v210_v55 }
  0x58   : > { %v320_v0 = vpack.c.bf16 %v264_v58, %v262_v57 }
  0x5e   : > { %520 = vmatmul.mubr.bf16.gmra.mrb[12].mxu0 %v284_v3  ;;  %624 = vmatmul.mubr.bf16.gmra.mrb[12].mxu1 %v310_v4  ;;  %v214_v3 = vld [vmem:[%s1000_s26 + $0x120] sm:$0xff]  ;;  %v216_v4 = vld [vmem:[%s1000_s26 + $0x130] sm:$0xff] }
  0x5f   : > { %527 = vmatprep.mubr.bf16.mxu0 %v287_v5  ;;  %631 = vmatprep.mubr.bf16.mxu1 %v313_v6  ;;  %v266_v5 = vld [vmem:[%s1000_s26 + $0x2c0] sm:$0xff]  ;;  %v268_v6 = vld [vmem:[%s1000_s26 + $0x2d0] sm:$0xff]  ;;  %v296_v11 = vpack.c.bf16 %v216_v4, %v214_v3 }
  0x60   : > { %v322_v12 = vpack.c.bf16 %v268_v6, %v266_v5 }
  0x66   : > { %528 = vmatmul.mubr.bf16.gmra.mrb[16].mxu0 %v286_v15  ;;  %632 = vmatmul.mubr.bf16.gmra.mrb[16].mxu1 %v312_v16  ;;  %v218_v15 = vld [vmem:[%s1000_s26 + $0x140] sm:$0xff]  ;;  %v220_v16 = vld [vmem:[%s1000_s26 + $0x150] sm:$0xff] }
  0x67   : > { %535 = vmatprep.mubr.bf16.mxu0 %v289_v17  ;;  %639 = vmatprep.mubr.bf16.mxu1 %v315_v18  ;;  %v270_v17 = vld [vmem:[%s1000_s26 + $0x2e0] sm:$0xff]  ;;  %v272_v18 = vld [vmem:[%s1000_s26 + $0x2f0] sm:$0xff]  ;;  %v298_v23 = vpack.c.bf16 %v220_v16, %v218_v15 }
  0x68   : > { %v324_v24 = vpack.c.bf16 %v272_v18, %v270_v17 }
  0x6e   : > { %536 = vmatmul.mubr.bf16.gmra.mrb[20].mxu0 %v288_v27  ;;  %640 = vmatmul.mubr.bf16.gmra.mrb[20].mxu1 %v314_v28  ;;  %v222_v27 = vld [vmem:[%s1000_s26 + $0x160] sm:$0xff]  ;;  %v224_v28 = vld [vmem:[%s1000_s26 + $0x170] sm:$0xff] }
  0x6f   : > { %543 = vmatprep.mubr.bf16.mxu0 %v291_v29  ;;  %647 = vmatprep.mubr.bf16.mxu1 %v317_v30  ;;  %v274_v29 = vld [vmem:[%s1000_s26 + $0x300] sm:$0xff]  ;;  %v276_v30 = vld [vmem:[%s1000_s26 + $0x310] sm:$0xff]  ;;  %v300_v33 = vpack.c.bf16 %v224_v28, %v222_v27  ;;  %s1173_s26 = scalar_lea.vmem %s1279_s3, %s859_s29 }
  0x70   : > { %v326_v34 = vpack.c.bf16 %v276_v30, %v274_v29 }
  0x76   : > { %544 = vmatmul.mubr.bf16.gmra.mrb[24].mxu0 %v290_v39  ;;  %648 = vmatmul.mubr.bf16.gmra.mrb[24].mxu1 %v316_v40  ;;  %v1165_v39 = vld [vmem:[%s1278_s2] ss:$0 sm:$0xff] }
  0x77   : > { %551 = vmatprep.mubr.bf16.mxu0 %v293_v41  ;;  %655 = vmatprep.mubr.bf16.mxu1 %v319_v42 }
  0x7e   : > { %552 = vmatmul.mubr.bf16.gmra.mrb[28].mxu0 %v292_v51  ;;  %656 = vmatmul.mubr.bf16.gmra.mrb[28].mxu1 %v318_v52 }
  0x7f   : > { %559 = vmatprep.mubr.bf16.mxu0 %v295_v53  ;;  %663 = vmatprep.mubr.bf16.mxu1 %v321_v54 }
  0x86   : > { %560 = vmatmul.mubr.bf16.gmra.mrb[32].mxu0 %v294_v63  ;;  %664 = vmatmul.mubr.bf16.gmra.mrb[32].mxu1 %v320_v0 }
  0x87   : > { %567 = vmatprep.mubr.bf16.mxu0 %v297_v1  ;;  %671 = vmatprep.mubr.bf16.mxu1 %v323_v2 }
  0x8e   : > { %568 = vmatmul.mubr.bf16.gmra.mrb[36].mxu0 %v296_v11  ;;  %672 = vmatmul.mubr.bf16.gmra.mrb[36].mxu1 %v322_v12 }
  0x8f   : > { %575 = vmatprep.mubr.bf16.mxu0 %v299_v13  ;;  %679 = vmatprep.mubr.bf16.mxu1 %v325_v14 }
  0x96   : > { %576 = vmatmul.mubr.bf16.gmra.mrb[40].mxu0 %v298_v23  ;;  %680 = vmatmul.mubr.bf16.gmra.mrb[40].mxu1 %v324_v24 }
  0x97   : > { %583 = vmatprep.mubr.bf16.mxu0 %v301_v25  ;;  %687 = vmatprep.mubr.bf16.mxu1 %v327_v26 }
  0x9e   : > { %584 = vmatmul.mubr.bf16.gmra.mrb[44].mxu0 %v300_v33  ;;  %688 = vmatmul.mubr.bf16.gmra.mrb[44].mxu1 %v326_v34 }
  0x9f   : > { %591 = vmatprep.mubr.bf16.mxu0 %v303_v35 }
  0xa6   : > { %592 = vmatmul.mubr.bf16.gmra.mrb[48].mxu0 %v302_v38 }
 0x119   : > { %v497_v40 = vpop.f32.mrb[0].mxu0  ;;  %v601_v41 = vpop.f32.mrb[0].mxu1 }
 0x11a   : > { %v498_v42 = vadd.f32 %v1165_v39, %v497_v40  ;;  %v499_v43 = vpop.f32.mrb[1].mxu0  ;;  %v602_v44 = vadd.f32 %v1165_v39, %v601_v41  ;;  %v603_v45 = vpop.f32.mrb[1].mxu1 }
 0x11b   : > { %v500_v46 = vpop.f32.mrb[2].mxu0  ;;  %v604_v47 = vpop.f32.mrb[2].mxu1 }
 0x11c   : > { %v696_v48 = vmax.f32 %v498_v42, 0.0  ;;  %v501_v49 = vadd.f32 %v1165_v39, %v500_v46  ;;  %v502_v50 = vpop.f32.mrb[3].mxu0  ;;  %v722_v51 = vmax.f32 %v602_v44, 0.0  ;;  %v605_v52 = vadd.f32 %v1165_v39, %v604_v47  ;;  %v606_v53 = vpop.f32.mrb[3].mxu1 }
 0x11e   : > { %746 = vst [vmem:[%s1173_s26] sm:$0xff] %v696_v48  ;;  %v697_v54 = vmax.f32 %v501_v49, 0.0  ;;  %772 = vst [vmem:[%s1173_s26 + $0xd0] sm:$0xff] %v722_v51  ;;  %v723_v55 = vmax.f32 %v605_v52, 0.0 }
 0x120   : > { %747 = vst [vmem:[%s1173_s26 + $0x8] sm:$0xff] %v697_v54  ;;  %773 = vst [vmem:[%s1173_s26 + $0xd8] sm:$0xff] %v723_v55 }
 0x121   : > { %v505_v56 = vpop.f32.mrb[4].mxu0  ;;  %v609_v57 = vpop.f32.mrb[4].mxu1 }
 0x122   : > { %v506_v58 = vadd.f32 %v1165_v39, %v505_v56  ;;  %v507_v59 = vpop.f32.mrb[5].mxu0  ;;  %v610_v60 = vadd.f32 %v1165_v39, %v609_v57  ;;  %v611_v61 = vpop.f32.mrb[5].mxu1 }
 0x123   : > { %v508_v62 = vpop.f32.mrb[6].mxu0  ;;  %v612_v63 = vpop.f32.mrb[6].mxu1 }
 0x124   : > { %v698_v0 = vmax.f32 %v506_v58, 0.0  ;;  %v509_v1 = vadd.f32 %v1165_v39, %v508_v62  ;;  %v510_v2 = vpop.f32.mrb[7].mxu0  ;;  %v724_v3 = vmax.f32 %v610_v60, 0.0  ;;  %v613_v4 = vadd.f32 %v1165_v39, %v612_v63  ;;  %v614_v5 = vpop.f32.mrb[7].mxu1 }
 0x126   : > { %748 = vst [vmem:[%s1173_s26 + $0x10] sm:$0xff] %v698_v0  ;;  %v699_v6 = vmax.f32 %v509_v1, 0.0  ;;  %774 = vst [vmem:[%s1173_s26 + $0xe0] sm:$0xff] %v724_v3  ;;  %v725_v7 = vmax.f32 %v613_v4, 0.0 }
 0x128   : > { %749 = vst [vmem:[%s1173_s26 + $0x18] sm:$0xff] %v699_v6  ;;  %775 = vst [vmem:[%s1173_s26 + $0xe8] sm:$0xff] %v725_v7 }
 0x129   : > { %v513_v8 = vpop.f32.mrb[8].mxu0  ;;  %v617_v9 = vpop.f32.mrb[8].mxu1 }
 0x12a   : > { %v514_v10 = vadd.f32 %v1165_v39, %v513_v8  ;;  %v515_v11 = vpop.f32.mrb[9].mxu0  ;;  %v618_v12 = vadd.f32 %v1165_v39, %v617_v9  ;;  %v619_v13 = vpop.f32.mrb[9].mxu1 }
 0x12b   : > { %v516_v14 = vpop.f32.mrb[10].mxu0  ;;  %v620_v15 = vpop.f32.mrb[10].mxu1 }
 0x12c   : > { %v700_v16 = vmax.f32 %v514_v10, 0.0  ;;  %v517_v17 = vadd.f32 %v1165_v39, %v516_v14  ;;  %v518_v18 = vpop.f32.mrb[11].mxu0  ;;  %v726_v19 = vmax.f32 %v618_v12, 0.0  ;;  %v621_v20 = vadd.f32 %v1165_v39, %v620_v15  ;;  %v622_v21 = vpop.f32.mrb[11].mxu1 }
 0x12e   : > { %750 = vst [vmem:[%s1173_s26 + $0x20] sm:$0xff] %v700_v16  ;;  %v701_v22 = vmax.f32 %v517_v17, 0.0  ;;  %776 = vst [vmem:[%s1173_s26 + $0xf0] sm:$0xff] %v726_v19  ;;  %v727_v23 = vmax.f32 %v621_v20, 0.0 }
 0x130   : > { %751 = vst [vmem:[%s1173_s26 + $0x28] sm:$0xff] %v701_v22  ;;  %777 = vst [vmem:[%s1173_s26 + $0xf8] sm:$0xff] %v727_v23 }
 0x131   : > { %v521_v24 = vpop.f32.mrb[12].mxu0  ;;  %v625_v25 = vpop.f32.mrb[12].mxu1 }
 0x132   : > { %v522_v26 = vadd.f32 %v1165_v39, %v521_v24  ;;  %v523_v27 = vpop.f32.mrb[13].mxu0  ;;  %v626_v28 = vadd.f32 %v1165_v39, %v625_v25  ;;  %v627_v29 = vpop.f32.mrb[13].mxu1 }
 0x133   : > { %v524_v30 = vpop.f32.mrb[14].mxu0  ;;  %v628_v31 = vpop.f32.mrb[14].mxu1 }
 0x134   : > { %v702_v32 = vmax.f32 %v522_v26, 0.0  ;;  %v525_v33 = vadd.f32 %v1165_v39, %v524_v30  ;;  %v526_v34 = vpop.f32.mrb[15].mxu0  ;;  %v728_v35 = vmax.f32 %v626_v28, 0.0  ;;  %v629_v36 = vadd.f32 %v1165_v39, %v628_v31  ;;  %v630_v37 = vpop.f32.mrb[15].mxu1 }
 0x136   : > { %752 = vst [vmem:[%s1173_s26 + $0x30] sm:$0xff] %v702_v32  ;;  %v703_v38 = vmax.f32 %v525_v33, 0.0  ;;  %778 = vst [vmem:[%s1173_s26 + $0x100] sm:$0xff] %v728_v35  ;;  %v729_v40 = vmax.f32 %v629_v36, 0.0 }
 0x138   : > { %753 = vst [vmem:[%s1173_s26 + $0x38] sm:$0xff] %v703_v38  ;;  %779 = vst [vmem:[%s1173_s26 + $0x108] sm:$0xff] %v729_v40 }
 0x139   : > { %v529_v41 = vpop.f32.mrb[16].mxu0  ;;  %v633_v42 = vpop.f32.mrb[16].mxu1 }
 0x13a   : > { %v530_v43 = vadd.f32 %v1165_v39, %v529_v41  ;;  %v531_v44 = vpop.f32.mrb[17].mxu0  ;;  %v634_v45 = vadd.f32 %v1165_v39, %v633_v42  ;;  %v635_v46 = vpop.f32.mrb[17].mxu1 }
 0x13b   : > { %v532_v47 = vpop.f32.mrb[18].mxu0  ;;  %v636_v48 = vpop.f32.mrb[18].mxu1 }
 0x13c   : > { %v704_v49 = vmax.f32 %v530_v43, 0.0  ;;  %v533_v50 = vadd.f32 %v1165_v39, %v532_v47  ;;  %v534_v51 = vpop.f32.mrb[19].mxu0  ;;  %v730_v52 = vmax.f32 %v634_v45, 0.0  ;;  %v637_v53 = vadd.f32 %v1165_v39, %v636_v48  ;;  %v638_v54 = vpop.f32.mrb[19].mxu1 }
 0x13e   : > { %754 = vst [vmem:[%s1173_s26 + $0x40] sm:$0xff] %v704_v49  ;;  %v705_v55 = vmax.f32 %v533_v50, 0.0  ;;  %780 = vst [vmem:[%s1173_s26 + $0x110] sm:$0xff] %v730_v52  ;;  %v731_v56 = vmax.f32 %v637_v53, 0.0 }
 0x140   : > { %755 = vst [vmem:[%s1173_s26 + $0x48] sm:$0xff] %v705_v55  ;;  %781 = vst [vmem:[%s1173_s26 + $0x118] sm:$0xff] %v731_v56 }
 0x141   : > { %v537_v57 = vpop.f32.mrb[20].mxu0  ;;  %v641_v58 = vpop.f32.mrb[20].mxu1 }
 0x142   : > { %v538_v59 = vadd.f32 %v1165_v39, %v537_v57  ;;  %v539_v60 = vpop.f32.mrb[21].mxu0  ;;  %v642_v61 = vadd.f32 %v1165_v39, %v641_v58  ;;  %v643_v62 = vpop.f32.mrb[21].mxu1 }
 0x143   : > { %v540_v63 = vpop.f32.mrb[22].mxu0  ;;  %v644_v0 = vpop.f32.mrb[22].mxu1 }
 0x144   : > { %v706_v1 = vmax.f32 %v538_v59, 0.0  ;;  %v541_v2 = vadd.f32 %v1165_v39, %v540_v63  ;;  %v542_v3 = vpop.f32.mrb[23].mxu0  ;;  %v732_v4 = vmax.f32 %v642_v61, 0.0  ;;  %v645_v5 = vadd.f32 %v1165_v39, %v644_v0  ;;  %v646_v6 = vpop.f32.mrb[23].mxu1 }
 0x146   : > { %756 = vst [vmem:[%s1173_s26 + $0x50] sm:$0xff] %v706_v1  ;;  %v707_v7 = vmax.f32 %v541_v2, 0.0  ;;  %782 = vst [vmem:[%s1173_s26 + $0x120] sm:$0xff] %v732_v4  ;;  %v733_v8 = vmax.f32 %v645_v5, 0.0 }
 0x148   : > { %757 = vst [vmem:[%s1173_s26 + $0x58] sm:$0xff] %v707_v7  ;;  %783 = vst [vmem:[%s1173_s26 + $0x128] sm:$0xff] %v733_v8 }
 0x149   : > { %v545_v9 = vpop.f32.mrb[24].mxu0  ;;  %v649_v10 = vpop.f32.mrb[24].mxu1 }
 0x14a   : > { %v546_v11 = vadd.f32 %v1165_v39, %v545_v9  ;;  %v547_v12 = vpop.f32.mrb[25].mxu0  ;;  %v650_v13 = vadd.f32 %v1165_v39, %v649_v10  ;;  %v651_v14 = vpop.f32.mrb[25].mxu1 }
 0x14b   : > { %v548_v15 = vpop.f32.mrb[26].mxu0  ;;  %v652_v16 = vpop.f32.mrb[26].mxu1 }
 0x14c   : > { %v708_v17 = vmax.f32 %v546_v11, 0.0  ;;  %v549_v18 = vadd.f32 %v1165_v39, %v548_v15  ;;  %v550_v19 = vpop.f32.mrb[27].mxu0  ;;  %v734_v20 = vmax.f32 %v650_v13, 0.0  ;;  %v653_v21 = vadd.f32 %v1165_v39, %v652_v16  ;;  %v654_v22 = vpop.f32.mrb[27].mxu1 }
 0x14e   : > { %758 = vst [vmem:[%s1173_s26 + $0x60] sm:$0xff] %v708_v17  ;;  %v709_v23 = vmax.f32 %v549_v18, 0.0  ;;  %784 = vst [vmem:[%s1173_s26 + $0x130] sm:$0xff] %v734_v20  ;;  %v735_v24 = vmax.f32 %v653_v21, 0.0 }
 0x150   : > { %759 = vst [vmem:[%s1173_s26 + $0x68] sm:$0xff] %v709_v23  ;;  %785 = vst [vmem:[%s1173_s26 + $0x138] sm:$0xff] %v735_v24 }
 0x151   : > { %v553_v25 = vpop.f32.mrb[28].mxu0  ;;  %v657_v26 = vpop.f32.mrb[28].mxu1 }
 0x152   : > { %v554_v27 = vadd.f32 %v1165_v39, %v553_v25  ;;  %v555_v28 = vpop.f32.mrb[29].mxu0  ;;  %v658_v29 = vadd.f32 %v1165_v39, %v657_v26  ;;  %v659_v30 = vpop.f32.mrb[29].mxu1 }
 0x153   : > { %v556_v31 = vpop.f32.mrb[30].mxu0  ;;  %v660_v32 = vpop.f32.mrb[30].mxu1 }
 0x154   : > { %v710_v33 = vmax.f32 %v554_v27, 0.0  ;;  %v557_v34 = vadd.f32 %v1165_v39, %v556_v31  ;;  %v558_v35 = vpop.f32.mrb[31].mxu0  ;;  %v736_v36 = vmax.f32 %v658_v29, 0.0  ;;  %v661_v37 = vadd.f32 %v1165_v39, %v660_v32  ;;  %v662_v38 = vpop.f32.mrb[31].mxu1 }
 0x156   : > { %760 = vst [vmem:[%s1173_s26 + $0x70] sm:$0xff] %v710_v33  ;;  %v711_v40 = vmax.f32 %v557_v34, 0.0  ;;  %786 = vst [vmem:[%s1173_s26 + $0x140] sm:$0xff] %v736_v36  ;;  %v737_v41 = vmax.f32 %v661_v37, 0.0 }
 0x158   : > { %761 = vst [vmem:[%s1173_s26 + $0x78] sm:$0xff] %v711_v40  ;;  %787 = vst [vmem:[%s1173_s26 + $0x148] sm:$0xff] %v737_v41 }
 0x159   : > { %v561_v42 = vpop.f32.mrb[32].mxu0  ;;  %v665_v43 = vpop.f32.mrb[32].mxu1 }
 0x15a   : > { %v562_v44 = vadd.f32 %v1165_v39, %v561_v42  ;;  %v563_v45 = vpop.f32.mrb[33].mxu0  ;;  %v666_v46 = vadd.f32 %v1165_v39, %v665_v43  ;;  %v667_v47 = vpop.f32.mrb[33].mxu1 }
 0x15b   : > { %v564_v48 = vpop.f32.mrb[34].mxu0  ;;  %v668_v49 = vpop.f32.mrb[34].mxu1 }
 0x15c   : > { %v712_v50 = vmax.f32 %v562_v44, 0.0  ;;  %v565_v51 = vadd.f32 %v1165_v39, %v564_v48  ;;  %v566_v52 = vpop.f32.mrb[35].mxu0  ;;  %v738_v53 = vmax.f32 %v666_v46, 0.0  ;;  %v669_v54 = vadd.f32 %v1165_v39, %v668_v49  ;;  %v670_v55 = vpop.f32.mrb[35].mxu1 }
 0x15e   : > { %762 = vst [vmem:[%s1173_s26 + $0x80] sm:$0xff] %v712_v50  ;;  %v713_v56 = vmax.f32 %v565_v51, 0.0  ;;  %788 = vst [vmem:[%s1173_s26 + $0x150] sm:$0xff] %v738_v53  ;;  %v739_v57 = vmax.f32 %v669_v54, 0.0 }
 0x160   : > { %763 = vst [vmem:[%s1173_s26 + $0x88] sm:$0xff] %v713_v56  ;;  %789 = vst [vmem:[%s1173_s26 + $0x158] sm:$0xff] %v739_v57 }
 0x161   : > { %v569_v58 = vpop.f32.mrb[36].mxu0  ;;  %v673_v59 = vpop.f32.mrb[36].mxu1 }
 0x162   : > { %v570_v60 = vadd.f32 %v1165_v39, %v569_v58  ;;  %v571_v61 = vpop.f32.mrb[37].mxu0  ;;  %v674_v62 = vadd.f32 %v1165_v39, %v673_v59  ;;  %v675_v63 = vpop.f32.mrb[37].mxu1 }
 0x163   : > { %v572_v0 = vpop.f32.mrb[38].mxu0  ;;  %v676_v1 = vpop.f32.mrb[38].mxu1 }
 0x164   : > { %v714_v2 = vmax.f32 %v570_v60, 0.0  ;;  %v573_v3 = vadd.f32 %v1165_v39, %v572_v0  ;;  %v574_v4 = vpop.f32.mrb[39].mxu0  ;;  %v740_v5 = vmax.f32 %v674_v62, 0.0  ;;  %v677_v6 = vadd.f32 %v1165_v39, %v676_v1  ;;  %v678_v7 = vpop.f32.mrb[39].mxu1 }
 0x166   : > { %764 = vst [vmem:[%s1173_s26 + $0x90] sm:$0xff] %v714_v2  ;;  %v715_v8 = vmax.f32 %v573_v3, 0.0  ;;  %790 = vst [vmem:[%s1173_s26 + $0x160] sm:$0xff] %v740_v5  ;;  %v741_v9 = vmax.f32 %v677_v6, 0.0 }
 0x168   : > { %765 = vst [vmem:[%s1173_s26 + $0x98] sm:$0xff] %v715_v8  ;;  %791 = vst [vmem:[%s1173_s26 + $0x168] sm:$0xff] %v741_v9 }
 0x169   : > { %v577_v10 = vpop.f32.mrb[40].mxu0  ;;  %v681_v11 = vpop.f32.mrb[40].mxu1 }
 0x16a   : > { %v578_v12 = vadd.f32 %v1165_v39, %v577_v10  ;;  %v579_v13 = vpop.f32.mrb[41].mxu0  ;;  %v682_v14 = vadd.f32 %v1165_v39, %v681_v11  ;;  %v683_v15 = vpop.f32.mrb[41].mxu1 }
 0x16b   : > { %v580_v16 = vpop.f32.mrb[42].mxu0  ;;  %v684_v17 = vpop.f32.mrb[42].mxu1 }
 0x16c   : > { %v716_v18 = vmax.f32 %v578_v12, 0.0  ;;  %v581_v19 = vadd.f32 %v1165_v39, %v580_v16  ;;  %v582_v20 = vpop.f32.mrb[43].mxu0  ;;  %v742_v21 = vmax.f32 %v682_v14, 0.0  ;;  %v685_v22 = vadd.f32 %v1165_v39, %v684_v17  ;;  %v686_v23 = vpop.f32.mrb[43].mxu1 }
 0x16e   : > { %766 = vst [vmem:[%s1173_s26 + $0xa0] sm:$0xff] %v716_v18  ;;  %v717_v24 = vmax.f32 %v581_v19, 0.0  ;;  %792 = vst [vmem:[%s1173_s26 + $0x170] sm:$0xff] %v742_v21  ;;  %v743_v25 = vmax.f32 %v685_v22, 0.0 }
 0x170   : > { %767 = vst [vmem:[%s1173_s26 + $0xa8] sm:$0xff] %v717_v24  ;;  %793 = vst [vmem:[%s1173_s26 + $0x178] sm:$0xff] %v743_v25 }
 0x171   : > { %v585_v26 = vpop.f32.mrb[44].mxu0  ;;  %v689_v27 = vpop.f32.mrb[44].mxu1 }
 0x172   : > { %v586_v28 = vadd.f32 %v1165_v39, %v585_v26  ;;  %v587_v29 = vpop.f32.mrb[45].mxu0  ;;  %v690_v30 = vadd.f32 %v1165_v39, %v689_v27  ;;  %v691_v31 = vpop.f32.mrb[45].mxu1 }
 0x173   : > { %v588_v32 = vpop.f32.mrb[46].mxu0  ;;  %v692_v33 = vpop.f32.mrb[46].mxu1 }
 0x174   : > { %v718_v34 = vmax.f32 %v586_v28, 0.0  ;;  %v589_v35 = vadd.f32 %v1165_v39, %v588_v32  ;;  %v590_v36 = vpop.f32.mrb[47].mxu0  ;;  %v744_v37 = vmax.f32 %v690_v30, 0.0  ;;  %v693_v38 = vadd.f32 %v1165_v39, %v692_v33  ;;  %v694_v40 = vpop.f32.mrb[47].mxu1 }
 0x176   : > { %768 = vst [vmem:[%s1173_s26 + $0xb0] sm:$0xff] %v718_v34  ;;  %v719_v41 = vmax.f32 %v589_v35, 0.0  ;;  %794 = vst [vmem:[%s1173_s26 + $0x180] sm:$0xff] %v744_v37  ;;  %v745_v42 = vmax.f32 %v693_v38, 0.0 }
 0x178   : > { %769 = vst [vmem:[%s1173_s26 + $0xb8] sm:$0xff] %v719_v41  ;;  %795 = vst [vmem:[%s1173_s26 + $0x188] sm:$0xff] %v745_v42 }
 0x179   : > { %v593_v43 = vpop.f32.mrb[48].mxu0 }
 0x17a   : > { %v594_v44 = vadd.f32 %v1165_v39, %v593_v43  ;;  %v595_v45 = vpop.f32.mrb[49].mxu0 }
 0x17b   : > { %v596_v46 = vpop.f32.mrb[50].mxu0 }
 0x17c   : > { %v720_v47 = vmax.f32 %v594_v44, 0.0  ;;  %v597_v48 = vadd.f32 %v1165_v39, %v596_v46  ;;  %v598_v49 = vpop.f32.mrb[51].mxu0 }
 0x17e   : > { %770 = vst [vmem:[%s1173_s26 + $0xc0] sm:$0xff] %v720_v47  ;;  %v721_v50 = vmax.f32 %v597_v48, 0.0 }
 0x180   : > { %771 = vst [vmem:[%s1173_s26 + $0xc8] sm:$0xff] %v721_v50 }
 0x181 PF: > { %s13_s12 = sadd.s32 1, %s943_s12  }
 0x182   : > { %p10_p4 = scmp.ge.s32.totalorder %s13_s12, 4  }
 0x184   :  { %12 = sbr.rel (!%p10_p4) target bundleno = 1 (0x1), region = 62 }

// kernel: policy_conv_net_forward.5
= control target key start
LH: loop header
LB: loop body
LE: loop exit
PB: predicated region body
PF: predicated region fallthrough
CT: control target
= control target key end

     0   :  { %s1378_s1 = inlined_call_operand.vmem [shape: bf16[512,128], index: 1, kind: input, shape index: {}]   ;;  %s1379_s0 = inlined_call_operand.vmem [shape: f32[162,512], index: 0, kind: input, shape index: {}]   ;;  %s1380_s2 = inlined_call_operand.vmem [shape: f32[1,128], index: 2, kind: input, shape index: {}]   ;;  %s1381_s3 = inlined_call_operand.vmem [shape: f32[162,128], index: 3, kind: output, shape index: {}]  }
   0x1   :  { %v889_v0 = vld [vmem:[%s1378_s1 + $0x40] sm:$0xff]   ;;  %v893_v4 = vld [vmem:[%s1378_s1 + $0x48] sm:$0xff]   ;;  %v897_v8 = vld [vmem:[%s1378_s1 + $0x50] sm:$0xff]  }
   0x2   :  { %v890_v1 = vld [vmem:[%s1378_s1 + $0xc0] sm:$0xff]   ;;  %725 = vmatprep.subr.bf16.mxu0 %v889_v0  ;;  %v894_v5 = vld [vmem:[%s1378_s1 + $0xc8] sm:$0xff]   ;;  %v898_v9 = vld [vmem:[%s1378_s1 + $0xd0] sm:$0xff]  }
   0x3   :  { %v891_v2 = vld [vmem:[%s1378_s1] sm:$0xff]   ;;  %807 = vmatprep.subr.bf16.mxu1 %v890_v1  ;;  %v895_v6 = vld [vmem:[%s1378_s1 + $0x8] sm:$0xff]   ;;  %v899_v10 = vld [vmem:[%s1378_s1 + $0x10] sm:$0xff]  }
   0x4   :  { %v892_v3 = vld [vmem:[%s1378_s1 + $0x80] sm:$0xff]   ;;  %726 = vmatpush3.bf16.msra.mxu0 %v891_v2  ;;  %v896_v7 = vld [vmem:[%s1378_s1 + $0x88] sm:$0xff]   ;;  %v900_v11 = vld [vmem:[%s1378_s1 + $0x90] sm:$0xff]  }
   0x5   :  { %808 = vmatpush3.bf16.msra.mxu1 %v892_v3  ;;  %727 = vmatprep.subr.bf16.mxu0 %v893_v4  ;;  %v901_v12 = vld [vmem:[%s1378_s1 + $0x58] sm:$0xff]   ;;  %v905_v16 = vld [vmem:[%s1378_s1 + $0x60] sm:$0xff]   ;;  %v909_v20 = vld [vmem:[%s1378_s1 + $0x68] sm:$0xff]  }
   0x6   :  { %809 = vmatprep.subr.bf16.mxu1 %v894_v5  ;;  %v902_v13 = vld [vmem:[%s1378_s1 + $0xd8] sm:$0xff]   ;;  %v906_v17 = vld [vmem:[%s1378_s1 + $0xe0] sm:$0xff]   ;;  %v910_v21 = vld [vmem:[%s1378_s1 + $0xe8] sm:$0xff]  }
   0x7   :  { %v903_v14 = vld [vmem:[%s1378_s1 + $0x18] sm:$0xff]   ;;  %v907_v18 = vld [vmem:[%s1378_s1 + $0x20] sm:$0xff]   ;;  %v911_v22 = vld [vmem:[%s1378_s1 + $0x28] sm:$0xff]  }
   0x8   :  { %728 = vmatpush3.bf16.msra.mxu0 %v895_v6  ;;  %v904_v15 = vld [vmem:[%s1378_s1 + $0x98] sm:$0xff]   ;;  %v908_v19 = vld [vmem:[%s1378_s1 + $0xa0] sm:$0xff]   ;;  %v912_v23 = vld [vmem:[%s1378_s1 + $0xa8] sm:$0xff]  }
   0x9   :  { %810 = vmatpush3.bf16.msra.mxu1 %v896_v7  ;;  %729 = vmatprep.subr.bf16.mxu0 %v897_v8  ;;  %v913_v24 = vld [vmem:[%s1378_s1 + $0x70] sm:$0xff]   ;;  %v917_v28 = vld [vmem:[%s1378_s1 + $0x78] sm:$0xff]   ;;  %v16_v32 = vld [vmem:[%s1379_s0 + $0x8] sm:$0xff] }
   0xa   :  { %811 = vmatprep.subr.bf16.mxu1 %v898_v9  ;;  %v914_v25 = vld [vmem:[%s1378_s1 + $0xf0] sm:$0xff]   ;;  %v918_v29 = vld [vmem:[%s1378_s1 + $0xf8] sm:$0xff]   ;;  %v20_v33 = vld [vmem:[%s1379_s0 + $0x28] sm:$0xff] }
   0xb   :  { %v915_v26 = vld [vmem:[%s1378_s1 + $0x30] sm:$0xff]   ;;  %v919_v30 = vld [vmem:[%s1378_s1 + $0x38] sm:$0xff]   ;;  %v100_v35 = vpack.c.bf16 %v20_v33, %v16_v32  ;;  %v15_v37 = vld [vmem:[%s1379_s0] sm:$0xff] }
   0xc   :  { %730 = vmatpush3.bf16.msra.mxu0 %v899_v10  ;;  %v916_v27 = vld [vmem:[%s1378_s1 + $0xb0] sm:$0xff]   ;;  %v920_v31 = vld [vmem:[%s1378_s1 + $0xb8] sm:$0xff]   ;;  %v19_v38 = vld [vmem:[%s1379_s0 + $0x20] sm:$0xff] }
   0xd   :  { %812 = vmatpush3.bf16.msra.mxu1 %v900_v11  ;;  %731 = vmatprep.subr.bf16.mxu0 %v901_v12  ;;  %v18_v34 = vld [vmem:[%s1379_s0 + $0x18] sm:$0xff]  ;;  %v99_v40 = vpack.c.bf16 %v19_v38, %v15_v37  ;;  %v17_v41 = vld [vmem:[%s1379_s0 + $0x10] sm:$0xff]  ;;  %v24_v43 = vld [vmem:[%s1379_s0 + $0x48] sm:$0xff] }
   0xe   :  { %813 = vmatprep.subr.bf16.mxu1 %v902_v13  ;;  %v22_v36 = vld [vmem:[%s1379_s0 + $0x38] sm:$0xff]  ;;  %v21_v42 = vld [vmem:[%s1379_s0 + $0x30] sm:$0xff]  ;;  %438 = vmatprep.mubr.bf16.mxu0 %v100_v35  ;;  %v28_v45 = vld [vmem:[%s1379_s0 + $0x68] sm:$0xff] }
   0xf   :  { %v102_v39 = vpack.c.bf16 %v22_v36, %v18_v34  ;;  %v101_v44 = vpack.c.bf16 %v21_v42, %v17_v41  ;;  %v26_v46 = vld [vmem:[%s1379_s0 + $0x58] sm:$0xff]  ;;  %v104_v48 = vpack.c.bf16 %v28_v45, %v24_v43  ;;  %v23_v50 = vld [vmem:[%s1379_s0 + $0x40] sm:$0xff]  ;;  %v25_v52 = vld [vmem:[%s1379_s0 + $0x50] sm:$0xff] }
  0x10   :  { %732 = vmatpush3.bf16.msra.mxu0 %v903_v14  ;;  %v30_v47 = vld [vmem:[%s1379_s0 + $0x78] sm:$0xff]  ;;  %v27_v51 = vld [vmem:[%s1379_s0 + $0x60] sm:$0xff]  ;;  %v29_v53 = vld [vmem:[%s1379_s0 + $0x70] sm:$0xff] }
  0x11   :  { %814 = vmatpush3.bf16.msra.mxu1 %v904_v15  ;;  %733 = vmatprep.subr.bf16.mxu0 %v905_v16  ;;  %v106_v49 = vpack.c.bf16 %v30_v47, %v26_v46  ;;  %v32_v54 = vld [vmem:[%s1379_s0 + $0x88] sm:$0xff]  ;;  %v34_v56 = vld [vmem:[%s1379_s0 + $0x98] sm:$0xff]  ;;  %v103_v58 = vpack.c.bf16 %v27_v51, %v23_v50  ;;  %v105_v59 = vpack.c.bf16 %v29_v53, %v25_v52  ;;  %v31_v62 = vld [vmem:[%s1379_s0 + $0x80] sm:$0xff] }
  0x12   :  { %815 = vmatprep.subr.bf16.mxu1 %v906_v17  ;;  %558 = vmatprep.mubr.bf16.mxu1 %v102_v39  ;;  %v36_v55 = vld [vmem:[%s1379_s0 + $0xa8] sm:$0xff]  ;;  %v38_v57 = vld [vmem:[%s1379_s0 + $0xb8] sm:$0xff]  ;;  %v35_v63 = vld [vmem:[%s1379_s0 + $0xa0] sm:$0xff] }
  0x13   :  { %v108_v60 = vpack.c.bf16 %v36_v55, %v32_v54  ;;  %v110_v61 = vpack.c.bf16 %v38_v57, %v34_v56  ;;  %v33_v0 = vld [vmem:[%s1379_s0 + $0x90] sm:$0xff]  ;;  %v40_v2 = vld [vmem:[%s1379_s0 + $0xc8] sm:$0xff]  ;;  %v42_v4 = vld [vmem:[%s1379_s0 + $0xd8] sm:$0xff]  ;;  %v107_v6 = vpack.c.bf16 %v35_v63, %v31_v62 }
  0x14   :  { %734 = vmatpush3.bf16.msra.mxu0 %v907_v18  ;;  %v37_v1 = vld [vmem:[%s1379_s0 + $0xb0] sm:$0xff]  ;;  %v44_v3 = vld [vmem:[%s1379_s0 + $0xe8] sm:$0xff]  ;;  %v46_v5 = vld [vmem:[%s1379_s0 + $0xf8] sm:$0xff] }
  0x15   :  { %816 = vmatpush3.bf16.msra.mxu1 %v908_v19  ;;  %735 = vmatprep.subr.bf16.mxu0 %v909_v20  ;;  %v109_v7 = vpack.c.bf16 %v37_v1, %v33_v0  ;;  %v112_v8 = vpack.c.bf16 %v44_v3, %v40_v2  ;;  %v114_v9 = vpack.c.bf16 %v46_v5, %v42_v4  ;;  %v39_v10 = vld [vmem:[%s1379_s0 + $0xc0] sm:$0xff]  ;;  %v41_v12 = vld [vmem:[%s1379_s0 + $0xd0] sm:$0xff]  ;;  %v48_v14 = vld [vmem:[%s1379_s0 + $0x108] sm:$0xff] }
  0x16   :  { %817 = vmatprep.subr.bf16.mxu1 %v910_v21  ;;  %v43_v11 = vld [vmem:[%s1379_s0 + $0xe0] sm:$0xff]  ;;  %v45_v13 = vld [vmem:[%s1379_s0 + $0xf0] sm:$0xff]  ;;  %v52_v15 = vld [vmem:[%s1379_s0 + $0x128] sm:$0xff] }
  0x17   :  { %v50_v16 = vld [vmem:[%s1379_s0 + $0x118] sm:$0xff]  ;;  %v111_v18 = vpack.c.bf16 %v43_v11, %v39_v10  ;;  %v113_v19 = vpack.c.bf16 %v45_v13, %v41_v12  ;;  %v116_v20 = vpack.c.bf16 %v52_v15, %v48_v14  ;;  %v55_v34 = vld [vmem:[%s1379_s0 + $0x140] sm:$0xff]  ;;  %v57_v36 = vld [vmem:[%s1379_s0 + $0x150] sm:$0xff] }
  0x18   :  { %736 = vmatpush3.bf16.msra.mxu0 %v911_v22  ;;  %v54_v17 = vld [vmem:[%s1379_s0 + $0x138] sm:$0xff]  ;;  %v47_v22 = vld [vmem:[%s1379_s0 + $0x100] sm:$0xff]  ;;  %v61_v37 = vld [vmem:[%s1379_s0 + $0x170] sm:$0xff] }
  0x19   :  { %818 = vmatpush3.bf16.msra.mxu1 %v912_v23  ;;  %737 = vmatprep.subr.bf16.mxu0 %v913_v24  ;;  %v118_v21 = vpack.c.bf16 %v54_v17, %v50_v16  ;;  %v51_v23 = vld [vmem:[%s1379_s0 + $0x120] sm:$0xff]  ;;  %v49_v24 = vld [vmem:[%s1379_s0 + $0x110] sm:$0xff]  ;;  %v64_v38 = vld [vmem:[%s1379_s0 + $0x188] sm:$0xff]  ;;  %v121_v43 = vpack.c.bf16 %v61_v37, %v57_v36 }
  0x1a   :  { %819 = vmatprep.subr.bf16.mxu1 %v914_v25  ;;  %v53_v25 = vld [vmem:[%s1379_s0 + $0x130] sm:$0xff]  ;;  %v59_v35 = vld [vmem:[%s1379_s0 + $0x160] sm:$0xff]  ;;  %v68_v39 = vld [vmem:[%s1379_s0 + $0x1a8] sm:$0xff] }
  0x1b   :  { %v70_v41 = vld [vmem:[%s1379_s0 + $0x1b8] sm:$0xff]  ;;  %v119_v42 = vpack.c.bf16 %v59_v35, %v55_v34  ;;  %v63_v46 = vld [vmem:[%s1379_s0 + $0x180] sm:$0xff]  ;;  %v72_v50 = vld [vmem:[%s1379_s0 + $0x1c8] sm:$0xff] }
  0x1c   :  { %738 = vmatpush3.bf16.msra.mxu0 %v915_v26  ;;  %v56_v26 = vld [vmem:[%s1379_s0 + $0x148] sm:$0xff]  ;;  %v67_v47 = vld [vmem:[%s1379_s0 + $0x1a0] sm:$0xff]  ;;  %v74_v52 = vld [vmem:[%s1379_s0 + $0x1d8] sm:$0xff] }
  0x1d   :  { %820 = vmatpush3.bf16.msra.mxu1 %v916_v27  ;;  %739 = vmatprep.subr.bf16.mxu0 %v917_v28  ;;  %v60_v27 = vld [vmem:[%s1379_s0 + $0x168] sm:$0xff]  ;;  %v58_v28 = vld [vmem:[%s1379_s0 + $0x158] sm:$0xff]  ;;  %v123_v54 = vpack.c.bf16 %v67_v47, %v63_v46  ;;  %v1292_v34 = vld [vmem:[%s1380_s2] ss:$0 sm:$0xff] }
  0x1e   :  { %821 = vmatprep.subr.bf16.mxu1 %v918_v29  ;;  %v62_v29 = vld [vmem:[%s1379_s0 + $0x178] sm:$0xff]  ;;  %v120_v32 = vpack.c.bf16 %v60_v27, %v56_v26  ;;  %v76_v51 = vld [vmem:[%s1379_s0 + $0x1e8] sm:$0xff] }
  0x1f   :  { %v122_v33 = vpack.c.bf16 %v62_v29, %v58_v28  ;;  %v78_v53 = vld [vmem:[%s1379_s0 + $0x1f8] sm:$0xff]  ;;  %v128_v56 = vpack.c.bf16 %v76_v51, %v72_v50  ;;  %v80_v62 = vld [vmem:[%s1379_s0 + $0x208] sm:$0xff]  ;;  %v95_v28 = vld [vmem:[%s1379_s0 + $0x280] sm:$0x3] }
  0x20   :  { %740 = vmatpush3.bf16.msra.mxu0 %v919_v30  ;;  %v115_v30 = vpack.c.bf16 %v51_v23, %v47_v22  ;;  %v130_v57 = vpack.c.bf16 %v78_v53, %v74_v52  ;;  %v84_v63 = vld [vmem:[%s1379_s0 + $0x228] sm:$0xff]  ;;  %v82_v0 = vld [vmem:[%s1379_s0 + $0x218] sm:$0xff]  ;;  %v97_v29 = vld [vmem:[%s1379_s0 + $0x290] sm:$0x3] }
  0x21   :  { %822 = vmatpush3.bf16.msra.mxu1 %v920_v31  ;;  %v117_v31 = vpack.c.bf16 %v53_v25, %v49_v24  ;;  %v86_v1 = vld [vmem:[%s1379_s0 + $0x238] sm:$0xff]  ;;  %v132_v4 = vpack.c.bf16 %v84_v63, %v80_v62  ;;  %v88_v10 = vld [vmem:[%s1379_s0 + $0x248] sm:$0xff] }
  0x22   :  { %v134_v5 = vpack.c.bf16 %v86_v1, %v82_v0  ;;  %v92_v11 = vld [vmem:[%s1379_s0 + $0x268] sm:$0xff]  ;;  %v90_v12 = vld [vmem:[%s1379_s0 + $0x258] sm:$0xff] }
  0x23   :  { %439 = vmatmul.mubr.bf16.vlgmr.msra.gmra.mrb[0].mxu0 %v99_v40  ;;  %v66_v40 = vld [vmem:[%s1379_s0 + $0x198] sm:$0xff]  ;;  %v136_v16 = vpack.c.bf16 %v92_v11, %v88_v10  ;;  %v96_v22 = vld [vmem:[%s1379_s0 + $0x288] sm:$0x3] }
  0x24   :  { %559 = vmatmul.mubr.bf16.vlgmr.msra.gmra.mrb[0].mxu1 %v101_v44  ;;  %446 = vmatprep.mubr.bf16.mxu0 %v104_v48  ;;  %v124_v44 = vpack.c.bf16 %v68_v39, %v64_v38  ;;  %v126_v45 = vpack.c.bf16 %v70_v41, %v66_v40  ;;  %v65_v48 = vld [vmem:[%s1379_s0 + $0x190] sm:$0xff]  ;;  %v94_v13 = vld [vmem:[%s1379_s0 + $0x278] sm:$0xff]  ;;  %v140_v26 = vpack.c.bf16 %v96_v22, %v96_v22 }
  0x25   :  { %566 = vmatprep.mubr.bf16.mxu1 %v106_v49  ;;  %v69_v49 = vld [vmem:[%s1379_s0 + $0x1b0] sm:$0xff]  ;;  %v138_v17 = vpack.c.bf16 %v94_v13, %v90_v12  ;;  %v98_v23 = vld [vmem:[%s1379_s0 + $0x298] sm:$0x3] }
  0x26   :  { %v125_v55 = vpack.c.bf16 %v69_v49, %v65_v48  ;;  %v142_v27 = vpack.c.bf16 %v98_v23, %v98_v23 }
  0x2b   :  { %447 = vmatmul.mubr.bf16.gmra.mrb[4].mxu0 %v103_v58  ;;  %v71_v58 = vld [vmem:[%s1379_s0 + $0x1c0] sm:$0xff] }
  0x2c   :  { %567 = vmatmul.mubr.bf16.gmra.mrb[4].mxu1 %v105_v59  ;;  %454 = vmatprep.mubr.bf16.mxu0 %v108_v60  ;;  %v75_v59 = vld [vmem:[%s1379_s0 + $0x1e0] sm:$0xff]  ;;  %v73_v60 = vld [vmem:[%s1379_s0 + $0x1d0] sm:$0xff] }
  0x2d   :  { %574 = vmatprep.mubr.bf16.mxu1 %v110_v61  ;;  %v77_v61 = vld [vmem:[%s1379_s0 + $0x1f0] sm:$0xff]  ;;  %v127_v2 = vpack.c.bf16 %v75_v59, %v71_v58 }
  0x2e   :  { %v129_v3 = vpack.c.bf16 %v77_v61, %v73_v60 }
  0x33   :  { %455 = vmatmul.mubr.bf16.gmra.mrb[8].mxu0 %v107_v6  ;;  %v79_v6 = vld [vmem:[%s1379_s0 + $0x200] sm:$0xff] }
  0x34   :  { %575 = vmatmul.mubr.bf16.gmra.mrb[8].mxu1 %v109_v7  ;;  %462 = vmatprep.mubr.bf16.mxu0 %v112_v8  ;;  %v83_v7 = vld [vmem:[%s1379_s0 + $0x220] sm:$0xff]  ;;  %v81_v8 = vld [vmem:[%s1379_s0 + $0x210] sm:$0xff] }
  0x35   :  { %582 = vmatprep.mubr.bf16.mxu1 %v114_v9  ;;  %v85_v9 = vld [vmem:[%s1379_s0 + $0x230] sm:$0xff]  ;;  %v131_v14 = vpack.c.bf16 %v83_v7, %v79_v6 }
  0x36   :  { %v133_v15 = vpack.c.bf16 %v85_v9, %v81_v8 }
  0x3b   :  { %463 = vmatmul.mubr.bf16.gmra.mrb[12].mxu0 %v111_v18  ;;  %v87_v18 = vld [vmem:[%s1379_s0 + $0x240] sm:$0xff] }
  0x3c   :  { %583 = vmatmul.mubr.bf16.gmra.mrb[12].mxu1 %v113_v19  ;;  %470 = vmatprep.mubr.bf16.mxu0 %v116_v20  ;;  %v91_v19 = vld [vmem:[%s1379_s0 + $0x260] sm:$0xff]  ;;  %v89_v20 = vld [vmem:[%s1379_s0 + $0x250] sm:$0xff] }
  0x3d   :  { %590 = vmatprep.mubr.bf16.mxu1 %v118_v21  ;;  %v93_v21 = vld [vmem:[%s1379_s0 + $0x270] sm:$0xff]  ;;  %v135_v24 = vpack.c.bf16 %v91_v19, %v87_v18 }
  0x3e   :  { %v137_v25 = vpack.c.bf16 %v93_v21, %v89_v20 }
  0x43   :  { %471 = vmatmul.mubr.bf16.gmra.mrb[16].mxu0 %v115_v30  ;;  %v139_v30 = vpack.c.bf16 %v95_v28, %v95_v28 }
  0x44   :  { %591 = vmatmul.mubr.bf16.gmra.mrb[16].mxu1 %v117_v31  ;;  %478 = vmatprep.mubr.bf16.mxu0 %v120_v32  ;;  %v141_v31 = vpack.c.bf16 %v97_v29, %v97_v29 }
  0x45   :  { %598 = vmatprep.mubr.bf16.mxu1 %v122_v33 }
  0x4b   :  { %479 = vmatmul.mubr.bf16.gmra.mrb[20].mxu0 %v119_v42 }
  0x4c   :  { %599 = vmatmul.mubr.bf16.gmra.mrb[20].mxu1 %v121_v43  ;;  %486 = vmatprep.mubr.bf16.mxu0 %v124_v44 }
  0x4d   :  { %606 = vmatprep.mubr.bf16.mxu1 %v126_v45 }
  0x53   :  { %487 = vmatmul.mubr.bf16.gmra.mrb[24].mxu0 %v123_v54 }
  0x54   :  { %607 = vmatmul.mubr.bf16.gmra.mrb[24].mxu1 %v125_v55  ;;  %494 = vmatprep.mubr.bf16.mxu0 %v128_v56 }
  0x55   :  { %614 = vmatprep.mubr.bf16.mxu1 %v130_v57 }
  0x5b   :  { %495 = vmatmul.mubr.bf16.gmra.mrb[28].mxu0 %v127_v2 }
  0x5c   :  { %615 = vmatmul.mubr.bf16.gmra.mrb[28].mxu1 %v129_v3  ;;  %502 = vmatprep.mubr.bf16.mxu0 %v132_v4 }
  0x5d   :  { %622 = vmatprep.mubr.bf16.mxu1 %v134_v5 }
  0x63   :  { %503 = vmatmul.mubr.bf16.gmra.mrb[32].mxu0 %v131_v14 }
  0x64   :  { %623 = vmatmul.mubr.bf16.gmra.mrb[32].mxu1 %v133_v15  ;;  %510 = vmatprep.mubr.bf16.mxu0 %v136_v16 }
  0x65   :  { %630 = vmatprep.mubr.bf16.mxu1 %v138_v17 }
  0x6b   :  { %511 = vmatmul.mubr.bf16.gmra.mrb[36].mxu0 %v135_v24 }
  0x6c   :  { %631 = vmatmul.mubr.bf16.gmra.mrb[36].mxu1 %v137_v25  ;;  %518 = vmatprep.mubr.bf16.mxu0 %v140_v26 }
  0x6d   :  { %638 = vmatprep.mubr.bf16.mxu1 %v142_v27 }
  0x73   :  { %519 = vmatmul.mubr.bf16.gmra.mrb[40].mxu0 %v139_v30 }
  0x74   :  { %639 = vmatmul.mubr.bf16.gmra.mrb[40].mxu1 %v141_v31 }
  0xf6   :  { %v741_v32 = vpop.f32.mrb[0].mxu0 }
  0xf7   :  { %v823_v33 = vpop.f32.mrb[0].mxu1  ;;  %v742_v35 = vpop.f32.mrb[1].mxu0 }
  0xf8   :  { %v743_v36 = vadd.f32 %v742_v35, %v741_v32  ;;  %v824_v37 = vpop.f32.mrb[1].mxu1  ;;  %v744_v38 = vpop.f32.mrb[2].mxu0 }
  0xf9   :  { %v825_v39 = vadd.f32 %v824_v37, %v823_v33  ;;  %v826_v40 = vpop.f32.mrb[2].mxu1  ;;  %v745_v41 = vpop.f32.mrb[3].mxu0 }
  0xfa   :  { %v441_v42 = vadd.f32 %v743_v36, %v1292_v34  ;;  %v746_v43 = vadd.f32 %v745_v41, %v744_v38  ;;  %v827_v44 = vpop.f32.mrb[3].mxu1 }
  0xfb   :  { %v828_v45 = vadd.f32 %v827_v44, %v826_v40 }
  0xfc   :  { %v561_v46 = vadd.f32 %v825_v39, %v441_v42  ;;  %v444_v47 = vadd.f32 %v746_v43, %v1292_v34 }
  0xfe   :  { %v646_v48 = vmax.f32 %v561_v46, 0.0  ;;  %v564_v49 = vadd.f32 %v828_v45, %v444_v47  ;;  %v747_v50 = vpop.f32.mrb[4].mxu0 }
  0xff   :  { %v829_v51 = vpop.f32.mrb[4].mxu1  ;;  %v748_v52 = vpop.f32.mrb[5].mxu0 }
 0x100   :  { %667 = vst [vmem:[%s1381_s3] sm:$0xff] %v646_v48  ;;  %v647_v53 = vmax.f32 %v564_v49, 0.0  ;;  %v749_v54 = vadd.f32 %v748_v52, %v747_v50  ;;  %v830_v55 = vpop.f32.mrb[5].mxu1  ;;  %v750_v56 = vpop.f32.mrb[6].mxu0 }
 0x101   :  { %v831_v57 = vadd.f32 %v830_v55, %v829_v51  ;;  %v832_v58 = vpop.f32.mrb[6].mxu1  ;;  %v751_v59 = vpop.f32.mrb[7].mxu0 }
 0x102   :  { %668 = vst [vmem:[%s1381_s3 + $0x8] sm:$0xff] %v647_v53  ;;  %v449_v60 = vadd.f32 %v749_v54, %v1292_v34  ;;  %v752_v61 = vadd.f32 %v751_v59, %v750_v56  ;;  %v833_v62 = vpop.f32.mrb[7].mxu1 }
 0x103   :  { %v834_v63 = vadd.f32 %v833_v62, %v832_v58 }
 0x104   :  { %v569_v0 = vadd.f32 %v831_v57, %v449_v60  ;;  %v452_v1 = vadd.f32 %v752_v61, %v1292_v34 }
 0x106   :  { %v648_v2 = vmax.f32 %v569_v0, 0.0  ;;  %v572_v3 = vadd.f32 %v834_v63, %v452_v1  ;;  %v753_v4 = vpop.f32.mrb[8].mxu0 }
 0x107   :  { %v835_v5 = vpop.f32.mrb[8].mxu1  ;;  %v754_v6 = vpop.f32.mrb[9].mxu0 }
 0x108   :  { %669 = vst [vmem:[%s1381_s3 + $0x10] sm:$0xff] %v648_v2  ;;  %v649_v7 = vmax.f32 %v572_v3, 0.0  ;;  %v755_v8 = vadd.f32 %v754_v6, %v753_v4  ;;  %v836_v9 = vpop.f32.mrb[9].mxu1  ;;  %v756_v10 = vpop.f32.mrb[10].mxu0 }
 0x109   :  { %v837_v11 = vadd.f32 %v836_v9, %v835_v5  ;;  %v838_v12 = vpop.f32.mrb[10].mxu1  ;;  %v757_v13 = vpop.f32.mrb[11].mxu0 }
 0x10a   :  { %670 = vst [vmem:[%s1381_s3 + $0x18] sm:$0xff] %v649_v7  ;;  %v457_v14 = vadd.f32 %v755_v8, %v1292_v34  ;;  %v758_v15 = vadd.f32 %v757_v13, %v756_v10  ;;  %v839_v16 = vpop.f32.mrb[11].mxu1 }
 0x10b   :  { %v840_v17 = vadd.f32 %v839_v16, %v838_v12 }
 0x10c   :  { %v577_v18 = vadd.f32 %v837_v11, %v457_v14  ;;  %v460_v19 = vadd.f32 %v758_v15, %v1292_v34 }
 0x10e   :  { %v650_v20 = vmax.f32 %v577_v18, 0.0  ;;  %v580_v21 = vadd.f32 %v840_v17, %v460_v19  ;;  %v759_v22 = vpop.f32.mrb[12].mxu0 }
 0x10f   :  { %v841_v23 = vpop.f32.mrb[12].mxu1  ;;  %v760_v24 = vpop.f32.mrb[13].mxu0 }
 0x110   :  { %671 = vst [vmem:[%s1381_s3 + $0x20] sm:$0xff] %v650_v20  ;;  %v651_v25 = vmax.f32 %v580_v21, 0.0  ;;  %v761_v26 = vadd.f32 %v760_v24, %v759_v22  ;;  %v842_v27 = vpop.f32.mrb[13].mxu1  ;;  %v762_v28 = vpop.f32.mrb[14].mxu0 }
 0x111   :  { %v843_v29 = vadd.f32 %v842_v27, %v841_v23  ;;  %v844_v30 = vpop.f32.mrb[14].mxu1  ;;  %v763_v31 = vpop.f32.mrb[15].mxu0 }
 0x112   :  { %672 = vst [vmem:[%s1381_s3 + $0x28] sm:$0xff] %v651_v25  ;;  %v465_v32 = vadd.f32 %v761_v26, %v1292_v34  ;;  %v764_v33 = vadd.f32 %v763_v31, %v762_v28  ;;  %v845_v35 = vpop.f32.mrb[15].mxu1 }
 0x113   :  { %v846_v36 = vadd.f32 %v845_v35, %v844_v30 }
 0x114   :  { %v585_v37 = vadd.f32 %v843_v29, %v465_v32  ;;  %v468_v38 = vadd.f32 %v764_v33, %v1292_v34 }
 0x116   :  { %v652_v39 = vmax.f32 %v585_v37, 0.0  ;;  %v588_v40 = vadd.f32 %v846_v36, %v468_v38  ;;  %v765_v41 = vpop.f32.mrb[16].mxu0 }
 0x117   :  { %v847_v42 = vpop.f32.mrb[16].mxu1  ;;  %v766_v43 = vpop.f32.mrb[17].mxu0 }
 0x118   :  { %673 = vst [vmem:[%s1381_s3 + $0x30] sm:$0xff] %v652_v39  ;;  %v653_v44 = vmax.f32 %v588_v40, 0.0  ;;  %v767_v45 = vadd.f32 %v766_v43, %v765_v41  ;;  %v848_v46 = vpop.f32.mrb[17].mxu1  ;;  %v768_v47 = vpop.f32.mrb[18].mxu0 }
 0x119   :  { %v849_v48 = vadd.f32 %v848_v46, %v847_v42  ;;  %v850_v49 = vpop.f32.mrb[18].mxu1  ;;  %v769_v50 = vpop.f32.mrb[19].mxu0 }
 0x11a   :  { %674 = vst [vmem:[%s1381_s3 + $0x38] sm:$0xff] %v653_v44  ;;  %v473_v51 = vadd.f32 %v767_v45, %v1292_v34  ;;  %v770_v52 = vadd.f32 %v769_v50, %v768_v47  ;;  %v851_v53 = vpop.f32.mrb[19].mxu1 }
 0x11b   :  { %v852_v54 = vadd.f32 %v851_v53, %v850_v49 }
 0x11c   :  { %v593_v55 = vadd.f32 %v849_v48, %v473_v51  ;;  %v476_v56 = vadd.f32 %v770_v52, %v1292_v34 }
 0x11e   :  { %v654_v57 = vmax.f32 %v593_v55, 0.0  ;;  %v596_v58 = vadd.f32 %v852_v54, %v476_v56  ;;  %v771_v59 = vpop.f32.mrb[20].mxu0 }
 0x11f   :  { %v853_v60 = vpop.f32.mrb[20].mxu1  ;;  %v772_v61 = vpop.f32.mrb[21].mxu0 }
 0x120   :  { %675 = vst [vmem:[%s1381_s3 + $0x40] sm:$0xff] %v654_v57  ;;  %v655_v62 = vmax.f32 %v596_v58, 0.0  ;;  %v773_v63 = vadd.f32 %v772_v61, %v771_v59  ;;  %v854_v0 = vpop.f32.mrb[21].mxu1  ;;  %v774_v1 = vpop.f32.mrb[22].mxu0 }
 0x121   :  { %v855_v2 = vadd.f32 %v854_v0, %v853_v60  ;;  %v856_v3 = vpop.f32.mrb[22].mxu1  ;;  %v775_v4 = vpop.f32.mrb[23].mxu0 }
 0x122   :  { %676 = vst [vmem:[%s1381_s3 + $0x48] sm:$0xff] %v655_v62  ;;  %v481_v5 = vadd.f32 %v773_v63, %v1292_v34  ;;  %v776_v6 = vadd.f32 %v775_v4, %v774_v1  ;;  %v857_v7 = vpop.f32.mrb[23].mxu1 }
 0x123   :  { %v858_v8 = vadd.f32 %v857_v7, %v856_v3 }
 0x124   :  { %v601_v9 = vadd.f32 %v855_v2, %v481_v5  ;;  %v484_v10 = vadd.f32 %v776_v6, %v1292_v34 }
 0x126   :  { %v656_v11 = vmax.f32 %v601_v9, 0.0  ;;  %v604_v12 = vadd.f32 %v858_v8, %v484_v10  ;;  %v777_v13 = vpop.f32.mrb[24].mxu0 }
 0x127   :  { %v859_v14 = vpop.f32.mrb[24].mxu1  ;;  %v778_v15 = vpop.f32.mrb[25].mxu0 }
 0x128   :  { %677 = vst [vmem:[%s1381_s3 + $0x50] sm:$0xff] %v656_v11  ;;  %v657_v16 = vmax.f32 %v604_v12, 0.0  ;;  %v779_v17 = vadd.f32 %v778_v15, %v777_v13  ;;  %v860_v18 = vpop.f32.mrb[25].mxu1  ;;  %v780_v19 = vpop.f32.mrb[26].mxu0 }
 0x129   :  { %v861_v20 = vadd.f32 %v860_v18, %v859_v14  ;;  %v862_v21 = vpop.f32.mrb[26].mxu1  ;;  %v781_v22 = vpop.f32.mrb[27].mxu0 }
 0x12a   :  { %678 = vst [vmem:[%s1381_s3 + $0x58] sm:$0xff] %v657_v16  ;;  %v489_v23 = vadd.f32 %v779_v17, %v1292_v34  ;;  %v782_v24 = vadd.f32 %v781_v22, %v780_v19  ;;  %v863_v25 = vpop.f32.mrb[27].mxu1 }
 0x12b   :  { %v864_v26 = vadd.f32 %v863_v25, %v862_v21 }
 0x12c   :  { %v609_v27 = vadd.f32 %v861_v20, %v489_v23  ;;  %v492_v28 = vadd.f32 %v782_v24, %v1292_v34 }
 0x12e   :  { %v658_v29 = vmax.f32 %v609_v27, 0.0  ;;  %v612_v30 = vadd.f32 %v864_v26, %v492_v28  ;;  %v783_v31 = vpop.f32.mrb[28].mxu0 }
 0x12f   :  { %v865_v32 = vpop.f32.mrb[28].mxu1  ;;  %v784_v33 = vpop.f32.mrb[29].mxu0 }
 0x130   :  { %679 = vst [vmem:[%s1381_s3 + $0x60] sm:$0xff] %v658_v29  ;;  %v659_v35 = vmax.f32 %v612_v30, 0.0  ;;  %v785_v36 = vadd.f32 %v784_v33, %v783_v31  ;;  %v866_v37 = vpop.f32.mrb[29].mxu1  ;;  %v786_v38 = vpop.f32.mrb[30].mxu0 }
 0x131   :  { %v867_v39 = vadd.f32 %v866_v37, %v865_v32  ;;  %v868_v40 = vpop.f32.mrb[30].mxu1  ;;  %v787_v41 = vpop.f32.mrb[31].mxu0 }
 0x132   :  { %680 = vst [vmem:[%s1381_s3 + $0x68] sm:$0xff] %v659_v35  ;;  %v497_v42 = vadd.f32 %v785_v36, %v1292_v34  ;;  %v788_v43 = vadd.f32 %v787_v41, %v786_v38  ;;  %v869_v44 = vpop.f32.mrb[31].mxu1 }
 0x133   :  { %v870_v45 = vadd.f32 %v869_v44, %v868_v40 }
 0x134   :  { %v617_v46 = vadd.f32 %v867_v39, %v497_v42  ;;  %v500_v47 = vadd.f32 %v788_v43, %v1292_v34 }
 0x136   :  { %v660_v48 = vmax.f32 %v617_v46, 0.0  ;;  %v620_v49 = vadd.f32 %v870_v45, %v500_v47  ;;  %v789_v50 = vpop.f32.mrb[32].mxu0 }
 0x137   :  { %v871_v51 = vpop.f32.mrb[32].mxu1  ;;  %v790_v52 = vpop.f32.mrb[33].mxu0 }
 0x138   :  { %681 = vst [vmem:[%s1381_s3 + $0x70] sm:$0xff] %v660_v48  ;;  %v661_v53 = vmax.f32 %v620_v49, 0.0  ;;  %v791_v54 = vadd.f32 %v790_v52, %v789_v50  ;;  %v872_v55 = vpop.f32.mrb[33].mxu1  ;;  %v792_v56 = vpop.f32.mrb[34].mxu0 }
 0x139   :  { %v873_v57 = vadd.f32 %v872_v55, %v871_v51  ;;  %v874_v58 = vpop.f32.mrb[34].mxu1  ;;  %v793_v59 = vpop.f32.mrb[35].mxu0 }
 0x13a   :  { %682 = vst [vmem:[%s1381_s3 + $0x78] sm:$0xff] %v661_v53  ;;  %v505_v60 = vadd.f32 %v791_v54, %v1292_v34  ;;  %v794_v61 = vadd.f32 %v793_v59, %v792_v56  ;;  %v875_v62 = vpop.f32.mrb[35].mxu1 }
 0x13b   :  { %v876_v63 = vadd.f32 %v875_v62, %v874_v58 }
 0x13c   :  { %v625_v0 = vadd.f32 %v873_v57, %v505_v60  ;;  %v508_v1 = vadd.f32 %v794_v61, %v1292_v34 }
 0x13e   :  { %v662_v2 = vmax.f32 %v625_v0, 0.0  ;;  %v628_v3 = vadd.f32 %v876_v63, %v508_v1  ;;  %v795_v4 = vpop.f32.mrb[36].mxu0 }
 0x13f   :  { %v877_v5 = vpop.f32.mrb[36].mxu1  ;;  %v796_v6 = vpop.f32.mrb[37].mxu0 }
 0x140   :  { %683 = vst [vmem:[%s1381_s3 + $0x80] sm:$0xff] %v662_v2  ;;  %v663_v7 = vmax.f32 %v628_v3, 0.0  ;;  %v797_v8 = vadd.f32 %v796_v6, %v795_v4  ;;  %v878_v9 = vpop.f32.mrb[37].mxu1  ;;  %v798_v10 = vpop.f32.mrb[38].mxu0 }
 0x141   :  { %v879_v11 = vadd.f32 %v878_v9, %v877_v5  ;;  %v880_v12 = vpop.f32.mrb[38].mxu1  ;;  %v799_v13 = vpop.f32.mrb[39].mxu0 }
 0x142   :  { %684 = vst [vmem:[%s1381_s3 + $0x88] sm:$0xff] %v663_v7  ;;  %v513_v14 = vadd.f32 %v797_v8, %v1292_v34  ;;  %v800_v15 = vadd.f32 %v799_v13, %v798_v10  ;;  %v881_v16 = vpop.f32.mrb[39].mxu1 }
 0x143   :  { %v882_v17 = vadd.f32 %v881_v16, %v880_v12 }
 0x144   :  { %v633_v18 = vadd.f32 %v879_v11, %v513_v14  ;;  %v516_v19 = vadd.f32 %v800_v15, %v1292_v34 }
 0x146   :  { %v664_v20 = vmax.f32 %v633_v18, 0.0  ;;  %v636_v21 = vadd.f32 %v882_v17, %v516_v19  ;;  %v801_v22 = vpop.f32.mrb[40].mxu0 }
 0x147   :  { %v883_v23 = vpop.f32.mrb[40].mxu1  ;;  %v802_v24 = vpop.f32.mrb[41].mxu0 }
 0x148   :  { %685 = vst [vmem:[%s1381_s3 + $0x90] sm:$0xff] %v664_v20  ;;  %v665_v25 = vmax.f32 %v636_v21, 0.0  ;;  %v803_v26 = vadd.f32 %v802_v24, %v801_v22  ;;  %v884_v27 = vpop.f32.mrb[41].mxu1  ;;  %v804_v28 = vpop.f32.mrb[42].mxu0 }
 0x149   :  { %v885_v29 = vadd.f32 %v884_v27, %v883_v23  ;;  %v886_v30 = vpop.f32.mrb[42].mxu1  ;;  %v805_v31 = vpop.f32.mrb[43].mxu0 }
 0x14a   :  { %686 = vst [vmem:[%s1381_s3 + $0x98] sm:$0xff] %v665_v25  ;;  %v521_v32 = vadd.f32 %v803_v26, %v1292_v34  ;;  %v887_v33 = vpop.f32.mrb[43].mxu1 }
 0x14c   :  { %v641_v35 = vadd.f32 %v885_v29, %v521_v32 }
 0x14e   :  { %v666_v36 = vmax.f32 %v641_v35, 0.0 }
 0x150   :  { %687 = vst [vmem:[%s1381_s3 + $0xa0] sm:$0x3] %v666_v36 }

// kernel: policy_conv_net_forward.6
= control target key start
LH: loop header
LB: loop body
LE: loop exit
PB: predicated region body
PF: predicated region fallthrough
CT: control target
= control target key end

     0   :  { %v979_v39 = vmov 0.0   ;;  %vm980_vm0 = vmmov 0   ;;  %vm410_vm1 = vcmask 523264   ;;  %s1414_s1 = inlined_call_operand.vmem [shape: bf16[576,128], index: 1, kind: input, shape index: {}]   ;;  %s1415_s0 = inlined_call_operand.vmem [shape: f32[98,576], index: 0, kind: input, shape index: {}]   ;;  %s1416_s2 = inlined_call_operand.vmem [shape: f32[1,128], index: 2, kind: input, shape index: {}]   ;;  %s1417_s3 = inlined_call_operand.vmem [shape: f32[98,128], index: 3, kind: output, shape index: {}]  }
   0x1   :  { %v943_v0 = vld [vmem:[%s1414_s1 + $0x40] sm:$0xff]   ;;  %v947_v4 = vld [vmem:[%s1414_s1 + $0x48] sm:$0xff]   ;;  %v951_v8 = vld [vmem:[%s1414_s1 + $0x50] sm:$0xff]  }
   0x2   :  { %v944_v1 = vld [vmem:[%s1414_s1 + $0xc0] sm:$0xff]   ;;  %770 = vmatprep.subr.bf16.mxu0 %v943_v0  ;;  %v948_v5 = vld [vmem:[%s1414_s1 + $0xc8] sm:$0xff]   ;;  %v952_v9 = vld [vmem:[%s1414_s1 + $0xd0] sm:$0xff]  }
   0x3   :  { %v945_v2 = vld [vmem:[%s1414_s1] sm:$0xff]   ;;  %828 = vmatprep.subr.bf16.mxu1 %v944_v1  ;;  %v949_v6 = vld [vmem:[%s1414_s1 + $0x8] sm:$0xff]   ;;  %v953_v10 = vld [vmem:[%s1414_s1 + $0x10] sm:$0xff]  }
   0x4   :  { %v946_v3 = vld [vmem:[%s1414_s1 + $0x80] sm:$0xff]   ;;  %771 = vmatpush3.bf16.msra.mxu0 %v945_v2  ;;  %v950_v7 = vld [vmem:[%s1414_s1 + $0x88] sm:$0xff]   ;;  %v954_v11 = vld [vmem:[%s1414_s1 + $0x90] sm:$0xff]  }
   0x5   :  { %829 = vmatpush3.bf16.msra.mxu1 %v946_v3  ;;  %772 = vmatprep.subr.bf16.mxu0 %v947_v4  ;;  %v955_v12 = vld [vmem:[%s1414_s1 + $0x58] sm:$0xff]   ;;  %v959_v16 = vld [vmem:[%s1414_s1 + $0x60] sm:$0xff]   ;;  %v963_v20 = vld [vmem:[%s1414_s1 + $0x68] sm:$0xff]  }
   0x6   :  { %830 = vmatprep.subr.bf16.mxu1 %v948_v5  ;;  %v956_v13 = vld [vmem:[%s1414_s1 + $0xd8] sm:$0xff]   ;;  %v960_v17 = vld [vmem:[%s1414_s1 + $0xe0] sm:$0xff]   ;;  %v964_v21 = vld [vmem:[%s1414_s1 + $0xe8] sm:$0xff]  }
   0x7   :  { %v957_v14 = vld [vmem:[%s1414_s1 + $0x18] sm:$0xff]   ;;  %v961_v18 = vld [vmem:[%s1414_s1 + $0x20] sm:$0xff]   ;;  %v965_v22 = vld [vmem:[%s1414_s1 + $0x28] sm:$0xff]  }
   0x8   :  { %773 = vmatpush3.bf16.msra.mxu0 %v949_v6  ;;  %v958_v15 = vld [vmem:[%s1414_s1 + $0x98] sm:$0xff]   ;;  %v962_v19 = vld [vmem:[%s1414_s1 + $0xa0] sm:$0xff]   ;;  %v966_v23 = vld [vmem:[%s1414_s1 + $0xa8] sm:$0xff]  }
   0x9   :  { %831 = vmatpush3.bf16.msra.mxu1 %v950_v7  ;;  %774 = vmatprep.subr.bf16.mxu0 %v951_v8  ;;  %v967_v24 = vld [vmem:[%s1414_s1 + $0x70] sm:$0xff]   ;;  %v971_v28 = vld [vmem:[%s1414_s1 + $0x78] sm:$0xff]   ;;  %v16_v32 = vld [vmem:[%s1415_s0 + $0x8] sm:$0xff] }
   0xa   :  { %832 = vmatprep.subr.bf16.mxu1 %v952_v9  ;;  %v968_v25 = vld [vmem:[%s1414_s1 + $0xf0] sm:$0xff]   ;;  %v972_v29 = vld [vmem:[%s1414_s1 + $0xf8] sm:$0xff]   ;;  %v23_v36 = vld [vmem:[%s1415_s0 + $0x40] sm:$0xff] }
   0xb   :  { %v969_v26 = vld [vmem:[%s1414_s1 + $0x30] sm:$0xff]   ;;  %v973_v30 = vld [vmem:[%s1414_s1 + $0x38] sm:$0xff]   ;;  %v15_v37 = vld [vmem:[%s1415_s0] sm:$0xff] }
   0xc   :  { %775 = vmatpush3.bf16.msra.mxu0 %v953_v10  ;;  %v970_v27 = vld [vmem:[%s1414_s1 + $0xb0] sm:$0xff]   ;;  %v974_v31 = vld [vmem:[%s1414_s1 + $0xb8] sm:$0xff]   ;;  %v20_v38 = vld [vmem:[%s1415_s0 + $0x28] sm:$0xff] }
   0xd   :  { %833 = vmatpush3.bf16.msra.mxu1 %v954_v11  ;;  %776 = vmatprep.subr.bf16.mxu0 %v955_v12  ;;  %v21_v33 = vld [vmem:[%s1415_s0 + $0x30] sm:$0xff]  ;;  %v18_v34 = vld [vmem:[%s1415_s0 + $0x18] sm:$0xff]  ;;  %v80_v41 = vpack.c.bf16 %v20_v38, %v15_v37  ;;  %v975_v45 = vld [vmem:[%s1414_s1 + $0x100] sm:$0xff]  }
   0xe   :  { %834 = vmatprep.subr.bf16.mxu1 %v956_v13  ;;  %v81_v35 = vpack.c.bf16 %v21_v33, %v16_v32  ;;  %v83_v40 = vpack.c.bf16 %v23_v36, %v18_v34  ;;  %v17_v42 = vld [vmem:[%s1415_s0 + $0x10] sm:$0xff]  ;;  %v22_v43 = vld [vmem:[%s1415_s0 + $0x38] sm:$0xff]  ;;  %v31_v47 = vld [vmem:[%s1415_s0 + $0x80] sm:$0xff] }
   0xf   :  { %v82_v44 = vpack.c.bf16 %v22_v43, %v17_v42  ;;  %v26_v46 = vld [vmem:[%s1415_s0 + $0x58] sm:$0xff]  ;;  %v28_v48 = vld [vmem:[%s1415_s0 + $0x68] sm:$0xff]  ;;  %v33_v49 = vld [vmem:[%s1415_s0 + $0x90] sm:$0xff] }
  0x10   :  { %777 = vmatpush3.bf16.msra.mxu0 %v957_v14  ;;  %464 = vmatprep.mubr.bf16.mxu0 %v81_v35  ;;  %v86_v50 = vpack.c.bf16 %v31_v47, %v26_v46  ;;  %v88_v51 = vpack.c.bf16 %v33_v49, %v28_v48  ;;  %v25_v52 = vld [vmem:[%s1415_s0 + $0x50] sm:$0xff]  ;;  %v30_v53 = vld [vmem:[%s1415_s0 + $0x78] sm:$0xff]  ;;  %v27_v54 = vld [vmem:[%s1415_s0 + $0x60] sm:$0xff] }
  0x11   :  { %835 = vmatpush3.bf16.msra.mxu1 %v958_v15  ;;  %778 = vmatprep.subr.bf16.mxu0 %v959_v16  ;;  %v32_v55 = vld [vmem:[%s1415_s0 + $0x88] sm:$0xff]  ;;  %v41_v57 = vld [vmem:[%s1415_s0 + $0xd0] sm:$0xff]  ;;  %v38_v58 = vld [vmem:[%s1415_s0 + $0xb8] sm:$0xff]  ;;  %v85_v60 = vpack.c.bf16 %v30_v53, %v25_v52 }
  0x12   :  { %836 = vmatprep.subr.bf16.mxu1 %v960_v17  ;;  %552 = vmatprep.mubr.bf16.mxu1 %v83_v40  ;;  %v36_v56 = vld [vmem:[%s1415_s0 + $0xa8] sm:$0xff]  ;;  %v43_v59 = vld [vmem:[%s1415_s0 + $0xe0] sm:$0xff]  ;;  %v87_v62 = vpack.c.bf16 %v32_v55, %v27_v54  ;;  %v37_v3 = vld [vmem:[%s1415_s0 + $0xb0] sm:$0xff] }
  0x13   :  { %v976_v61 = vld [vmem:[%s1414_s1 + $0x108] sm:$0xff]   ;;  %v91_v63 = vpack.c.bf16 %v41_v57, %v36_v56  ;;  %v93_v0 = vpack.c.bf16 %v43_v59, %v38_v58  ;;  %v35_v1 = vld [vmem:[%s1415_s0 + $0xa0] sm:$0xff]  ;;  %v977_v4 = vld [vmem:[%s1414_s1 + $0x110] sm:$0xff]  }
  0x14   :  { %779 = vmatpush3.bf16.msra.mxu0 %v961_v18  ;;  %v40_v2 = vld [vmem:[%s1415_s0 + $0xc8] sm:$0xff]  ;;  %v42_v5 = vld [vmem:[%s1415_s0 + $0xd8] sm:$0xff]  ;;  %v51_v7 = vld [vmem:[%s1415_s0 + $0x120] sm:$0xff] }
  0x15   :  { %837 = vmatpush3.bf16.msra.mxu1 %v962_v19  ;;  %780 = vmatprep.subr.bf16.mxu0 %v963_v20  ;;  %v46_v6 = vld [vmem:[%s1415_s0 + $0xf8] sm:$0xff]  ;;  %v48_v8 = vld [vmem:[%s1415_s0 + $0x108] sm:$0xff]  ;;  %v53_v9 = vld [vmem:[%s1415_s0 + $0x130] sm:$0xff]  ;;  %v90_v10 = vpack.c.bf16 %v40_v2, %v35_v1  ;;  %v92_v11 = vpack.c.bf16 %v42_v5, %v37_v3 }
  0x16   :  { %838 = vmatprep.subr.bf16.mxu1 %v964_v21  ;;  %v96_v12 = vpack.c.bf16 %v51_v7, %v46_v6  ;;  %v98_v13 = vpack.c.bf16 %v53_v9, %v48_v8  ;;  %v978_v14 = vld [vmem:[%s1414_s1 + $0x118] sm:$0xff]   ;;  %v45_v15 = vld [vmem:[%s1415_s0 + $0xf0] sm:$0xff]  ;;  %v47_v17 = vld [vmem:[%s1415_s0 + $0x100] sm:$0xff] }
  0x17   :  { %v50_v16 = vld [vmem:[%s1415_s0 + $0x118] sm:$0xff]  ;;  %v52_v18 = vld [vmem:[%s1415_s0 + $0x128] sm:$0xff]  ;;  %v61_v20 = vld [vmem:[%s1415_s0 + $0x170] sm:$0xff] }
  0x18   :  { %781 = vmatpush3.bf16.msra.mxu0 %v965_v22  ;;  %v56_v19 = vld [vmem:[%s1415_s0 + $0x148] sm:$0xff]  ;;  %v58_v21 = vld [vmem:[%s1415_s0 + $0x158] sm:$0xff]  ;;  %v63_v22 = vld [vmem:[%s1415_s0 + $0x180] sm:$0xff] }
  0x19   :  { %839 = vmatpush3.bf16.msra.mxu1 %v966_v23  ;;  %782 = vmatprep.subr.bf16.mxu0 %v967_v24  ;;  %v95_v23 = vpack.c.bf16 %v50_v16, %v45_v15  ;;  %v97_v24 = vpack.c.bf16 %v52_v18, %v47_v17  ;;  %v71_v32 = vld [vmem:[%s1415_s0 + $0x1c0] sm:$0xff]  ;;  %v68_v33 = vld [vmem:[%s1415_s0 + $0x1a8] sm:$0xff]  ;;  %v73_v34 = vld [vmem:[%s1415_s0 + $0x1d0] sm:$0xff] }
  0x1a   :  { %840 = vmatprep.subr.bf16.mxu1 %v968_v25  ;;  %v101_v25 = vpack.c.bf16 %v61_v20, %v56_v19  ;;  %v108_v38 = vpack.c.bf16 %v73_v34, %v68_v33  ;;  %v65_v40 = vld [vmem:[%s1415_s0 + $0x190] sm:$0xff]  ;;  %v67_v42 = vld [vmem:[%s1415_s0 + $0x1a0] sm:$0xff]  ;;  %v72_v43 = vld [vmem:[%s1415_s0 + $0x1c8] sm:$0xff] }
  0x1b   :  { %v107_v47 = vpack.c.bf16 %v72_v43, %v67_v42  ;;  %v19_v54 = vld [vmem:[%s1415_s0 + $0x20] sm:$0xff]  ;;  %v24_v55 = vld [vmem:[%s1415_s0 + $0x48] sm:$0xff]  ;;  %v49_v7 = vld [vmem:[%s1415_s0 + $0x110] sm:$0xff] }
  0x1c   :  { %783 = vmatpush3.bf16.msra.mxu0 %v969_v26  ;;  %v103_v26 = vpack.c.bf16 %v63_v22, %v58_v21  ;;  %v59_v56 = vld [vmem:[%s1415_s0 + $0x160] sm:$0xff]  ;;  %v64_v57 = vld [vmem:[%s1415_s0 + $0x188] sm:$0xff]  ;;  %v84_v58 = vpack.c.bf16 %v24_v55, %v19_v54  ;;  %v54_v8 = vld [vmem:[%s1415_s0 + $0x138] sm:$0xff] }
  0x1d   :  { %841 = vmatpush3.bf16.msra.mxu1 %v970_v27  ;;  %784 = vmatprep.subr.bf16.mxu0 %v971_v28  ;;  %v55_v27 = vld [vmem:[%s1415_s0 + $0x140] sm:$0xff]  ;;  %v60_v28 = vld [vmem:[%s1415_s0 + $0x168] sm:$0xff]  ;;  %v104_v59 = vpack.c.bf16 %v64_v57, %v59_v56  ;;  %v99_v9 = vpack.c.bf16 %v54_v8, %v49_v7 }
  0x1e   :  { %842 = vmatprep.subr.bf16.mxu1 %v972_v29  ;;  %v57_v29 = vld [vmem:[%s1415_s0 + $0x150] sm:$0xff]  ;;  %v100_v35 = vpack.c.bf16 %v60_v28, %v55_v27  ;;  %v39_v2 = vld [vmem:[%s1415_s0 + $0xc0] sm:$0xff]  ;;  %v44_v3 = vld [vmem:[%s1415_s0 + $0xe8] sm:$0xff] }
  0x1f   :  { %v94_v5 = vpack.c.bf16 %v44_v3, %v39_v2 }
  0x20   :  { %785 = vmatpush3.bf16.msra.mxu0 %v973_v30  ;;  %v62_v30 = vld [vmem:[%s1415_s0 + $0x178] sm:$0xff] }
  0x21   :  { %843 = vmatpush3.bf16.msra.mxu1 %v974_v31  ;;  %897 = vmatprep.subr.bf16.mxu0 %v979_v39  ;;  %v66_v31 = vld [vmem:[%s1415_s0 + $0x198] sm:$0xff]  ;;  %v102_v36 = vpack.c.bf16 %v62_v30, %v57_v29 }
  0x22   :  { %933 = vmatprep.subr.bf16.mxu1 %v979_v39  ;;  %v106_v37 = vpack.c.bf16 %v71_v32, %v66_v31 }
  0x23   :  { %465 = vmatmul.mubr.bf16.vlgmr.msra.gmra.mrb[0].mxu0 %v80_v41  ;;  %v70_v41 = vld [vmem:[%s1415_s0 + $0x1b8] sm:$0xff] }
  0x24   :  { %553 = vmatmul.mubr.bf16.vlgmr.msra.gmra.mrb[0].mxu1 %v82_v44  ;;  %898 = vmatpush3.bf16.msra.mxu0 %v975_v45  ;;  %v76_v44 = vld [vmem:[%s1415_s0 + $0x1e8] sm:$0x3]  ;;  %v105_v46 = vpack.c.bf16 %v70_v41, %v65_v40 }
  0x25   :  { %937 = vmatpush3.bf16.msra.mxu1 %v975_v45  ;;  %899 = vmatprep.subr.bf16.mxu0 %v979_v39  ;;  %v78_v45 = vld [vmem:[%s1415_s0 + $0x1f8] sm:$0x3]  ;;  %v111_v48 = vpack.c.bf16 %v76_v44, %v76_v44 }
  0x26   :  { %472 = vmatprep.mubr.bf16.mxu0 %v86_v50  ;;  %560 = vmatprep.mubr.bf16.mxu1 %v88_v51  ;;  %v113_v49 = vpack.c.bf16 %v78_v45, %v78_v45  ;;  %v75_v50 = vld [vmem:[%s1415_s0 + $0x1e0] sm:$0x3]  ;;  %v77_v51 = vld [vmem:[%s1415_s0 + $0x1f0] sm:$0x3] }
  0x27   :  { %934 = vmatprep.subr.bf16.mxu1 %v979_v39  ;;  %v110_v52 = vpack.c.bf16 %v75_v50, %v75_v50  ;;  %v112_v53 = vpack.c.bf16 %v77_v51, %v77_v51 }
  0x28   :  { %900 = vmatpush3.bf16.msra.mxu0 %v976_v61 }
  0x29   :  { %938 = vmatpush3.bf16.msra.mxu1 %v976_v61  ;;  %901 = vmatprep.subr.bf16.mxu0 %v979_v39  ;;  %v34_v61 = vld [vmem:[%s1415_s0 + $0x98] sm:$0xff] }
  0x2a   :  { %935 = vmatprep.subr.bf16.mxu1 %v979_v39 }
  0x2b   :  { %473 = vmatmul.mubr.bf16.gmra.mrb[4].mxu0 %v85_v60  ;;  %v29_v60 = vld [vmem:[%s1415_s0 + $0x70] sm:$0xff] }
  0x2c   :  { %561 = vmatmul.mubr.bf16.gmra.mrb[4].mxu1 %v87_v62  ;;  %480 = vmatprep.mubr.bf16.mxu0 %v91_v63  ;;  %v69_v62 = vld [vmem:[%s1415_s0 + $0x1b0] sm:$0xff]  ;;  %v74_v63 = vld [vmem:[%s1415_s0 + $0x1d8] sm:$0xff] }
  0x2d   :  { %568 = vmatprep.mubr.bf16.mxu1 %v93_v0  ;;  %902 = vmatpush3.bf16.msra.mxu0 %v977_v4  ;;  %v89_v0 = vpack.c.bf16 %v34_v61, %v29_v60  ;;  %v109_v1 = vpack.c.bf16 %v74_v63, %v69_v62 }
  0x2e   :  { %939 = vmatpush3.bf16.msra.mxu1 %v977_v4  ;;  %903 = vmatprep.subr.bf16.mxu0 %v979_v39  ;;  %v79_v4 = vld [vmem:[%s1415_s0 + $0x200] sm:$0x3] }
  0x2f   :  { %936 = vmatprep.subr.bf16.mxu1 %v979_v39  ;;  %v114_v6 = vpack.c.bf16 %v79_v4, %v79_v4 }
  0x31   :  { %904 = vmatpush3.bf16.msra.mxu0 %v978_v14 }
  0x32   :  { %940 = vmatpush3.bf16.msra.mxu1 %v978_v14 }
  0x33   :  { %481 = vmatmul.mubr.bf16.gmra.mrb[8].mxu0 %v90_v10 }
  0x34   :  { %569 = vmatmul.mubr.bf16.gmra.mrb[8].mxu1 %v92_v11  ;;  %488 = vmatprep.mubr.bf16.mxu0 %v96_v12  ;;  %v1336_v11 = vld [vmem:[%s1416_s2] ss:$0 sm:$0xff] }
  0x35   :  { %576 = vmatprep.mubr.bf16.mxu1 %v98_v13 }
  0x3b   :  { %489 = vmatmul.mubr.bf16.gmra.mrb[12].mxu0 %v95_v23 }
  0x3c   :  { %577 = vmatmul.mubr.bf16.gmra.mrb[12].mxu1 %v97_v24  ;;  %496 = vmatprep.mubr.bf16.mxu0 %v101_v25 }
  0x3d   :  { %584 = vmatprep.mubr.bf16.mxu1 %v103_v26 }
  0x43   :  { %497 = vmatmul.mubr.bf16.gmra.mrb[16].mxu0 %v100_v35 }
  0x44   :  { %585 = vmatmul.mubr.bf16.gmra.mrb[16].mxu1 %v102_v36  ;;  %504 = vmatprep.mubr.bf16.mxu0 %v106_v37 }
  0x45   :  { %592 = vmatprep.mubr.bf16.mxu1 %v108_v38 }
  0x4b   :  { %505 = vmatmul.mubr.bf16.gmra.mrb[20].mxu0 %v105_v46 }
  0x4c   :  { %593 = vmatmul.mubr.bf16.gmra.mrb[20].mxu1 %v107_v47  ;;  %512 = vmatprep.mubr.bf16.mxu0 %v111_v48 }
  0x4d   :  { %600 = vmatprep.mubr.bf16.mxu1 %v113_v49 }
  0x53   :  { %513 = vmatmul.mubr.bf16.gmra.mrb[24].mxu0 %v110_v52 }
  0x54   :  { %601 = vmatmul.mubr.bf16.gmra.mrb[24].mxu1 %v112_v53  ;;  %905 = vmatprep.mubr.msk.bf16.mxu0 %vm980_vm0, %v979_v39 }
  0x55   :  { %921 = vmatprep.mubr.msk.bf16.mxu1 %vm980_vm0, %v979_v39 }
  0x5b   :  { %906 = vmatmul.mubr.msk.bf16.vlgmr.msra.gmra.mrb[28].mxu0 %vm410_vm1, %v84_v58 }
  0x5c   :  { %922 = vmatmul.mubr.msk.bf16.vlgmr.msra.gmra.mrb[28].mxu1 %vm410_vm1, %v104_v59  ;;  %909 = vmatprep.mubr.msk.bf16.mxu0 %vm980_vm0, %v979_v39 }
  0x5d   :  { %925 = vmatprep.mubr.msk.bf16.mxu1 %vm980_vm0, %v979_v39 }
  0x63   :  { %910 = vmatmul.mubr.msk.bf16.gmra.mrb[32].mxu0 %vm410_vm1, %v89_v0 }
  0x64   :  { %926 = vmatmul.mubr.msk.bf16.gmra.mrb[32].mxu1 %vm410_vm1, %v109_v1  ;;  %913 = vmatprep.mubr.msk.bf16.mxu0 %vm980_vm0, %v979_v39 }
  0x65   :  { %929 = vmatprep.mubr.msk.bf16.mxu1 %vm980_vm0, %v979_v39 }
  0x6b   :  { %914 = vmatmul.mubr.msk.bf16.gmra.mrb[36].mxu0 %vm410_vm1, %v94_v5 }
  0x6c   :  { %930 = vmatmul.mubr.msk.bf16.gmra.mrb[36].mxu1 %vm410_vm1, %v114_v6  ;;  %917 = vmatprep.mubr.msk.bf16.mxu0 %vm980_vm0, %v979_v39 }
  0x73   :  { %918 = vmatmul.mubr.msk.bf16.gmra.mrb[40].mxu0 %vm410_vm1, %v99_v9 }
  0xf6   :  { %v786_v10 = vpop.f32.mrb[0].mxu0 }
  0xf7   :  { %v787_v12 = vpop.f32.mrb[1].mxu0  ;;  %v844_v13 = vpop.f32.mrb[0].mxu1 }
  0xf8   :  { %v788_v39 = vadd.f32 %v787_v12, %v786_v10  ;;  %v789_v14 = vpop.f32.mrb[2].mxu0  ;;  %v845_v15 = vpop.f32.mrb[1].mxu1 }
  0xf9   :  { %v790_v16 = vpop.f32.mrb[3].mxu0  ;;  %v846_v17 = vadd.f32 %v845_v15, %v844_v13  ;;  %v847_v18 = vpop.f32.mrb[2].mxu1 }
  0xfa   :  { %v467_v19 = vadd.f32 %v788_v39, %v1336_v11  ;;  %v791_v20 = vadd.f32 %v790_v16, %v789_v14  ;;  %v848_v21 = vpop.f32.mrb[3].mxu1 }
  0xfb   :  { %v849_v22 = vadd.f32 %v848_v21, %v847_v18 }
  0xfc   :  { %v470_v23 = vadd.f32 %v791_v20, %v1336_v11  ;;  %v1340_v24 = vadd.f32 %v846_v17, %v467_v19 }
  0xfe   :  { %v792_v25 = vpop.f32.mrb[4].mxu0  ;;  %v1342_v26 = vadd.f32 %v849_v22, %v470_v23 }
  0xff   :  { %v793_v27 = vpop.f32.mrb[5].mxu0  ;;  %v850_v28 = vpop.f32.mrb[4].mxu1 }
 0x100   :  { %v794_v29 = vadd.f32 %v793_v27, %v792_v25  ;;  %v795_v30 = vpop.f32.mrb[6].mxu0  ;;  %v851_v31 = vpop.f32.mrb[5].mxu1 }
 0x101   :  { %v796_v32 = vpop.f32.mrb[7].mxu0  ;;  %v852_v33 = vadd.f32 %v851_v31, %v850_v28  ;;  %v853_v34 = vpop.f32.mrb[6].mxu1 }
 0x102   :  { %v475_v35 = vadd.f32 %v794_v29, %v1336_v11  ;;  %v797_v36 = vadd.f32 %v796_v32, %v795_v30  ;;  %v854_v37 = vpop.f32.mrb[7].mxu1 }
 0x103   :  { %v855_v38 = vadd.f32 %v854_v37, %v853_v34 }
 0x104   :  { %v478_v40 = vadd.f32 %v797_v36, %v1336_v11  ;;  %v1346_v41 = vadd.f32 %v852_v33, %v475_v35 }
 0x106   :  { %v798_v42 = vpop.f32.mrb[8].mxu0  ;;  %v1348_v43 = vadd.f32 %v855_v38, %v478_v40 }
 0x107   :  { %v799_v44 = vpop.f32.mrb[9].mxu0  ;;  %v856_v45 = vpop.f32.mrb[8].mxu1 }
 0x108   :  { %v800_v46 = vadd.f32 %v799_v44, %v798_v42  ;;  %v801_v47 = vpop.f32.mrb[10].mxu0  ;;  %v857_v48 = vpop.f32.mrb[9].mxu1 }
 0x109   :  { %v802_v49 = vpop.f32.mrb[11].mxu0  ;;  %v858_v50 = vadd.f32 %v857_v48, %v856_v45  ;;  %v859_v51 = vpop.f32.mrb[10].mxu1 }
 0x10a   :  { %v483_v52 = vadd.f32 %v800_v46, %v1336_v11  ;;  %v803_v53 = vadd.f32 %v802_v49, %v801_v47  ;;  %v860_v54 = vpop.f32.mrb[11].mxu1 }
 0x10b   :  { %v861_v55 = vadd.f32 %v860_v54, %v859_v51 }
 0x10c   :  { %v486_v56 = vadd.f32 %v803_v53, %v1336_v11  ;;  %v1352_v57 = vadd.f32 %v858_v50, %v483_v52 }
 0x10e   :  { %v804_v58 = vpop.f32.mrb[12].mxu0  ;;  %v1354_v59 = vadd.f32 %v861_v55, %v486_v56 }
 0x10f   :  { %v805_v60 = vpop.f32.mrb[13].mxu0  ;;  %v862_v61 = vpop.f32.mrb[12].mxu1 }
 0x110   :  { %v806_v62 = vadd.f32 %v805_v60, %v804_v58  ;;  %v807_v63 = vpop.f32.mrb[14].mxu0  ;;  %v863_v0 = vpop.f32.mrb[13].mxu1 }
 0x111   :  { %v808_v1 = vpop.f32.mrb[15].mxu0  ;;  %v864_v2 = vadd.f32 %v863_v0, %v862_v61  ;;  %v865_v3 = vpop.f32.mrb[14].mxu1 }
 0x112   :  { %v491_v4 = vadd.f32 %v806_v62, %v1336_v11  ;;  %v809_v5 = vadd.f32 %v808_v1, %v807_v63  ;;  %v866_v6 = vpop.f32.mrb[15].mxu1 }
 0x113   :  { %v867_v7 = vadd.f32 %v866_v6, %v865_v3 }
 0x114   :  { %v494_v8 = vadd.f32 %v809_v5, %v1336_v11  ;;  %v1358_v9 = vadd.f32 %v864_v2, %v491_v4 }
 0x116   :  { %v810_v10 = vpop.f32.mrb[16].mxu0  ;;  %v1360_v12 = vadd.f32 %v867_v7, %v494_v8 }
 0x117   :  { %v811_v13 = vpop.f32.mrb[17].mxu0  ;;  %v868_v39 = vpop.f32.mrb[16].mxu1 }
 0x118   :  { %v812_v14 = vadd.f32 %v811_v13, %v810_v10  ;;  %v813_v15 = vpop.f32.mrb[18].mxu0  ;;  %v869_v16 = vpop.f32.mrb[17].mxu1 }
 0x119   :  { %v814_v17 = vpop.f32.mrb[19].mxu0  ;;  %v870_v18 = vadd.f32 %v869_v16, %v868_v39  ;;  %v871_v19 = vpop.f32.mrb[18].mxu1 }
 0x11a   :  { %v499_v20 = vadd.f32 %v812_v14, %v1336_v11  ;;  %v815_v21 = vadd.f32 %v814_v17, %v813_v15  ;;  %v872_v22 = vpop.f32.mrb[19].mxu1 }
 0x11b   :  { %v873_v23 = vadd.f32 %v872_v22, %v871_v19 }
 0x11c   :  { %v502_v25 = vadd.f32 %v815_v21, %v1336_v11  ;;  %v587_v27 = vadd.f32 %v870_v18, %v499_v20 }
 0x11e   :  { %v816_v28 = vpop.f32.mrb[20].mxu0  ;;  %v590_v29 = vadd.f32 %v873_v23, %v502_v25 }
 0x11f   :  { %v817_v30 = vpop.f32.mrb[21].mxu0  ;;  %v874_v31 = vpop.f32.mrb[20].mxu1 }
 0x120   :  { %v818_v32 = vadd.f32 %v817_v30, %v816_v28  ;;  %v819_v33 = vpop.f32.mrb[22].mxu0  ;;  %v875_v34 = vpop.f32.mrb[21].mxu1 }
 0x121   :  { %v820_v35 = vpop.f32.mrb[23].mxu0  ;;  %v876_v36 = vadd.f32 %v875_v34, %v874_v31  ;;  %v877_v37 = vpop.f32.mrb[22].mxu1 }
 0x122   :  { %v507_v38 = vadd.f32 %v818_v32, %v1336_v11  ;;  %v821_v40 = vadd.f32 %v820_v35, %v819_v33  ;;  %v878_v42 = vpop.f32.mrb[23].mxu1 }
 0x123   :  { %v879_v44 = vadd.f32 %v878_v42, %v877_v37 }
 0x124   :  { %v510_v45 = vadd.f32 %v821_v40, %v1336_v11  ;;  %v595_v46 = vadd.f32 %v876_v36, %v507_v38 }
 0x126   :  { %v822_v47 = vpop.f32.mrb[24].mxu0  ;;  %v598_v48 = vadd.f32 %v879_v44, %v510_v45 }
 0x127   :  { %v823_v49 = vpop.f32.mrb[25].mxu0  ;;  %v880_v50 = vpop.f32.mrb[24].mxu1 }
 0x128   :  { %v824_v51 = vadd.f32 %v823_v49, %v822_v47  ;;  %v825_v52 = vpop.f32.mrb[26].mxu0  ;;  %v881_v53 = vpop.f32.mrb[25].mxu1 }
 0x129   :  { %v826_v54 = vpop.f32.mrb[27].mxu0  ;;  %v882_v55 = vadd.f32 %v881_v53, %v880_v50  ;;  %v883_v56 = vpop.f32.mrb[26].mxu1 }
 0x12a   :  { %v515_v58 = vadd.f32 %v824_v51, %v1336_v11  ;;  %v884_v60 = vpop.f32.mrb[27].mxu1 }
 0x12c   :  { %v603_v61 = vadd.f32 %v882_v55, %v515_v58 }
 0x12e   :  { %v642_v62 = vpop.f32.mrb[28].mxu0 }
 0x12f   :  { %v643_v63 = vadd.f32 %v642_v62, %v1340_v24  ;;  %v674_v0 = vpop.f32.mrb[28].mxu1  ;;  %v907_v1 = vpop.f32.mrb[29].mxu0 }
 0x130   :  { %v675_v2 = vadd.f32 %v674_v0, %v587_v27  ;;  %v923_v3 = vpop.f32.mrb[29].mxu1  ;;  %v645_v4 = vpop.f32.mrb[30].mxu0 }
 0x131   :  { %v696_v5 = vmax.f32 %v643_v63, 0.0  ;;  %v646_v6 = vadd.f32 %v645_v4, %v1342_v26  ;;  %v677_v7 = vpop.f32.mrb[30].mxu1  ;;  %v908_v8 = vpop.f32.mrb[31].mxu0 }
 0x132   :  { %v704_v10 = vmax.f32 %v675_v2, 0.0  ;;  %v678_v13 = vadd.f32 %v677_v7, %v590_v29  ;;  %v924_v39 = vpop.f32.mrb[31].mxu1 }
 0x133   :  { %709 = vst [vmem:[%s1417_s3] sm:$0xff] %v696_v5  ;;  %v697_v11 = vmax.f32 %v646_v6, 0.0 }
 0x134   :  { %717 = vst [vmem:[%s1417_s3 + $0x40] sm:$0xff] %v704_v10  ;;  %v705_v24 = vmax.f32 %v678_v13, 0.0 }
 0x135   :  { %710 = vst [vmem:[%s1417_s3 + $0x8] sm:$0xff] %v697_v11 }
 0x136   :  { %718 = vst [vmem:[%s1417_s3 + $0x48] sm:$0xff] %v705_v24  ;;  %v650_v26 = vpop.f32.mrb[32].mxu0 }
 0x137   :  { %v651_v14 = vadd.f32 %v650_v26, %v1346_v41  ;;  %v682_v15 = vpop.f32.mrb[32].mxu1  ;;  %v911_v16 = vpop.f32.mrb[33].mxu0 }
 0x138   :  { %v683_v17 = vadd.f32 %v682_v15, %v595_v46  ;;  %v927_v18 = vpop.f32.mrb[33].mxu1  ;;  %v653_v19 = vpop.f32.mrb[34].mxu0 }
 0x139   :  { %v698_v20 = vmax.f32 %v651_v14, 0.0  ;;  %v654_v21 = vadd.f32 %v653_v19, %v1348_v43  ;;  %v685_v22 = vpop.f32.mrb[34].mxu1  ;;  %v912_v23 = vpop.f32.mrb[35].mxu0 }
 0x13a   :  { %v706_v25 = vmax.f32 %v683_v17, 0.0  ;;  %v686_v27 = vadd.f32 %v685_v22, %v598_v48  ;;  %v928_v28 = vpop.f32.mrb[35].mxu1 }
 0x13b   :  { %711 = vst [vmem:[%s1417_s3 + $0x10] sm:$0xff] %v698_v20  ;;  %v699_v29 = vmax.f32 %v654_v21, 0.0 }
 0x13c   :  { %719 = vst [vmem:[%s1417_s3 + $0x50] sm:$0xff] %v706_v25  ;;  %v707_v41 = vmax.f32 %v686_v27, 0.0 }
 0x13d   :  { %712 = vst [vmem:[%s1417_s3 + $0x18] sm:$0xff] %v699_v29 }
 0x13e   :  { %720 = vst [vmem:[%s1417_s3 + $0x58] sm:$0xff] %v707_v41  ;;  %v658_v43 = vpop.f32.mrb[36].mxu0 }
 0x13f   :  { %v659_v30 = vadd.f32 %v658_v43, %v1352_v57  ;;  %v690_v31 = vpop.f32.mrb[36].mxu1  ;;  %v915_v32 = vpop.f32.mrb[37].mxu0 }
 0x140   :  { %v691_v33 = vadd.f32 %v690_v31, %v603_v61  ;;  %v661_v34 = vpop.f32.mrb[38].mxu0  ;;  %v931_v35 = vpop.f32.mrb[37].mxu1 }
 0x141   :  { %v700_v36 = vmax.f32 %v659_v30, 0.0  ;;  %v662_v37 = vadd.f32 %v661_v34, %v1354_v59  ;;  %v916_v38 = vpop.f32.mrb[39].mxu0  ;;  %v693_v40 = vpop.f32.mrb[38].mxu1 }
 0x142   :  { %v708_v42 = vmax.f32 %v691_v33, 0.0  ;;  %v932_v44 = vpop.f32.mrb[39].mxu1 }
 0x143   :  { %713 = vst [vmem:[%s1417_s3 + $0x20] sm:$0xff] %v700_v36  ;;  %v701_v45 = vmax.f32 %v662_v37, 0.0 }
 0x144   :  { %721 = vst [vmem:[%s1417_s3 + $0x60] sm:$0x3] %v708_v42 }
 0x145   :  { %714 = vst [vmem:[%s1417_s3 + $0x28] sm:$0xff] %v701_v45 }
 0x146   :  { %v666_v57 = vpop.f32.mrb[40].mxu0 }
 0x147   :  { %v667_v59 = vadd.f32 %v666_v57, %v1358_v9  ;;  %v919_v46 = vpop.f32.mrb[41].mxu0 }
 0x148   :  { %v669_v47 = vpop.f32.mrb[42].mxu0 }
 0x149   :  { %v702_v48 = vmax.f32 %v667_v59, 0.0  ;;  %v670_v49 = vadd.f32 %v669_v47, %v1360_v12  ;;  %v920_v50 = vpop.f32.mrb[43].mxu0 }
 0x14b   :  { %715 = vst [vmem:[%s1417_s3 + $0x30] sm:$0xff] %v702_v48  ;;  %v703_v51 = vmax.f32 %v670_v49, 0.0 }
 0x14d   :  { %716 = vst [vmem:[%s1417_s3 + $0x38] sm:$0xff] %v703_v51 }

// kernel: policy_conv_net_forward.7
= control target key start
LH: loop header
LB: loop body
LE: loop exit
PB: predicated region body
PF: predicated region fallthrough
CT: control target
= control target key end

     0   :  { %12 = vsyncpa [#allocation3], 0  ;;  %v8643_v36 = vmov 1983009808   ;;  %v43_v38 = vlaneseq  ;;  %s11298_s0 = inlined_call_operand.vmem [shape: f32[2,3136], index: 0, kind: input, shape index: {}]   ;;  %s11299_s1 = inlined_call_operand.vmem [shape: bf16[3136,512], index: 1, kind: input, shape index: {}]   ;;  %s11300_s2 = inlined_call_operand.vmem [shape: f32[1,512], index: 2, kind: input, shape index: {}]   ;;  %s11301_s3 = inlined_call_operand.vmem [shape: bf16[512,2], index: 3, kind: input, shape index: {}]   ;;  %s11302_s4 = inlined_call_operand.vmem [shape: f32[1,2], index: 4, kind: input, shape index: {}]   ;;  %s11303_s5 = inlined_call_operand.hbm [shape: f32[2,512], index: 5, kind: output, shape index: {0}]   ;;  %s11304_s6 = inlined_call_operand.hbm [shape: f32[2,2], index: 6, kind: output, shape index: {1}]  }
   0x1   :  { %v7377_v0 = vld [vmem:[%s11299_s1 + $0x4] ss:$16 sps:$4 sm:$0xff]   ;;  %v7379_v1 = vld [vmem:[%s11299_s1 + $0xc] ss:$16 sps:$4 sm:$0xff]   ;;  %v7381_v2 = vld [vmem:[%s11299_s1] ss:$16 sps:$4 sm:$0xff]   ;;  %v41_v37 = vunpack.c.l.s4 %v8643_v36 }
   0x2   :  { %4928 = vmatprep.subr.bf16.mxu0 %v7377_v0  ;;  %v7382_v3 = vld [vmem:[%s11299_s1 + $0x8] ss:$16 sps:$4 sm:$0xff]   ;;  %5461 = vmatprep.subr.bf16.mxu1 %v7379_v1  ;;  %v7383_v4 = vld [vmem:[%s11299_s1 + $0x24] ss:$16 sps:$4 sm:$0xff]   ;;  %v7385_v5 = vld [vmem:[%s11299_s1 + $0x2c] ss:$16 sps:$4 sm:$0xff]  }
   0x3   :  { %4929 = vmatpush1.bf16.msra.mxu0 %v7381_v2  ;;  %5462 = vmatpush1.bf16.msra.mxu1 %v7382_v3  ;;  %v7387_v6 = vld [vmem:[%s11299_s1 + $0x20] ss:$16 sps:$4 sm:$0xff]   ;;  %v7388_v7 = vld [vmem:[%s11299_s1 + $0x28] ss:$16 sps:$4 sm:$0xff]   ;;  %v7389_v8 = vld [vmem:[%s11299_s1 + $0x44] ss:$16 sps:$4 sm:$0xff]   ;;  %v42_v42 = vunpack.c.0.s8 %v41_v37 }
   0x4   :  { %4930 = vmatprep.subr.bf16.mxu0 %v7383_v4  ;;  %5463 = vmatprep.subr.bf16.mxu1 %v7385_v5  ;;  %v7391_v9 = vld [vmem:[%s11299_s1 + $0x4c] ss:$16 sps:$4 sm:$0xff]   ;;  %v7393_v10 = vld [vmem:[%s11299_s1 + $0x40] ss:$16 sps:$4 sm:$0xff]   ;;  %v7394_v11 = vld [vmem:[%s11299_s1 + $0x48] ss:$16 sps:$4 sm:$0xff]  }
   0x5   :  { %v7395_v12 = vld [vmem:[%s11299_s1 + $0x64] ss:$16 sps:$4 sm:$0xff]   ;;  %v7397_v13 = vld [vmem:[%s11299_s1 + $0x6c] ss:$16 sps:$4 sm:$0xff]   ;;  %v7399_v14 = vld [vmem:[%s11299_s1 + $0x60] ss:$16 sps:$4 sm:$0xff]  }
   0x6   :  { %v7400_v15 = vld [vmem:[%s11299_s1 + $0x68] ss:$16 sps:$4 sm:$0xff]   ;;  %v7401_v16 = vld [vmem:[%s11299_s1 + $0x84] ss:$16 sps:$4 sm:$0xff]   ;;  %v7403_v17 = vld [vmem:[%s11299_s1 + $0x8c] ss:$16 sps:$4 sm:$0xff]  }
   0x7   :  { %4931 = vmatpush1.bf16.msra.mxu0 %v7387_v6  ;;  %5464 = vmatpush1.bf16.msra.mxu1 %v7388_v7  ;;  %v7405_v18 = vld [vmem:[%s11299_s1 + $0x80] ss:$16 sps:$4 sm:$0xff]   ;;  %v7406_v19 = vld [vmem:[%s11299_s1 + $0x88] ss:$16 sps:$4 sm:$0xff]   ;;  %v7407_v20 = vld [vmem:[%s11299_s1 + $0xa4] ss:$16 sps:$4 sm:$0xff]  }
   0x8   :  { %4932 = vmatprep.subr.bf16.mxu0 %v7389_v8  ;;  %5465 = vmatprep.subr.bf16.mxu1 %v7391_v9  ;;  %v7409_v21 = vld [vmem:[%s11299_s1 + $0xac] ss:$16 sps:$4 sm:$0xff]   ;;  %v7411_v22 = vld [vmem:[%s11299_s1 + $0xa0] ss:$16 sps:$4 sm:$0xff]   ;;  %v7412_v23 = vld [vmem:[%s11299_s1 + $0xa8] ss:$16 sps:$4 sm:$0xff]  }
   0x9   :  { %v7413_v24 = vld [vmem:[%s11299_s1 + $0xc4] ss:$16 sps:$4 sm:$0xff]   ;;  %v7415_v25 = vld [vmem:[%s11299_s1 + $0xcc] ss:$16 sps:$4 sm:$0xff]   ;;  %v7417_v26 = vld [vmem:[%s11299_s1 + $0xc0] ss:$16 sps:$4 sm:$0xff]  }
   0xa   :  { %v7418_v27 = vld [vmem:[%s11299_s1 + $0xc8] ss:$16 sps:$4 sm:$0xff]   ;;  %v7419_v28 = vld [vmem:[%s11299_s1 + $0xe4] ss:$16 sps:$4 sm:$0xff]   ;;  %v7421_v29 = vld [vmem:[%s11299_s1 + $0xec] ss:$16 sps:$4 sm:$0xff]  }
   0xb   :  { %4933 = vmatpush1.bf16.msra.mxu0 %v7393_v10  ;;  %5466 = vmatpush1.bf16.msra.mxu1 %v7394_v11  ;;  %v7423_v30 = vld [vmem:[%s11299_s1 + $0xe0] ss:$16 sps:$4 sm:$0xff]   ;;  %v7424_v31 = vld [vmem:[%s11299_s1 + $0xe8] ss:$16 sps:$4 sm:$0xff]   ;;  %v7425_v32 = vld [vmem:[%s11299_s1 + $0x104] ss:$16 sps:$4 sm:$0xff]  }
   0xc   :  { %4934 = vmatprep.subr.bf16.mxu0 %v7395_v12  ;;  %5467 = vmatprep.subr.bf16.mxu1 %v7397_v13  ;;  %v7427_v33 = vld [vmem:[%s11299_s1 + $0x10c] ss:$16 sps:$4 sm:$0xff]   ;;  %v7429_v34 = vld [vmem:[%s11299_s1 + $0x100] ss:$16 sps:$4 sm:$0xff]   ;;  %v7430_v35 = vld [vmem:[%s11299_s1 + $0x108] ss:$16 sps:$4 sm:$0xff]  }
   0xd   :  { %v7431_v39 = vld [vmem:[%s11299_s1 + $0x124] ss:$16 sps:$4 sm:$0xff]   ;;  %v7433_v40 = vld [vmem:[%s11299_s1 + $0x12c] ss:$16 sps:$4 sm:$0xff]   ;;  %v7435_v41 = vld [vmem:[%s11299_s1 + $0x120] ss:$16 sps:$4 sm:$0xff]  }
   0xe   :  { %v8799_v43 = vshrl.u32 %v43_v38, 7  ;;  %v7436_v44 = vld [vmem:[%s11299_s1 + $0x128] ss:$16 sps:$4 sm:$0xff]   ;;  %v7437_v45 = vld [vmem:[%s11299_s1 + $0x144] ss:$16 sps:$4 sm:$0xff]  }
   0xf   :  { %4935 = vmatpush1.bf16.msra.mxu0 %v7399_v14  ;;  %5468 = vmatpush1.bf16.msra.mxu1 %v7400_v15  ;;  %v7439_v46 = vld [vmem:[%s11299_s1 + $0x14c] ss:$16 sps:$4 sm:$0xff]   ;;  %v7441_v47 = vld [vmem:[%s11299_s1 + $0x140] ss:$16 sps:$4 sm:$0xff]   ;;  %v7442_v48 = vld [vmem:[%s11299_s1 + $0x148] ss:$16 sps:$4 sm:$0xff]  }
  0x10   :  { %4936 = vmatprep.subr.bf16.mxu0 %v7401_v16  ;;  %5469 = vmatprep.subr.bf16.mxu1 %v7403_v17  ;;  %v8817_v49 = vsub.s32 %v42_v42, %v8799_v43  ;;  %v7443_v50 = vld [vmem:[%s11299_s1 + $0x164] ss:$16 sps:$4 sm:$0xff]   ;;  %v7445_v51 = vld [vmem:[%s11299_s1 + $0x16c] ss:$16 sps:$4 sm:$0xff]   ;;  %v7447_v53 = vld [vmem:[%s11299_s1 + $0x160] ss:$16 sps:$4 sm:$0xff]  }
  0x11   :  { %v25_v52 = vld [vmem:[%s11298_s0] sm:$0xff]  ;;  %v7448_v55 = vld [vmem:[%s11299_s1 + $0x168] ss:$16 sps:$4 sm:$0xff]   ;;  %v7451_v57 = vld [vmem:[%s11299_s1 + $0x18c] ss:$16 sps:$4 sm:$0xff]  }
  0x12   :  { %v46_v54 = vrot.slane %v25_v52, %v8817_v49  ;;  %v7449_v56 = vld [vmem:[%s11299_s1 + $0x184] ss:$16 sps:$4 sm:$0xff]   ;;  %v7453_v59 = vld [vmem:[%s11299_s1 + $0x180] ss:$16 sps:$4 sm:$0xff]   ;;  %v7454_v61 = vld [vmem:[%s11299_s1 + $0x188] ss:$16 sps:$4 sm:$0xff]   ;;  %v39_v4 = vcombine.high %v25_v52, %v25_v52 }
  0x13   :  { %4937 = vmatpush1.bf16.msra.mxu0 %v7405_v18  ;;  %5470 = vmatpush1.bf16.msra.mxu1 %v7406_v19  ;;  %v7455_v62 = vld [vmem:[%s11299_s1 + $0x1a4] ss:$16 sps:$4 sm:$0xff]   ;;  %v7457_v63 = vld [vmem:[%s11299_s1 + $0x1ac] ss:$16 sps:$4 sm:$0xff]   ;;  %v7459_v0 = vld [vmem:[%s11299_s1 + $0x1a0] ss:$16 sps:$4 sm:$0xff]  }
  0x14   :  { %4938 = vmatprep.subr.bf16.mxu0 %v7407_v20  ;;  %5471 = vmatprep.subr.bf16.mxu1 %v7409_v21  ;;  %v54_v58 = vcombine.high %v46_v54, %v46_v54  ;;  %v7460_v1 = vld [vmem:[%s11299_s1 + $0x1a8] ss:$16 sps:$4 sm:$0xff]   ;;  %v7461_v2 = vld [vmem:[%s11299_s1 + $0x1c4] ss:$16 sps:$4 sm:$0xff]   ;;  %v7463_v3 = vld [vmem:[%s11299_s1 + $0x1cc] ss:$16 sps:$4 sm:$0xff]   ;;  %v8878_v9 = vrot.slane %v39_v4, %v8817_v49  ;;  %v173_v16 = vpack.c.bf16 %v46_v54, %v46_v54 }
  0x15   :  { %v7465_v5 = vld [vmem:[%s11299_s1 + $0x1c0] ss:$16 sps:$4 sm:$0xff]   ;;  %v7466_v6 = vld [vmem:[%s11299_s1 + $0x1c8] ss:$16 sps:$4 sm:$0xff]   ;;  %v7467_v7 = vld [vmem:[%s11299_s1 + $0x1e4] ss:$16 sps:$4 sm:$0xff]  }
  0x16   :  { %v174_v60 = vpack.c.bf16 %v54_v58, %v54_v58  ;;  %v7469_v8 = vld [vmem:[%s11299_s1 + $0x1ec] ss:$16 sps:$4 sm:$0xff]   ;;  %v7471_v10 = vld [vmem:[%s11299_s1 + $0x1e0] ss:$16 sps:$4 sm:$0xff]   ;;  %v7472_v11 = vld [vmem:[%s11299_s1 + $0x1e8] ss:$16 sps:$4 sm:$0xff]   ;;  %v55_v14 = vcombine.high %v8878_v9, %v8878_v9 }
  0x17   :  { %4939 = vmatpush1.bf16.msra.mxu0 %v7411_v22  ;;  %5472 = vmatpush1.bf16.msra.mxu1 %v7412_v23  ;;  %v7476_v12 = vld [vmem:[%s11299_s1 + $0x204] ss:$16 sps:$4 sm:$0xff]   ;;  %v7479_v13 = vld [vmem:[%s11299_s1 + $0x20c] ss:$16 sps:$4 sm:$0xff]   ;;  %v7474_v15 = vld [vmem:[%s11299_s1 + $0x200] ss:$16 sps:$4 sm:$0xff]  }
  0x18   :  { %4940 = vmatprep.subr.bf16.mxu0 %v7413_v24  ;;  %5473 = vmatprep.subr.bf16.mxu1 %v7415_v25  ;;  %v7477_v17 = vld [vmem:[%s11299_s1 + $0x208] ss:$16 sps:$4 sm:$0xff]   ;;  %v7482_v18 = vld [vmem:[%s11299_s1 + $0x224] ss:$16 sps:$4 sm:$0xff]   ;;  %v7485_v19 = vld [vmem:[%s11299_s1 + $0x22c] ss:$16 sps:$4 sm:$0xff]   ;;  %v176_v20 = vpack.c.bf16 %v55_v14, %v55_v14 }
  0x19   :  { %4960 = vmatprep.mubr.bf16.mxu0 %v174_v60  ;;  %5493 = vmatprep.mubr.bf16.mxu1 %v174_v60  ;;  %v7480_v21 = vld [vmem:[%s11299_s1 + $0x220] ss:$16 sps:$4 sm:$0xff]   ;;  %v7483_v22 = vld [vmem:[%s11299_s1 + $0x228] ss:$16 sps:$4 sm:$0xff]   ;;  %v7488_v23 = vld [vmem:[%s11299_s1 + $0x244] ss:$16 sps:$4 sm:$0xff]  }
  0x1a   :  { %v7491_v24 = vld [vmem:[%s11299_s1 + $0x24c] ss:$16 sps:$4 sm:$0xff]   ;;  %v7486_v25 = vld [vmem:[%s11299_s1 + $0x240] ss:$16 sps:$4 sm:$0xff]   ;;  %v7507_v38 = vld [vmem:[%s11299_s1 + $0x2a8] ss:$16 sps:$4 sm:$0xff]  }
  0x1b   :  { %4941 = vmatpush1.bf16.msra.mxu0 %v7417_v26  ;;  %5474 = vmatpush1.bf16.msra.mxu1 %v7418_v27  ;;  %v7489_v26 = vld [vmem:[%s11299_s1 + $0x248] ss:$16 sps:$4 sm:$0xff]   ;;  %v7494_v27 = vld [vmem:[%s11299_s1 + $0x264] ss:$16 sps:$4 sm:$0xff]   ;;  %v7509_v36 = vld [vmem:[%s11299_s1 + $0x2ac] ss:$16 sps:$4 sm:$0xff]  }
  0x1c   :  { %4942 = vmatprep.subr.bf16.mxu0 %v7419_v28  ;;  %5475 = vmatprep.subr.bf16.mxu1 %v7421_v29  ;;  %v7497_v28 = vld [vmem:[%s11299_s1 + $0x26c] ss:$16 sps:$4 sm:$0xff]   ;;  %v7492_v29 = vld [vmem:[%s11299_s1 + $0x260] ss:$16 sps:$4 sm:$0xff]   ;;  %v7513_v42 = vld [vmem:[%s11299_s1 + $0x2c8] ss:$16 sps:$4 sm:$0xff]  }
  0x1d   :  { %v7504_v37 = vld [vmem:[%s11299_s1 + $0x2a0] ss:$16 sps:$4 sm:$0xff]   ;;  %v7525_v52 = vld [vmem:[%s11299_s1 + $0x308] ss:$16 sps:$4 sm:$0xff]   ;;  %v7533_v54 = vld [vmem:[%s11299_s1 + $0x32c] ss:$16 sps:$4 sm:$0xff]  }
  0x1e   :  { %v7539_v58 = vld [vmem:[%s11299_s1 + $0x34c] ss:$16 sps:$4 sm:$0xff]   ;;  %v7537_v60 = vld [vmem:[%s11299_s1 + $0x348] ss:$16 sps:$4 sm:$0xff]   ;;  %v7566_v14 = vld [vmem:[%s11299_s1 + $0x3e4] ss:$16 sps:$4 sm:$0xff]  }
  0x1f   :  { %4943 = vmatpush1.bf16.msra.mxu0 %v7423_v30  ;;  %5476 = vmatpush1.bf16.msra.mxu1 %v7424_v31  ;;  %v7495_v30 = vld [vmem:[%s11299_s1 + $0x268] ss:$16 sps:$4 sm:$0xff]   ;;  %v7500_v31 = vld [vmem:[%s11299_s1 + $0x284] ss:$16 sps:$4 sm:$0xff]  }
  0x20   :  { %4944 = vmatprep.subr.bf16.mxu0 %v7425_v32  ;;  %5477 = vmatprep.subr.bf16.mxu1 %v7427_v33  ;;  %v7503_v32 = vld [vmem:[%s11299_s1 + $0x28c] ss:$16 sps:$4 sm:$0xff]   ;;  %v7498_v33 = vld [vmem:[%s11299_s1 + $0x280] ss:$16 sps:$4 sm:$0xff]   ;;  %v7549_v4 = vld [vmem:[%s11299_s1 + $0x388] ss:$16 sps:$4 sm:$0xff]  }
  0x23   :  { %4945 = vmatpush1.bf16.msra.mxu0 %v7429_v34  ;;  %5478 = vmatpush1.bf16.msra.mxu1 %v7430_v35  ;;  %v7501_v34 = vld [vmem:[%s11299_s1 + $0x288] ss:$16 sps:$4 sm:$0xff]   ;;  %v7506_v35 = vld [vmem:[%s11299_s1 + $0x2a4] ss:$16 sps:$4 sm:$0xff]  }
  0x24   :  { %4946 = vmatprep.subr.bf16.mxu0 %v7431_v39  ;;  %5479 = vmatprep.subr.bf16.mxu1 %v7433_v40  ;;  %v7512_v39 = vld [vmem:[%s11299_s1 + $0x2c4] ss:$16 sps:$4 sm:$0xff]   ;;  %v7515_v40 = vld [vmem:[%s11299_s1 + $0x2cc] ss:$16 sps:$4 sm:$0xff]  }
  0x27   :  { %4947 = vmatpush1.bf16.msra.mxu0 %v7435_v41  ;;  %5480 = vmatpush1.bf16.msra.mxu1 %v7436_v44  ;;  %v7510_v41 = vld [vmem:[%s11299_s1 + $0x2c0] ss:$16 sps:$4 sm:$0xff]   ;;  %v7518_v44 = vld [vmem:[%s11299_s1 + $0x2e4] ss:$16 sps:$4 sm:$0xff]  }
  0x28   :  { %4948 = vmatprep.subr.bf16.mxu0 %v7437_v45  ;;  %5481 = vmatprep.subr.bf16.mxu1 %v7439_v46  ;;  %v7521_v45 = vld [vmem:[%s11299_s1 + $0x2ec] ss:$16 sps:$4 sm:$0xff]   ;;  %v7516_v46 = vld [vmem:[%s11299_s1 + $0x2e0] ss:$16 sps:$4 sm:$0xff]  }
  0x2b   :  { %4949 = vmatpush1.bf16.msra.mxu0 %v7441_v47  ;;  %5482 = vmatpush1.bf16.msra.mxu1 %v7442_v48  ;;  %v7519_v47 = vld [vmem:[%s11299_s1 + $0x2e8] ss:$16 sps:$4 sm:$0xff]   ;;  %v7524_v48 = vld [vmem:[%s11299_s1 + $0x304] ss:$16 sps:$4 sm:$0xff]  }
  0x2c   :  { %4950 = vmatprep.subr.bf16.mxu0 %v7443_v50  ;;  %5483 = vmatprep.subr.bf16.mxu1 %v7445_v51  ;;  %v7527_v50 = vld [vmem:[%s11299_s1 + $0x30c] ss:$16 sps:$4 sm:$0xff]   ;;  %v7522_v51 = vld [vmem:[%s11299_s1 + $0x300] ss:$16 sps:$4 sm:$0xff]  }
  0x2f   :  { %4951 = vmatpush1.bf16.msra.mxu0 %v7447_v53  ;;  %5484 = vmatpush1.bf16.msra.mxu1 %v7448_v55  ;;  %v7530_v53 = vld [vmem:[%s11299_s1 + $0x324] ss:$16 sps:$4 sm:$0xff]   ;;  %v7528_v55 = vld [vmem:[%s11299_s1 + $0x320] ss:$16 sps:$4 sm:$0xff]  }
  0x30   :  { %4952 = vmatprep.subr.bf16.mxu0 %v7449_v56  ;;  %5485 = vmatprep.subr.bf16.mxu1 %v7451_v57  ;;  %v7531_v56 = vld [vmem:[%s11299_s1 + $0x328] ss:$16 sps:$4 sm:$0xff]   ;;  %v7536_v57 = vld [vmem:[%s11299_s1 + $0x344] ss:$16 sps:$4 sm:$0xff]  }
  0x33   :  { %4953 = vmatpush1.bf16.msra.mxu0 %v7453_v59  ;;  %5486 = vmatpush1.bf16.msra.mxu1 %v7454_v61  ;;  %v7534_v59 = vld [vmem:[%s11299_s1 + $0x340] ss:$16 sps:$4 sm:$0xff]   ;;  %v7542_v61 = vld [vmem:[%s11299_s1 + $0x364] ss:$16 sps:$4 sm:$0xff]  }
  0x34   :  { %4954 = vmatprep.subr.bf16.mxu0 %v7455_v62  ;;  %5487 = vmatprep.subr.bf16.mxu1 %v7457_v63  ;;  %v7545_v62 = vld [vmem:[%s11299_s1 + $0x36c] ss:$16 sps:$4 sm:$0xff]   ;;  %v7540_v63 = vld [vmem:[%s11299_s1 + $0x360] ss:$16 sps:$4 sm:$0xff]  }
  0x37   :  { %4955 = vmatpush1.bf16.msra.mxu0 %v7459_v0  ;;  %5488 = vmatpush1.bf16.msra.mxu1 %v7460_v1  ;;  %v7543_v0 = vld [vmem:[%s11299_s1 + $0x368] ss:$16 sps:$4 sm:$0xff]   ;;  %v7548_v1 = vld [vmem:[%s11299_s1 + $0x384] ss:$16 sps:$4 sm:$0xff]  }
  0x38   :  { %4956 = vmatprep.subr.bf16.mxu0 %v7461_v2  ;;  %5489 = vmatprep.subr.bf16.mxu1 %v7463_v3  ;;  %v7551_v2 = vld [vmem:[%s11299_s1 + $0x38c] ss:$16 sps:$4 sm:$0xff]   ;;  %v7546_v3 = vld [vmem:[%s11299_s1 + $0x380] ss:$16 sps:$4 sm:$0xff]  }
  0x3b   :  { %4957 = vmatpush1.bf16.msra.mxu0 %v7465_v5  ;;  %5490 = vmatpush1.bf16.msra.mxu1 %v7466_v6  ;;  %v7554_v5 = vld [vmem:[%s11299_s1 + $0x3a4] ss:$16 sps:$4 sm:$0xff]   ;;  %v7557_v6 = vld [vmem:[%s11299_s1 + $0x3ac] ss:$16 sps:$4 sm:$0xff]  }
  0x3c   :  { %4958 = vmatprep.subr.bf16.mxu0 %v7467_v7  ;;  %5491 = vmatprep.subr.bf16.mxu1 %v7469_v8  ;;  %v7552_v7 = vld [vmem:[%s11299_s1 + $0x3a0] ss:$16 sps:$4 sm:$0xff]   ;;  %v7555_v8 = vld [vmem:[%s11299_s1 + $0x3a8] ss:$16 sps:$4 sm:$0xff]  }
  0x3f   :  { %4959 = vmatpush1.bf16.msra.mxu0 %v7471_v10  ;;  %5492 = vmatpush1.bf16.msra.mxu1 %v7472_v11  ;;  %v7560_v10 = vld [vmem:[%s11299_s1 + $0x3c4] ss:$16 sps:$4 sm:$0xff]   ;;  %v7563_v11 = vld [vmem:[%s11299_s1 + $0x3cc] ss:$16 sps:$4 sm:$0xff]  }
  0x40   :  { %4969 = vmatprep.subr.bf16.mxu0 %v7476_v12  ;;  %5502 = vmatprep.subr.bf16.mxu1 %v7479_v13  ;;  %v7558_v12 = vld [vmem:[%s11299_s1 + $0x3c0] ss:$16 sps:$4 sm:$0xff]   ;;  %v7561_v13 = vld [vmem:[%s11299_s1 + $0x3c8] ss:$16 sps:$4 sm:$0xff]  }
  0x42   :  { %4961 = vmatmul.mubr.bf16.vlgmr.msra.gmra.mrb[0].mxu0 %v173_v16  ;;  %5494 = vmatmul.mubr.bf16.vlgmr.msra.gmra.mrb[0].mxu1 %v173_v16  ;;  %v7564_v16 = vld [vmem:[%s11299_s1 + $0x3e0] ss:$16 sps:$4 sm:$0xff]  }
  0x43   :  { %4970 = vmatpush1.bf16.msra.mxu0 %v7474_v15  ;;  %5503 = vmatpush1.bf16.msra.mxu1 %v7477_v17  ;;  %v7569_v15 = vld [vmem:[%s11299_s1 + $0x3ec] ss:$16 sps:$4 sm:$0xff]   ;;  %v7567_v17 = vld [vmem:[%s11299_s1 + $0x3e8] ss:$16 sps:$4 sm:$0xff]  }
  0x44   :  { %4971 = vmatprep.subr.bf16.mxu0 %v7482_v18  ;;  %5504 = vmatprep.subr.bf16.mxu1 %v7485_v19  ;;  %v7572_v18 = vld [vmem:[%s11299_s1 + $0x404] ss:$16 sps:$4 sm:$0xff]   ;;  %v7575_v19 = vld [vmem:[%s11299_s1 + $0x40c] ss:$16 sps:$4 sm:$0xff]  }
  0x45   :  { %5001 = vmatprep.mubr.bf16.mxu0 %v176_v20  ;;  %5534 = vmatprep.mubr.bf16.mxu1 %v176_v20  ;;  %v7570_v20 = vld [vmem:[%s11299_s1 + $0x400] ss:$16 sps:$4 sm:$0xff]  }
  0x47   :  { %4972 = vmatpush1.bf16.msra.mxu0 %v7480_v21  ;;  %5505 = vmatpush1.bf16.msra.mxu1 %v7483_v22  ;;  %v175_v21 = vpack.c.bf16 %v8878_v9, %v8878_v9  ;;  %v7573_v22 = vld [vmem:[%s11299_s1 + $0x408] ss:$16 sps:$4 sm:$0xff]   ;;  %v7581_v9 = vld [vmem:[%s11299_s1 + $0x42c] ss:$16 sps:$4 sm:$0xff]  }
  0x48   :  { %4973 = vmatprep.subr.bf16.mxu0 %v7488_v23  ;;  %5506 = vmatprep.subr.bf16.mxu1 %v7491_v24  ;;  %v9097_v23 = vld [vmem:[%s11298_s0 + $0x8] sm:$0xff]  ;;  %v7578_v24 = vld [vmem:[%s11299_s1 + $0x424] ss:$16 sps:$4 sm:$0xff]  }
  0x4b   :  { %4974 = vmatpush1.bf16.msra.mxu0 %v7486_v25  ;;  %5507 = vmatpush1.bf16.msra.mxu1 %v7489_v26  ;;  %v9107_v25 = vrot.slane %v9097_v23, %v8817_v49 }
  0x4c   :  { %4975 = vmatprep.subr.bf16.mxu0 %v7494_v27  ;;  %5508 = vmatprep.subr.bf16.mxu1 %v7497_v28  ;;  %v7576_v27 = vld [vmem:[%s11299_s1 + $0x420] ss:$16 sps:$4 sm:$0xff]   ;;  %v7579_v28 = vld [vmem:[%s11299_s1 + $0x428] ss:$16 sps:$4 sm:$0xff]  }
  0x4d   :  { %v71_v26 = vcombine.high %v9107_v25, %v9107_v25 }
  0x4f   :  { %4976 = vmatpush1.bf16.msra.mxu0 %v7492_v29  ;;  %5509 = vmatpush1.bf16.msra.mxu1 %v7495_v30  ;;  %v7584_v29 = vld [vmem:[%s11299_s1 + $0x444] ss:$16 sps:$4 sm:$0xff]   ;;  %v7587_v30 = vld [vmem:[%s11299_s1 + $0x44c] ss:$16 sps:$4 sm:$0xff]  }
  0x50   :  { %4977 = vmatprep.subr.bf16.mxu0 %v7500_v31  ;;  %5510 = vmatprep.subr.bf16.mxu1 %v7503_v32  ;;  %v178_v31 = vpack.c.bf16 %v71_v26, %v71_v26  ;;  %v7582_v32 = vld [vmem:[%s11299_s1 + $0x440] ss:$16 sps:$4 sm:$0xff]   ;;  %v7663_v26 = vld [vmem:[%s11299_s1 + $0x5e8] ss:$16 sps:$4 sm:$0xff]  }
  0x53   :  { %4978 = vmatpush1.bf16.msra.mxu0 %v7498_v33  ;;  %5511 = vmatpush1.bf16.msra.mxu1 %v7501_v34  ;;  %v7585_v33 = vld [vmem:[%s11299_s1 + $0x448] ss:$16 sps:$4 sm:$0xff]   ;;  %v7590_v34 = vld [vmem:[%s11299_s1 + $0x464] ss:$16 sps:$4 sm:$0xff]  }
  0x54   :  { %4979 = vmatprep.subr.bf16.mxu0 %v7506_v35  ;;  %5512 = vmatprep.subr.bf16.mxu1 %v7509_v36  ;;  %v7593_v35 = vld [vmem:[%s11299_s1 + $0x46c] ss:$16 sps:$4 sm:$0xff]   ;;  %v7588_v36 = vld [vmem:[%s11299_s1 + $0x460] ss:$16 sps:$4 sm:$0xff]  }
  0x57   :  { %4980 = vmatpush1.bf16.msra.mxu0 %v7504_v37  ;;  %5513 = vmatpush1.bf16.msra.mxu1 %v7507_v38  ;;  %v7591_v37 = vld [vmem:[%s11299_s1 + $0x468] ss:$16 sps:$4 sm:$0xff]   ;;  %v7596_v38 = vld [vmem:[%s11299_s1 + $0x484] ss:$16 sps:$4 sm:$0xff]  }
  0x58   :  { %4981 = vmatprep.subr.bf16.mxu0 %v7512_v39  ;;  %5514 = vmatprep.subr.bf16.mxu1 %v7515_v40  ;;  %v7599_v39 = vld [vmem:[%s11299_s1 + $0x48c] ss:$16 sps:$4 sm:$0xff]   ;;  %v7594_v40 = vld [vmem:[%s11299_s1 + $0x480] ss:$16 sps:$4 sm:$0xff]  }
  0x5b   :  { %4982 = vmatpush1.bf16.msra.mxu0 %v7510_v41  ;;  %5515 = vmatpush1.bf16.msra.mxu1 %v7513_v42  ;;  %v7597_v41 = vld [vmem:[%s11299_s1 + $0x488] ss:$16 sps:$4 sm:$0xff]   ;;  %v7602_v42 = vld [vmem:[%s11299_s1 + $0x4a4] ss:$16 sps:$4 sm:$0xff]  }
  0x5c   :  { %4983 = vmatprep.subr.bf16.mxu0 %v7518_v44  ;;  %5516 = vmatprep.subr.bf16.mxu1 %v7521_v45  ;;  %v7605_v44 = vld [vmem:[%s11299_s1 + $0x4ac] ss:$16 sps:$4 sm:$0xff]   ;;  %v7600_v45 = vld [vmem:[%s11299_s1 + $0x4a0] ss:$16 sps:$4 sm:$0xff]  }
  0x5f   :  { %4984 = vmatpush1.bf16.msra.mxu0 %v7516_v46  ;;  %5517 = vmatpush1.bf16.msra.mxu1 %v7519_v47  ;;  %v7603_v46 = vld [vmem:[%s11299_s1 + $0x4a8] ss:$16 sps:$4 sm:$0xff]   ;;  %v7608_v47 = vld [vmem:[%s11299_s1 + $0x4c4] ss:$16 sps:$4 sm:$0xff]  }
  0x60   :  { %4985 = vmatprep.subr.bf16.mxu0 %v7524_v48  ;;  %5518 = vmatprep.subr.bf16.mxu1 %v7527_v50  ;;  %v7611_v48 = vld [vmem:[%s11299_s1 + $0x4cc] ss:$16 sps:$4 sm:$0xff]   ;;  %v7606_v50 = vld [vmem:[%s11299_s1 + $0x4c0] ss:$16 sps:$4 sm:$0xff]  }
  0x63   :  { %4986 = vmatpush1.bf16.msra.mxu0 %v7522_v51  ;;  %5519 = vmatpush1.bf16.msra.mxu1 %v7525_v52  ;;  %v7609_v51 = vld [vmem:[%s11299_s1 + $0x4c8] ss:$16 sps:$4 sm:$0xff]   ;;  %v7614_v52 = vld [vmem:[%s11299_s1 + $0x4e4] ss:$16 sps:$4 sm:$0xff]  }
  0x64   :  { %4987 = vmatprep.subr.bf16.mxu0 %v7530_v53  ;;  %5520 = vmatprep.subr.bf16.mxu1 %v7533_v54  ;;  %v7617_v53 = vld [vmem:[%s11299_s1 + $0x4ec] ss:$16 sps:$4 sm:$0xff]   ;;  %v7612_v54 = vld [vmem:[%s11299_s1 + $0x4e0] ss:$16 sps:$4 sm:$0xff]  }
  0x67   :  { %4988 = vmatpush1.bf16.msra.mxu0 %v7528_v55  ;;  %5521 = vmatpush1.bf16.msra.mxu1 %v7531_v56  ;;  %v7615_v55 = vld [vmem:[%s11299_s1 + $0x4e8] ss:$16 sps:$4 sm:$0xff]   ;;  %v7620_v56 = vld [vmem:[%s11299_s1 + $0x504] ss:$16 sps:$4 sm:$0xff]  }
  0x68   :  { %4989 = vmatprep.subr.bf16.mxu0 %v7536_v57  ;;  %5522 = vmatprep.subr.bf16.mxu1 %v7539_v58  ;;  %v7623_v57 = vld [vmem:[%s11299_s1 + $0x50c] ss:$16 sps:$4 sm:$0xff]   ;;  %v7618_v58 = vld [vmem:[%s11299_s1 + $0x500] ss:$16 sps:$4 sm:$0xff]  }
  0x6b   :  { %4990 = vmatpush1.bf16.msra.mxu0 %v7534_v59  ;;  %5523 = vmatpush1.bf16.msra.mxu1 %v7537_v60  ;;  %v7621_v59 = vld [vmem:[%s11299_s1 + $0x508] ss:$16 sps:$4 sm:$0xff]   ;;  %v7626_v60 = vld [vmem:[%s11299_s1 + $0x524] ss:$16 sps:$4 sm:$0xff]  }
  0x6c   :  { %4991 = vmatprep.subr.bf16.mxu0 %v7542_v61  ;;  %5524 = vmatprep.subr.bf16.mxu1 %v7545_v62  ;;  %v7629_v61 = vld [vmem:[%s11299_s1 + $0x52c] ss:$16 sps:$4 sm:$0xff]   ;;  %v7624_v62 = vld [vmem:[%s11299_s1 + $0x520] ss:$16 sps:$4 sm:$0xff]  }
  0x6f   :  { %4992 = vmatpush1.bf16.msra.mxu0 %v7540_v63  ;;  %5525 = vmatpush1.bf16.msra.mxu1 %v7543_v0  ;;  %v7627_v63 = vld [vmem:[%s11299_s1 + $0x528] ss:$16 sps:$4 sm:$0xff]   ;;  %v7632_v0 = vld [vmem:[%s11299_s1 + $0x544] ss:$16 sps:$4 sm:$0xff]  }
  0x70   :  { %4993 = vmatprep.subr.bf16.mxu0 %v7548_v1  ;;  %5526 = vmatprep.subr.bf16.mxu1 %v7551_v2  ;;  %v7635_v1 = vld [vmem:[%s11299_s1 + $0x54c] ss:$16 sps:$4 sm:$0xff]   ;;  %v7630_v2 = vld [vmem:[%s11299_s1 + $0x540] ss:$16 sps:$4 sm:$0xff]  }
  0x73   :  { %4994 = vmatpush1.bf16.msra.mxu0 %v7546_v3  ;;  %5527 = vmatpush1.bf16.msra.mxu1 %v7549_v4  ;;  %v7633_v3 = vld [vmem:[%s11299_s1 + $0x548] ss:$16 sps:$4 sm:$0xff]   ;;  %v7638_v4 = vld [vmem:[%s11299_s1 + $0x564] ss:$16 sps:$4 sm:$0xff]  }
  0x74   :  { %4995 = vmatprep.subr.bf16.mxu0 %v7554_v5  ;;  %5528 = vmatprep.subr.bf16.mxu1 %v7557_v6  ;;  %v7641_v5 = vld [vmem:[%s11299_s1 + $0x56c] ss:$16 sps:$4 sm:$0xff]   ;;  %v7636_v6 = vld [vmem:[%s11299_s1 + $0x560] ss:$16 sps:$4 sm:$0xff]  }
  0x77   :  { %4996 = vmatpush1.bf16.msra.mxu0 %v7552_v7  ;;  %5529 = vmatpush1.bf16.msra.mxu1 %v7555_v8  ;;  %v7639_v7 = vld [vmem:[%s11299_s1 + $0x568] ss:$16 sps:$4 sm:$0xff]   ;;  %v7644_v8 = vld [vmem:[%s11299_s1 + $0x584] ss:$16 sps:$4 sm:$0xff]  }
  0x78   :  { %4997 = vmatprep.subr.bf16.mxu0 %v7560_v10  ;;  %5530 = vmatprep.subr.bf16.mxu1 %v7563_v11  ;;  %v7647_v10 = vld [vmem:[%s11299_s1 + $0x58c] ss:$16 sps:$4 sm:$0xff]   ;;  %v7642_v11 = vld [vmem:[%s11299_s1 + $0x580] ss:$16 sps:$4 sm:$0xff]  }
  0x7b   :  { %4998 = vmatpush1.bf16.msra.mxu0 %v7558_v12  ;;  %5531 = vmatpush1.bf16.msra.mxu1 %v7561_v13  ;;  %v7645_v12 = vld [vmem:[%s11299_s1 + $0x588] ss:$16 sps:$4 sm:$0xff]   ;;  %v7650_v13 = vld [vmem:[%s11299_s1 + $0x5a4] ss:$16 sps:$4 sm:$0xff]  }
  0x7c   :  { %4999 = vmatprep.subr.bf16.mxu0 %v7566_v14  ;;  %5532 = vmatprep.subr.bf16.mxu1 %v7569_v15  ;;  %v7653_v14 = vld [vmem:[%s11299_s1 + $0x5ac] ss:$16 sps:$4 sm:$0xff]   ;;  %v7648_v15 = vld [vmem:[%s11299_s1 + $0x5a0] ss:$16 sps:$4 sm:$0xff]  }
  0x7f   :  { %5000 = vmatpush1.bf16.msra.mxu0 %v7564_v16  ;;  %5533 = vmatpush1.bf16.msra.mxu1 %v7567_v17  ;;  %v7651_v16 = vld [vmem:[%s11299_s1 + $0x5a8] ss:$16 sps:$4 sm:$0xff]   ;;  %v7656_v17 = vld [vmem:[%s11299_s1 + $0x5c4] ss:$16 sps:$4 sm:$0xff]  }
  0x80   :  { %5010 = vmatprep.subr.bf16.mxu0 %v7572_v18  ;;  %5543 = vmatprep.subr.bf16.mxu1 %v7575_v19  ;;  %v7659_v18 = vld [vmem:[%s11299_s1 + $0x5cc] ss:$16 sps:$4 sm:$0xff]   ;;  %v56_v19 = vcombine.high %v9097_v23, %v9097_v23 }
  0x81   :  { %v7665_v23 = vld [vmem:[%s11299_s1 + $0x5ec] ss:$16 sps:$4 sm:$0xff]  }
  0x82   :  { %5002 = vmatmul.mubr.bf16.vlgmr.msra.gmra.mrb[0].mxu0 %v175_v21  ;;  %5535 = vmatmul.mubr.bf16.vlgmr.msra.gmra.mrb[0].mxu1 %v175_v21  ;;  %v7657_v21 = vld [vmem:[%s11299_s1 + $0x5c8] ss:$16 sps:$4 sm:$0xff]  }
  0x83   :  { %5011 = vmatpush1.bf16.msra.mxu0 %v7570_v20  ;;  %5544 = vmatpush1.bf16.msra.mxu1 %v7573_v22  ;;  %v7654_v20 = vld [vmem:[%s11299_s1 + $0x5c0] ss:$16 sps:$4 sm:$0xff]   ;;  %v7662_v22 = vld [vmem:[%s11299_s1 + $0x5e4] ss:$16 sps:$4 sm:$0xff]  }
  0x84   :  { %5012 = vmatprep.subr.bf16.mxu0 %v7578_v24  ;;  %5545 = vmatprep.subr.bf16.mxu1 %v7581_v9  ;;  %v9282_v24 = vrot.slane %v56_v19, %v8817_v49  ;;  %v7660_v9 = vld [vmem:[%s11299_s1 + $0x5e0] ss:$16 sps:$4 sm:$0xff]   ;;  %v7741_v19 = vld [vmem:[%s11299_s1 + $0x788] ss:$16 sps:$4 sm:$0xff]  }
  0x85   :  { %5042 = vmatprep.mubr.bf16.mxu0 %v178_v31  ;;  %5575 = vmatprep.mubr.bf16.mxu1 %v178_v31  ;;  %v7666_v31 = vld [vmem:[%s11299_s1 + $0x600] ss:$16 sps:$4 sm:$0xff]  }
  0x87   :  { %5013 = vmatpush1.bf16.msra.mxu0 %v7576_v27  ;;  %5546 = vmatpush1.bf16.msra.mxu1 %v7579_v28  ;;  %v7668_v27 = vld [vmem:[%s11299_s1 + $0x604] ss:$16 sps:$4 sm:$0xff]   ;;  %v7671_v28 = vld [vmem:[%s11299_s1 + $0x60c] ss:$16 sps:$4 sm:$0xff]  }
  0x88   :  { %5014 = vmatprep.subr.bf16.mxu0 %v7584_v29  ;;  %5547 = vmatprep.subr.bf16.mxu1 %v7587_v30  ;;  %v72_v29 = vcombine.high %v9282_v24, %v9282_v24  ;;  %v177_v30 = vpack.c.bf16 %v9107_v25, %v9107_v25  ;;  %v7677_v25 = vld [vmem:[%s11299_s1 + $0x62c] ss:$16 sps:$4 sm:$0xff]  }
  0x8b   :  { %5015 = vmatpush1.bf16.msra.mxu0 %v7582_v32  ;;  %5548 = vmatpush1.bf16.msra.mxu1 %v7585_v33  ;;  %v7669_v32 = vld [vmem:[%s11299_s1 + $0x608] ss:$16 sps:$4 sm:$0xff]   ;;  %v7674_v33 = vld [vmem:[%s11299_s1 + $0x624] ss:$16 sps:$4 sm:$0xff]  }
  0x8c   :  { %5016 = vmatprep.subr.bf16.mxu0 %v7590_v34  ;;  %5549 = vmatprep.subr.bf16.mxu1 %v7593_v35  ;;  %v180_v34 = vpack.c.bf16 %v72_v29, %v72_v29  ;;  %v7672_v35 = vld [vmem:[%s11299_s1 + $0x620] ss:$16 sps:$4 sm:$0xff]   ;;  %v7753_v29 = vld [vmem:[%s11299_s1 + $0x7c8] ss:$16 sps:$4 sm:$0xff]  }
  0x8f   :  { %5017 = vmatpush1.bf16.msra.mxu0 %v7588_v36  ;;  %5550 = vmatpush1.bf16.msra.mxu1 %v7591_v37  ;;  %v7675_v36 = vld [vmem:[%s11299_s1 + $0x628] ss:$16 sps:$4 sm:$0xff]   ;;  %v7680_v37 = vld [vmem:[%s11299_s1 + $0x644] ss:$16 sps:$4 sm:$0xff]  }
  0x90   :  { %5018 = vmatprep.subr.bf16.mxu0 %v7596_v38  ;;  %5551 = vmatprep.subr.bf16.mxu1 %v7599_v39  ;;  %v7683_v38 = vld [vmem:[%s11299_s1 + $0x64c] ss:$16 sps:$4 sm:$0xff]   ;;  %v7678_v39 = vld [vmem:[%s11299_s1 + $0x640] ss:$16 sps:$4 sm:$0xff]  }
  0x93   :  { %5019 = vmatpush1.bf16.msra.mxu0 %v7594_v40  ;;  %5552 = vmatpush1.bf16.msra.mxu1 %v7597_v41  ;;  %v7681_v40 = vld [vmem:[%s11299_s1 + $0x648] ss:$16 sps:$4 sm:$0xff]   ;;  %v7686_v41 = vld [vmem:[%s11299_s1 + $0x664] ss:$16 sps:$4 sm:$0xff]  }
  0x94   :  { %5020 = vmatprep.subr.bf16.mxu0 %v7602_v42  ;;  %5553 = vmatprep.subr.bf16.mxu1 %v7605_v44  ;;  %v7689_v42 = vld [vmem:[%s11299_s1 + $0x66c] ss:$16 sps:$4 sm:$0xff]   ;;  %v7684_v44 = vld [vmem:[%s11299_s1 + $0x660] ss:$16 sps:$4 sm:$0xff]  }
  0x97   :  { %5021 = vmatpush1.bf16.msra.mxu0 %v7600_v45  ;;  %5554 = vmatpush1.bf16.msra.mxu1 %v7603_v46  ;;  %v7687_v45 = vld [vmem:[%s11299_s1 + $0x668] ss:$16 sps:$4 sm:$0xff]   ;;  %v7692_v46 = vld [vmem:[%s11299_s1 + $0x684] ss:$16 sps:$4 sm:$0xff]  }
  0x98   :  { %5022 = vmatprep.subr.bf16.mxu0 %v7608_v47  ;;  %5555 = vmatprep.subr.bf16.mxu1 %v7611_v48  ;;  %v7695_v47 = vld [vmem:[%s11299_s1 + $0x68c] ss:$16 sps:$4 sm:$0xff]   ;;  %v7690_v48 = vld [vmem:[%s11299_s1 + $0x680] ss:$16 sps:$4 sm:$0xff]  }
  0x9b   :  { %5023 = vmatpush1.bf16.msra.mxu0 %v7606_v50  ;;  %5556 = vmatpush1.bf16.msra.mxu1 %v7609_v51  ;;  %v7693_v50 = vld [vmem:[%s11299_s1 + $0x688] ss:$16 sps:$4 sm:$0xff]   ;;  %v7698_v51 = vld [vmem:[%s11299_s1 + $0x6a4] ss:$16 sps:$4 sm:$0xff]  }
  0x9c   :  { %5024 = vmatprep.subr.bf16.mxu0 %v7614_v52  ;;  %5557 = vmatprep.subr.bf16.mxu1 %v7617_v53  ;;  %v7701_v52 = vld [vmem:[%s11299_s1 + $0x6ac] ss:$16 sps:$4 sm:$0xff]   ;;  %v7696_v53 = vld [vmem:[%s11299_s1 + $0x6a0] ss:$16 sps:$4 sm:$0xff]  }
  0x9f   :  { %5025 = vmatpush1.bf16.msra.mxu0 %v7612_v54  ;;  %5558 = vmatpush1.bf16.msra.mxu1 %v7615_v55  ;;  %v7699_v54 = vld [vmem:[%s11299_s1 + $0x6a8] ss:$16 sps:$4 sm:$0xff]   ;;  %v7704_v55 = vld [vmem:[%s11299_s1 + $0x6c4] ss:$16 sps:$4 sm:$0xff]  }
  0xa0   :  { %5026 = vmatprep.subr.bf16.mxu0 %v7620_v56  ;;  %5559 = vmatprep.subr.bf16.mxu1 %v7623_v57  ;;  %v7707_v56 = vld [vmem:[%s11299_s1 + $0x6cc] ss:$16 sps:$4 sm:$0xff]   ;;  %v7702_v57 = vld [vmem:[%s11299_s1 + $0x6c0] ss:$16 sps:$4 sm:$0xff]  }
  0xa3   :  { %5027 = vmatpush1.bf16.msra.mxu0 %v7618_v58  ;;  %5560 = vmatpush1.bf16.msra.mxu1 %v7621_v59  ;;  %v7705_v58 = vld [vmem:[%s11299_s1 + $0x6c8] ss:$16 sps:$4 sm:$0xff]   ;;  %v7710_v59 = vld [vmem:[%s11299_s1 + $0x6e4] ss:$16 sps:$4 sm:$0xff]  }
  0xa4   :  { %5028 = vmatprep.subr.bf16.mxu0 %v7626_v60  ;;  %5561 = vmatprep.subr.bf16.mxu1 %v7629_v61  ;;  %v7713_v60 = vld [vmem:[%s11299_s1 + $0x6ec] ss:$16 sps:$4 sm:$0xff]   ;;  %v7708_v61 = vld [vmem:[%s11299_s1 + $0x6e0] ss:$16 sps:$4 sm:$0xff]  }
  0xa7   :  { %5029 = vmatpush1.bf16.msra.mxu0 %v7624_v62  ;;  %5562 = vmatpush1.bf16.msra.mxu1 %v7627_v63  ;;  %v7711_v62 = vld [vmem:[%s11299_s1 + $0x6e8] ss:$16 sps:$4 sm:$0xff]   ;;  %v7716_v63 = vld [vmem:[%s11299_s1 + $0x704] ss:$16 sps:$4 sm:$0xff]  }
  0xa8   :  { %5030 = vmatprep.subr.bf16.mxu0 %v7632_v0  ;;  %5563 = vmatprep.subr.bf16.mxu1 %v7635_v1  ;;  %v7719_v0 = vld [vmem:[%s11299_s1 + $0x70c] ss:$16 sps:$4 sm:$0xff]   ;;  %v7714_v1 = vld [vmem:[%s11299_s1 + $0x700] ss:$16 sps:$4 sm:$0xff]  }
  0xab   :  { %5031 = vmatpush1.bf16.msra.mxu0 %v7630_v2  ;;  %5564 = vmatpush1.bf16.msra.mxu1 %v7633_v3  ;;  %v7717_v2 = vld [vmem:[%s11299_s1 + $0x708] ss:$16 sps:$4 sm:$0xff]   ;;  %v7722_v3 = vld [vmem:[%s11299_s1 + $0x724] ss:$16 sps:$4 sm:$0xff]  }
  0xac   :  { %5032 = vmatprep.subr.bf16.mxu0 %v7638_v4  ;;  %5565 = vmatprep.subr.bf16.mxu1 %v7641_v5  ;;  %v7725_v4 = vld [vmem:[%s11299_s1 + $0x72c] ss:$16 sps:$4 sm:$0xff]   ;;  %v7720_v5 = vld [vmem:[%s11299_s1 + $0x720] ss:$16 sps:$4 sm:$0xff]  }
  0xaf   :  { %5033 = vmatpush1.bf16.msra.mxu0 %v7636_v6  ;;  %5566 = vmatpush1.bf16.msra.mxu1 %v7639_v7  ;;  %v7723_v6 = vld [vmem:[%s11299_s1 + $0x728] ss:$16 sps:$4 sm:$0xff]   ;;  %v7728_v7 = vld [vmem:[%s11299_s1 + $0x744] ss:$16 sps:$4 sm:$0xff]  }
  0xb0   :  { %5034 = vmatprep.subr.bf16.mxu0 %v7644_v8  ;;  %5567 = vmatprep.subr.bf16.mxu1 %v7647_v10  ;;  %v7731_v8 = vld [vmem:[%s11299_s1 + $0x74c] ss:$16 sps:$4 sm:$0xff]   ;;  %v7726_v10 = vld [vmem:[%s11299_s1 + $0x740] ss:$16 sps:$4 sm:$0xff]  }
  0xb3   :  { %5035 = vmatpush1.bf16.msra.mxu0 %v7642_v11  ;;  %5568 = vmatpush1.bf16.msra.mxu1 %v7645_v12  ;;  %v7729_v11 = vld [vmem:[%s11299_s1 + $0x748] ss:$16 sps:$4 sm:$0xff]   ;;  %v7734_v12 = vld [vmem:[%s11299_s1 + $0x764] ss:$16 sps:$4 sm:$0xff]  }
  0xb4   :  { %5036 = vmatprep.subr.bf16.mxu0 %v7650_v13  ;;  %5569 = vmatprep.subr.bf16.mxu1 %v7653_v14  ;;  %v7737_v13 = vld [vmem:[%s11299_s1 + $0x76c] ss:$16 sps:$4 sm:$0xff]   ;;  %v7732_v14 = vld [vmem:[%s11299_s1 + $0x760] ss:$16 sps:$4 sm:$0xff]  }
  0xb7   :  { %5037 = vmatpush1.bf16.msra.mxu0 %v7648_v15  ;;  %5570 = vmatpush1.bf16.msra.mxu1 %v7651_v16  ;;  %v7735_v15 = vld [vmem:[%s11299_s1 + $0x768] ss:$16 sps:$4 sm:$0xff]   ;;  %v7740_v16 = vld [vmem:[%s11299_s1 + $0x784] ss:$16 sps:$4 sm:$0xff]  }
  0xb8   :  { %5038 = vmatprep.subr.bf16.mxu0 %v7656_v17  ;;  %5571 = vmatprep.subr.bf16.mxu1 %v7659_v18  ;;  %v7743_v17 = vld [vmem:[%s11299_s1 + $0x78c] ss:$16 sps:$4 sm:$0xff]   ;;  %v7738_v18 = vld [vmem:[%s11299_s1 + $0x780] ss:$16 sps:$4 sm:$0xff]  }
  0xbb   :  { %5039 = vmatpush1.bf16.msra.mxu0 %v7654_v20  ;;  %5572 = vmatpush1.bf16.msra.mxu1 %v7657_v21  ;;  %v7746_v20 = vld [vmem:[%s11299_s1 + $0x7a4] ss:$16 sps:$4 sm:$0xff]   ;;  %v7749_v21 = vld [vmem:[%s11299_s1 + $0x7ac] ss:$16 sps:$4 sm:$0xff]  }
  0xbc   :  { %5040 = vmatprep.subr.bf16.mxu0 %v7662_v22  ;;  %5573 = vmatprep.subr.bf16.mxu1 %v7665_v23  ;;  %v7744_v22 = vld [vmem:[%s11299_s1 + $0x7a0] ss:$16 sps:$4 sm:$0xff]   ;;  %v7747_v23 = vld [vmem:[%s11299_s1 + $0x7a8] ss:$16 sps:$4 sm:$0xff]  }
  0xbf   :  { %5041 = vmatpush1.bf16.msra.mxu0 %v7660_v9  ;;  %5574 = vmatpush1.bf16.msra.mxu1 %v7663_v26  ;;  %v7752_v9 = vld [vmem:[%s11299_s1 + $0x7c4] ss:$16 sps:$4 sm:$0xff]   ;;  %v7755_v26 = vld [vmem:[%s11299_s1 + $0x7cc] ss:$16 sps:$4 sm:$0xff]  }
  0xc0   :  { %5051 = vmatprep.subr.bf16.mxu0 %v7668_v27  ;;  %5584 = vmatprep.subr.bf16.mxu1 %v7671_v28  ;;  %v7750_v27 = vld [vmem:[%s11299_s1 + $0x7c0] ss:$16 sps:$4 sm:$0xff]  }
  0xc1   :  { %v9474_v28 = vld [vmem:[%s11298_s0 + $0x10] sm:$0xff] }
  0xc2   :  { %5043 = vmatmul.mubr.bf16.vlgmr.msra.gmra.mrb[0].mxu0 %v177_v30  ;;  %5576 = vmatmul.mubr.bf16.vlgmr.msra.gmra.mrb[0].mxu1 %v177_v30  ;;  %v7758_v30 = vld [vmem:[%s11299_s1 + $0x7e4] ss:$16 sps:$4 sm:$0xff]  }
  0xc3   :  { %5052 = vmatpush1.bf16.msra.mxu0 %v7666_v31  ;;  %5585 = vmatpush1.bf16.msra.mxu1 %v7669_v32  ;;  %v7761_v31 = vld [vmem:[%s11299_s1 + $0x7ec] ss:$16 sps:$4 sm:$0xff]   ;;  %v9487_v32 = vrot.slane %v9474_v28, %v8817_v49 }
  0xc4   :  { %5053 = vmatprep.subr.bf16.mxu0 %v7674_v33  ;;  %5586 = vmatprep.subr.bf16.mxu1 %v7677_v25  ;;  %v7756_v33 = vld [vmem:[%s11299_s1 + $0x7e0] ss:$16 sps:$4 sm:$0xff]   ;;  %v7759_v25 = vld [vmem:[%s11299_s1 + $0x7e8] ss:$16 sps:$4 sm:$0xff]  }
  0xc5   :  { %5083 = vmatprep.mubr.bf16.mxu0 %v180_v34  ;;  %5616 = vmatprep.mubr.bf16.mxu1 %v180_v34  ;;  %v7765_v34 = vld [vmem:[%s11299_s1 + $0x804] ss:$16 sps:$4 sm:$0xff]  }
  0xc7   :  { %5054 = vmatpush1.bf16.msra.mxu0 %v7672_v35  ;;  %5587 = vmatpush1.bf16.msra.mxu1 %v7675_v36  ;;  %v7768_v35 = vld [vmem:[%s11299_s1 + $0x80c] ss:$16 sps:$4 sm:$0xff]   ;;  %v88_v36 = vcombine.high %v9487_v32, %v9487_v32 }
  0xc8   :  { %5055 = vmatprep.subr.bf16.mxu0 %v7680_v37  ;;  %5588 = vmatprep.subr.bf16.mxu1 %v7683_v38  ;;  %v7763_v37 = vld [vmem:[%s11299_s1 + $0x800] ss:$16 sps:$4 sm:$0xff]   ;;  %v179_v38 = vpack.c.bf16 %v9282_v24, %v9282_v24 }
  0xc9   :  { %v7769_v24 = vld [vmem:[%s11299_s1 + $0x820] ss:$16 sps:$4 sm:$0xff]  }
  0xcb   :  { %5056 = vmatpush1.bf16.msra.mxu0 %v7678_v39  ;;  %5589 = vmatpush1.bf16.msra.mxu1 %v7681_v40  ;;  %v7766_v39 = vld [vmem:[%s11299_s1 + $0x808] ss:$16 sps:$4 sm:$0xff]   ;;  %v7771_v40 = vld [vmem:[%s11299_s1 + $0x824] ss:$16 sps:$4 sm:$0xff]  }
  0xcc   :  { %5057 = vmatprep.subr.bf16.mxu0 %v7686_v41  ;;  %5590 = vmatprep.subr.bf16.mxu1 %v7689_v42  ;;  %v7774_v41 = vld [vmem:[%s11299_s1 + $0x82c] ss:$16 sps:$4 sm:$0xff]   ;;  %v182_v42 = vpack.c.bf16 %v88_v36, %v88_v36  ;;  %v7847_v36 = vld [vmem:[%s11299_s1 + $0x9c0] ss:$16 sps:$4 sm:$0xff]  }
  0xcf   :  { %5058 = vmatpush1.bf16.msra.mxu0 %v7684_v44  ;;  %5591 = vmatpush1.bf16.msra.mxu1 %v7687_v45  ;;  %v7772_v44 = vld [vmem:[%s11299_s1 + $0x828] ss:$16 sps:$4 sm:$0xff]   ;;  %v7777_v45 = vld [vmem:[%s11299_s1 + $0x844] ss:$16 sps:$4 sm:$0xff]  }
  0xd0   :  { %5059 = vmatprep.subr.bf16.mxu0 %v7692_v46  ;;  %5592 = vmatprep.subr.bf16.mxu1 %v7695_v47  ;;  %v7780_v46 = vld [vmem:[%s11299_s1 + $0x84c] ss:$16 sps:$4 sm:$0xff]   ;;  %v7775_v47 = vld [vmem:[%s11299_s1 + $0x840] ss:$16 sps:$4 sm:$0xff]  }
  0xd3   :  { %5060 = vmatpush1.bf16.msra.mxu0 %v7690_v48  ;;  %5593 = vmatpush1.bf16.msra.mxu1 %v7693_v50  ;;  %v7778_v48 = vld [vmem:[%s11299_s1 + $0x848] ss:$16 sps:$4 sm:$0xff]   ;;  %v7783_v50 = vld [vmem:[%s11299_s1 + $0x864] ss:$16 sps:$4 sm:$0xff]  }
  0xd4   :  { %5061 = vmatprep.subr.bf16.mxu0 %v7698_v51  ;;  %5594 = vmatprep.subr.bf16.mxu1 %v7701_v52  ;;  %v7786_v51 = vld [vmem:[%s11299_s1 + $0x86c] ss:$16 sps:$4 sm:$0xff]   ;;  %v7781_v52 = vld [vmem:[%s11299_s1 + $0x860] ss:$16 sps:$4 sm:$0xff]  }
  0xd7   :  { %5062 = vmatpush1.bf16.msra.mxu0 %v7696_v53  ;;  %5595 = vmatpush1.bf16.msra.mxu1 %v7699_v54  ;;  %v7784_v53 = vld [vmem:[%s11299_s1 + $0x868] ss:$16 sps:$4 sm:$0xff]   ;;  %v7789_v54 = vld [vmem:[%s11299_s1 + $0x884] ss:$16 sps:$4 sm:$0xff]  }
  0xd8   :  { %5063 = vmatprep.subr.bf16.mxu0 %v7704_v55  ;;  %5596 = vmatprep.subr.bf16.mxu1 %v7707_v56  ;;  %v7792_v55 = vld [vmem:[%s11299_s1 + $0x88c] ss:$16 sps:$4 sm:$0xff]   ;;  %v7787_v56 = vld [vmem:[%s11299_s1 + $0x880] ss:$16 sps:$4 sm:$0xff]  }
  0xdb   :  { %5064 = vmatpush1.bf16.msra.mxu0 %v7702_v57  ;;  %5597 = vmatpush1.bf16.msra.mxu1 %v7705_v58  ;;  %v7790_v57 = vld [vmem:[%s11299_s1 + $0x888] ss:$16 sps:$4 sm:$0xff]   ;;  %v7795_v58 = vld [vmem:[%s11299_s1 + $0x8a4] ss:$16 sps:$4 sm:$0xff]  }
  0xdc   :  { %5065 = vmatprep.subr.bf16.mxu0 %v7710_v59  ;;  %5598 = vmatprep.subr.bf16.mxu1 %v7713_v60  ;;  %v7798_v59 = vld [vmem:[%s11299_s1 + $0x8ac] ss:$16 sps:$4 sm:$0xff]   ;;  %v7793_v60 = vld [vmem:[%s11299_s1 + $0x8a0] ss:$16 sps:$4 sm:$0xff]  }
  0xdf   :  { %5066 = vmatpush1.bf16.msra.mxu0 %v7708_v61  ;;  %5599 = vmatpush1.bf16.msra.mxu1 %v7711_v62  ;;  %v7796_v61 = vld [vmem:[%s11299_s1 + $0x8a8] ss:$16 sps:$4 sm:$0xff]   ;;  %v7801_v62 = vld [vmem:[%s11299_s1 + $0x8c4] ss:$16 sps:$4 sm:$0xff]  }
  0xe0   :  { %5067 = vmatprep.subr.bf16.mxu0 %v7716_v63  ;;  %5600 = vmatprep.subr.bf16.mxu1 %v7719_v0  ;;  %v7804_v63 = vld [vmem:[%s11299_s1 + $0x8cc] ss:$16 sps:$4 sm:$0xff]   ;;  %v7799_v0 = vld [vmem:[%s11299_s1 + $0x8c0] ss:$16 sps:$4 sm:$0xff]  }
  0xe3   :  { %5068 = vmatpush1.bf16.msra.mxu0 %v7714_v1  ;;  %5601 = vmatpush1.bf16.msra.mxu1 %v7717_v2  ;;  %v7802_v1 = vld [vmem:[%s11299_s1 + $0x8c8] ss:$16 sps:$4 sm:$0xff]   ;;  %v7807_v2 = vld [vmem:[%s11299_s1 + $0x8e4] ss:$16 sps:$4 sm:$0xff]  }
  0xe4   :  { %5069 = vmatprep.subr.bf16.mxu0 %v7722_v3  ;;  %5602 = vmatprep.subr.bf16.mxu1 %v7725_v4  ;;  %v7810_v3 = vld [vmem:[%s11299_s1 + $0x8ec] ss:$16 sps:$4 sm:$0xff]   ;;  %v7805_v4 = vld [vmem:[%s11299_s1 + $0x8e0] ss:$16 sps:$4 sm:$0xff]  }
  0xe7   :  { %5070 = vmatpush1.bf16.msra.mxu0 %v7720_v5  ;;  %5603 = vmatpush1.bf16.msra.mxu1 %v7723_v6  ;;  %v7808_v5 = vld [vmem:[%s11299_s1 + $0x8e8] ss:$16 sps:$4 sm:$0xff]   ;;  %v7813_v6 = vld [vmem:[%s11299_s1 + $0x904] ss:$16 sps:$4 sm:$0xff]  }
  0xe8   :  { %5071 = vmatprep.subr.bf16.mxu0 %v7728_v7  ;;  %5604 = vmatprep.subr.bf16.mxu1 %v7731_v8  ;;  %v7816_v7 = vld [vmem:[%s11299_s1 + $0x90c] ss:$16 sps:$4 sm:$0xff]   ;;  %v7811_v8 = vld [vmem:[%s11299_s1 + $0x900] ss:$16 sps:$4 sm:$0xff]  }
  0xeb   :  { %5072 = vmatpush1.bf16.msra.mxu0 %v7726_v10  ;;  %5605 = vmatpush1.bf16.msra.mxu1 %v7729_v11  ;;  %v7814_v10 = vld [vmem:[%s11299_s1 + $0x908] ss:$16 sps:$4 sm:$0xff]   ;;  %v7819_v11 = vld [vmem:[%s11299_s1 + $0x924] ss:$16 sps:$4 sm:$0xff]  }
  0xec   :  { %5073 = vmatprep.subr.bf16.mxu0 %v7734_v12  ;;  %5606 = vmatprep.subr.bf16.mxu1 %v7737_v13  ;;  %v7822_v12 = vld [vmem:[%s11299_s1 + $0x92c] ss:$16 sps:$4 sm:$0xff]   ;;  %v7817_v13 = vld [vmem:[%s11299_s1 + $0x920] ss:$16 sps:$4 sm:$0xff]  }
  0xef   :  { %5074 = vmatpush1.bf16.msra.mxu0 %v7732_v14  ;;  %5607 = vmatpush1.bf16.msra.mxu1 %v7735_v15  ;;  %v7820_v14 = vld [vmem:[%s11299_s1 + $0x928] ss:$16 sps:$4 sm:$0xff]   ;;  %v7825_v15 = vld [vmem:[%s11299_s1 + $0x944] ss:$16 sps:$4 sm:$0xff]  }
  0xf0   :  { %5075 = vmatprep.subr.bf16.mxu0 %v7740_v16  ;;  %5608 = vmatprep.subr.bf16.mxu1 %v7743_v17  ;;  %v7828_v16 = vld [vmem:[%s11299_s1 + $0x94c] ss:$16 sps:$4 sm:$0xff]   ;;  %v7823_v17 = vld [vmem:[%s11299_s1 + $0x940] ss:$16 sps:$4 sm:$0xff]  }
  0xf3   :  { %5076 = vmatpush1.bf16.msra.mxu0 %v7738_v18  ;;  %5609 = vmatpush1.bf16.msra.mxu1 %v7741_v19  ;;  %v7826_v18 = vld [vmem:[%s11299_s1 + $0x948] ss:$16 sps:$4 sm:$0xff]   ;;  %v7831_v19 = vld [vmem:[%s11299_s1 + $0x964] ss:$16 sps:$4 sm:$0xff]  }
  0xf4   :  { %5077 = vmatprep.subr.bf16.mxu0 %v7746_v20  ;;  %5610 = vmatprep.subr.bf16.mxu1 %v7749_v21  ;;  %v7834_v20 = vld [vmem:[%s11299_s1 + $0x96c] ss:$16 sps:$4 sm:$0xff]   ;;  %v7829_v21 = vld [vmem:[%s11299_s1 + $0x960] ss:$16 sps:$4 sm:$0xff]  }
  0xf7   :  { %5078 = vmatpush1.bf16.msra.mxu0 %v7744_v22  ;;  %5611 = vmatpush1.bf16.msra.mxu1 %v7747_v23  ;;  %v7832_v22 = vld [vmem:[%s11299_s1 + $0x968] ss:$16 sps:$4 sm:$0xff]   ;;  %v7837_v23 = vld [vmem:[%s11299_s1 + $0x984] ss:$16 sps:$4 sm:$0xff]  }
  0xf8   :  { %5079 = vmatprep.subr.bf16.mxu0 %v7752_v9  ;;  %5612 = vmatprep.subr.bf16.mxu1 %v7755_v26  ;;  %v7840_v9 = vld [vmem:[%s11299_s1 + $0x98c] ss:$16 sps:$4 sm:$0xff]   ;;  %v7835_v26 = vld [vmem:[%s11299_s1 + $0x980] ss:$16 sps:$4 sm:$0xff]  }
  0xfb   :  { %5080 = vmatpush1.bf16.msra.mxu0 %v7750_v27  ;;  %5613 = vmatpush1.bf16.msra.mxu1 %v7753_v29  ;;  %v7838_v27 = vld [vmem:[%s11299_s1 + $0x988] ss:$16 sps:$4 sm:$0xff]   ;;  %v7843_v29 = vld [vmem:[%s11299_s1 + $0x9a4] ss:$16 sps:$4 sm:$0xff]  }
  0xfc   :  { %5081 = vmatprep.subr.bf16.mxu0 %v7758_v30  ;;  %5614 = vmatprep.subr.bf16.mxu1 %v7761_v31  ;;  %v7846_v30 = vld [vmem:[%s11299_s1 + $0x9ac] ss:$16 sps:$4 sm:$0xff]   ;;  %v7841_v31 = vld [vmem:[%s11299_s1 + $0x9a0] ss:$16 sps:$4 sm:$0xff]  }
  0xff   :  { %5082 = vmatpush1.bf16.msra.mxu0 %v7756_v33  ;;  %5615 = vmatpush1.bf16.msra.mxu1 %v7759_v25  ;;  %v7844_v33 = vld [vmem:[%s11299_s1 + $0x9a8] ss:$16 sps:$4 sm:$0xff]   ;;  %v7849_v25 = vld [vmem:[%s11299_s1 + $0x9c4] ss:$16 sps:$4 sm:$0xff]  }
 0x100   :  { %5092 = vmatprep.subr.bf16.mxu0 %v7765_v34  ;;  %5625 = vmatprep.subr.bf16.mxu1 %v7768_v35  ;;  %v7852_v34 = vld [vmem:[%s11299_s1 + $0x9cc] ss:$16 sps:$4 sm:$0xff]   ;;  %v73_v35 = vcombine.high %v9474_v28, %v9474_v28 }
 0x101   :  { %v7858_v28 = vld [vmem:[%s11299_s1 + $0x9ec] ss:$16 sps:$4 sm:$0xff]  }
 0x102   :  { %5084 = vmatmul.mubr.bf16.vlgmr.msra.gmra.mrb[0].mxu0 %v179_v38  ;;  %5617 = vmatmul.mubr.bf16.vlgmr.msra.gmra.mrb[0].mxu1 %v179_v38  ;;  %v7855_v38 = vld [vmem:[%s11299_s1 + $0x9e4] ss:$16 sps:$4 sm:$0xff]  }
 0x103   :  { %5093 = vmatpush1.bf16.msra.mxu0 %v7763_v37  ;;  %5626 = vmatpush1.bf16.msra.mxu1 %v7766_v39  ;;  %v7850_v37 = vld [vmem:[%s11299_s1 + $0x9c8] ss:$16 sps:$4 sm:$0xff]   ;;  %v9688_v39 = vrot.slane %v73_v35, %v8817_v49 }
 0x104   :  { %5094 = vmatprep.subr.bf16.mxu0 %v7771_v40  ;;  %5627 = vmatprep.subr.bf16.mxu1 %v7774_v41  ;;  %v7853_v40 = vld [vmem:[%s11299_s1 + $0x9e0] ss:$16 sps:$4 sm:$0xff]   ;;  %v7856_v41 = vld [vmem:[%s11299_s1 + $0x9e8] ss:$16 sps:$4 sm:$0xff]  }
 0x105   :  { %5124 = vmatprep.mubr.bf16.mxu0 %v182_v42  ;;  %5657 = vmatprep.mubr.bf16.mxu1 %v182_v42  ;;  %v7861_v42 = vld [vmem:[%s11299_s1 + $0xa04] ss:$16 sps:$4 sm:$0xff]   ;;  %v7934_v35 = vld [vmem:[%s11299_s1 + $0xb88] ss:$16 sps:$4 sm:$0xff]  }
 0x107   :  { %5095 = vmatpush1.bf16.msra.mxu0 %v7769_v24  ;;  %5628 = vmatpush1.bf16.msra.mxu1 %v7772_v44  ;;  %v7864_v24 = vld [vmem:[%s11299_s1 + $0xa0c] ss:$16 sps:$4 sm:$0xff]   ;;  %v89_v44 = vcombine.high %v9688_v39, %v9688_v39 }
 0x108   :  { %5096 = vmatprep.subr.bf16.mxu0 %v7777_v45  ;;  %5629 = vmatprep.subr.bf16.mxu1 %v7780_v46  ;;  %v181_v45 = vpack.c.bf16 %v9487_v32, %v9487_v32  ;;  %v7859_v46 = vld [vmem:[%s11299_s1 + $0xa00] ss:$16 sps:$4 sm:$0xff]   ;;  %v7870_v32 = vld [vmem:[%s11299_s1 + $0xa2c] ss:$16 sps:$4 sm:$0xff]  }
 0x10b   :  { %5097 = vmatpush1.bf16.msra.mxu0 %v7775_v47  ;;  %5630 = vmatpush1.bf16.msra.mxu1 %v7778_v48  ;;  %v7862_v47 = vld [vmem:[%s11299_s1 + $0xa08] ss:$16 sps:$4 sm:$0xff]   ;;  %v7867_v48 = vld [vmem:[%s11299_s1 + $0xa24] ss:$16 sps:$4 sm:$0xff]  }
 0x10c   :  { %5098 = vmatprep.subr.bf16.mxu0 %v7783_v50  ;;  %5631 = vmatprep.subr.bf16.mxu1 %v7786_v51  ;;  %v184_v50 = vpack.c.bf16 %v89_v44, %v89_v44  ;;  %v7865_v51 = vld [vmem:[%s11299_s1 + $0xa20] ss:$16 sps:$4 sm:$0xff]   ;;  %v7946_v44 = vld [vmem:[%s11299_s1 + $0xbc8] ss:$16 sps:$4 sm:$0xff]  }
 0x10f   :  { %5099 = vmatpush1.bf16.msra.mxu0 %v7781_v52  ;;  %5632 = vmatpush1.bf16.msra.mxu1 %v7784_v53  ;;  %v7868_v52 = vld [vmem:[%s11299_s1 + $0xa28] ss:$16 sps:$4 sm:$0xff]   ;;  %v7873_v53 = vld [vmem:[%s11299_s1 + $0xa44] ss:$16 sps:$4 sm:$0xff]  }
 0x110   :  { %5100 = vmatprep.subr.bf16.mxu0 %v7789_v54  ;;  %5633 = vmatprep.subr.bf16.mxu1 %v7792_v55  ;;  %v7876_v54 = vld [vmem:[%s11299_s1 + $0xa4c] ss:$16 sps:$4 sm:$0xff]   ;;  %v7871_v55 = vld [vmem:[%s11299_s1 + $0xa40] ss:$16 sps:$4 sm:$0xff]  }
 0x113   :  { %5101 = vmatpush1.bf16.msra.mxu0 %v7787_v56  ;;  %5634 = vmatpush1.bf16.msra.mxu1 %v7790_v57  ;;  %v7874_v56 = vld [vmem:[%s11299_s1 + $0xa48] ss:$16 sps:$4 sm:$0xff]   ;;  %v7879_v57 = vld [vmem:[%s11299_s1 + $0xa64] ss:$16 sps:$4 sm:$0xff]  }
 0x114   :  { %5102 = vmatprep.subr.bf16.mxu0 %v7795_v58  ;;  %5635 = vmatprep.subr.bf16.mxu1 %v7798_v59  ;;  %v7882_v58 = vld [vmem:[%s11299_s1 + $0xa6c] ss:$16 sps:$4 sm:$0xff]   ;;  %v7877_v59 = vld [vmem:[%s11299_s1 + $0xa60] ss:$16 sps:$4 sm:$0xff]  }
 0x117   :  { %5103 = vmatpush1.bf16.msra.mxu0 %v7793_v60  ;;  %5636 = vmatpush1.bf16.msra.mxu1 %v7796_v61  ;;  %v7880_v60 = vld [vmem:[%s11299_s1 + $0xa68] ss:$16 sps:$4 sm:$0xff]   ;;  %v7885_v61 = vld [vmem:[%s11299_s1 + $0xa84] ss:$16 sps:$4 sm:$0xff]  }
 0x118   :  { %5104 = vmatprep.subr.bf16.mxu0 %v7801_v62  ;;  %5637 = vmatprep.subr.bf16.mxu1 %v7804_v63  ;;  %v7888_v62 = vld [vmem:[%s11299_s1 + $0xa8c] ss:$16 sps:$4 sm:$0xff]   ;;  %v7883_v63 = vld [vmem:[%s11299_s1 + $0xa80] ss:$16 sps:$4 sm:$0xff]  }
 0x11b   :  { %5105 = vmatpush1.bf16.msra.mxu0 %v7799_v0  ;;  %5638 = vmatpush1.bf16.msra.mxu1 %v7802_v1  ;;  %v7886_v0 = vld [vmem:[%s11299_s1 + $0xa88] ss:$16 sps:$4 sm:$0xff]   ;;  %v7891_v1 = vld [vmem:[%s11299_s1 + $0xaa4] ss:$16 sps:$4 sm:$0xff]  }
 0x11c   :  { %5106 = vmatprep.subr.bf16.mxu0 %v7807_v2  ;;  %5639 = vmatprep.subr.bf16.mxu1 %v7810_v3  ;;  %v7894_v2 = vld [vmem:[%s11299_s1 + $0xaac] ss:$16 sps:$4 sm:$0xff]   ;;  %v7889_v3 = vld [vmem:[%s11299_s1 + $0xaa0] ss:$16 sps:$4 sm:$0xff]  }
 0x11f   :  { %5107 = vmatpush1.bf16.msra.mxu0 %v7805_v4  ;;  %5640 = vmatpush1.bf16.msra.mxu1 %v7808_v5  ;;  %v7892_v4 = vld [vmem:[%s11299_s1 + $0xaa8] ss:$16 sps:$4 sm:$0xff]   ;;  %v7897_v5 = vld [vmem:[%s11299_s1 + $0xac4] ss:$16 sps:$4 sm:$0xff]  }
 0x120   :  { %5108 = vmatprep.subr.bf16.mxu0 %v7813_v6  ;;  %5641 = vmatprep.subr.bf16.mxu1 %v7816_v7  ;;  %v7900_v6 = vld [vmem:[%s11299_s1 + $0xacc] ss:$16 sps:$4 sm:$0xff]   ;;  %v7895_v7 = vld [vmem:[%s11299_s1 + $0xac0] ss:$16 sps:$4 sm:$0xff]  }
 0x123   :  { %5109 = vmatpush1.bf16.msra.mxu0 %v7811_v8  ;;  %5642 = vmatpush1.bf16.msra.mxu1 %v7814_v10  ;;  %v7898_v8 = vld [vmem:[%s11299_s1 + $0xac8] ss:$16 sps:$4 sm:$0xff]   ;;  %v7903_v10 = vld [vmem:[%s11299_s1 + $0xae4] ss:$16 sps:$4 sm:$0xff]  }
 0x124   :  { %5110 = vmatprep.subr.bf16.mxu0 %v7819_v11  ;;  %5643 = vmatprep.subr.bf16.mxu1 %v7822_v12  ;;  %v7906_v11 = vld [vmem:[%s11299_s1 + $0xaec] ss:$16 sps:$4 sm:$0xff]   ;;  %v7901_v12 = vld [vmem:[%s11299_s1 + $0xae0] ss:$16 sps:$4 sm:$0xff]  }
 0x127   :  { %5111 = vmatpush1.bf16.msra.mxu0 %v7817_v13  ;;  %5644 = vmatpush1.bf16.msra.mxu1 %v7820_v14  ;;  %v7904_v13 = vld [vmem:[%s11299_s1 + $0xae8] ss:$16 sps:$4 sm:$0xff]   ;;  %v7909_v14 = vld [vmem:[%s11299_s1 + $0xb04] ss:$16 sps:$4 sm:$0xff]  }
 0x128   :  { %5112 = vmatprep.subr.bf16.mxu0 %v7825_v15  ;;  %5645 = vmatprep.subr.bf16.mxu1 %v7828_v16  ;;  %v7912_v15 = vld [vmem:[%s11299_s1 + $0xb0c] ss:$16 sps:$4 sm:$0xff]   ;;  %v7907_v16 = vld [vmem:[%s11299_s1 + $0xb00] ss:$16 sps:$4 sm:$0xff]  }
 0x12b   :  { %5113 = vmatpush1.bf16.msra.mxu0 %v7823_v17  ;;  %5646 = vmatpush1.bf16.msra.mxu1 %v7826_v18  ;;  %v7910_v17 = vld [vmem:[%s11299_s1 + $0xb08] ss:$16 sps:$4 sm:$0xff]   ;;  %v7915_v18 = vld [vmem:[%s11299_s1 + $0xb24] ss:$16 sps:$4 sm:$0xff]  }
 0x12c   :  { %5114 = vmatprep.subr.bf16.mxu0 %v7831_v19  ;;  %5647 = vmatprep.subr.bf16.mxu1 %v7834_v20  ;;  %v7918_v19 = vld [vmem:[%s11299_s1 + $0xb2c] ss:$16 sps:$4 sm:$0xff]   ;;  %v7913_v20 = vld [vmem:[%s11299_s1 + $0xb20] ss:$16 sps:$4 sm:$0xff]  }
 0x12f   :  { %5115 = vmatpush1.bf16.msra.mxu0 %v7829_v21  ;;  %5648 = vmatpush1.bf16.msra.mxu1 %v7832_v22  ;;  %v7916_v21 = vld [vmem:[%s11299_s1 + $0xb28] ss:$16 sps:$4 sm:$0xff]   ;;  %v7921_v22 = vld [vmem:[%s11299_s1 + $0xb44] ss:$16 sps:$4 sm:$0xff]  }
 0x130   :  { %5116 = vmatprep.subr.bf16.mxu0 %v7837_v23  ;;  %5649 = vmatprep.subr.bf16.mxu1 %v7840_v9  ;;  %v7924_v23 = vld [vmem:[%s11299_s1 + $0xb4c] ss:$16 sps:$4 sm:$0xff]   ;;  %v7919_v9 = vld [vmem:[%s11299_s1 + $0xb40] ss:$16 sps:$4 sm:$0xff]  }
 0x133   :  { %5117 = vmatpush1.bf16.msra.mxu0 %v7835_v26  ;;  %5650 = vmatpush1.bf16.msra.mxu1 %v7838_v27  ;;  %v7922_v26 = vld [vmem:[%s11299_s1 + $0xb48] ss:$16 sps:$4 sm:$0xff]   ;;  %v7927_v27 = vld [vmem:[%s11299_s1 + $0xb64] ss:$16 sps:$4 sm:$0xff]  }
 0x134   :  { %5118 = vmatprep.subr.bf16.mxu0 %v7843_v29  ;;  %5651 = vmatprep.subr.bf16.mxu1 %v7846_v30  ;;  %v7930_v29 = vld [vmem:[%s11299_s1 + $0xb6c] ss:$16 sps:$4 sm:$0xff]   ;;  %v7925_v30 = vld [vmem:[%s11299_s1 + $0xb60] ss:$16 sps:$4 sm:$0xff]  }
 0x137   :  { %5119 = vmatpush1.bf16.msra.mxu0 %v7841_v31  ;;  %5652 = vmatpush1.bf16.msra.mxu1 %v7844_v33  ;;  %v7928_v31 = vld [vmem:[%s11299_s1 + $0xb68] ss:$16 sps:$4 sm:$0xff]   ;;  %v7933_v33 = vld [vmem:[%s11299_s1 + $0xb84] ss:$16 sps:$4 sm:$0xff]  }
 0x138   :  { %5120 = vmatprep.subr.bf16.mxu0 %v7849_v25  ;;  %5653 = vmatprep.subr.bf16.mxu1 %v7852_v34  ;;  %v7936_v25 = vld [vmem:[%s11299_s1 + $0xb8c] ss:$16 sps:$4 sm:$0xff]   ;;  %v7931_v34 = vld [vmem:[%s11299_s1 + $0xb80] ss:$16 sps:$4 sm:$0xff]  }
 0x13b   :  { %5121 = vmatpush1.bf16.msra.mxu0 %v7847_v36  ;;  %5654 = vmatpush1.bf16.msra.mxu1 %v7850_v37  ;;  %v7939_v36 = vld [vmem:[%s11299_s1 + $0xba4] ss:$16 sps:$4 sm:$0xff]   ;;  %v7942_v37 = vld [vmem:[%s11299_s1 + $0xbac] ss:$16 sps:$4 sm:$0xff]  }
 0x13c   :  { %5122 = vmatprep.subr.bf16.mxu0 %v7855_v38  ;;  %5655 = vmatprep.subr.bf16.mxu1 %v7858_v28  ;;  %v7937_v38 = vld [vmem:[%s11299_s1 + $0xba0] ss:$16 sps:$4 sm:$0xff]   ;;  %v7940_v28 = vld [vmem:[%s11299_s1 + $0xba8] ss:$16 sps:$4 sm:$0xff]  }
 0x13f   :  { %5123 = vmatpush1.bf16.msra.mxu0 %v7853_v40  ;;  %5656 = vmatpush1.bf16.msra.mxu1 %v7856_v41  ;;  %v7945_v40 = vld [vmem:[%s11299_s1 + $0xbc4] ss:$16 sps:$4 sm:$0xff]   ;;  %v7948_v41 = vld [vmem:[%s11299_s1 + $0xbcc] ss:$16 sps:$4 sm:$0xff]  }
 0x140   :  { %5133 = vmatprep.subr.bf16.mxu0 %v7861_v42  ;;  %5666 = vmatprep.subr.bf16.mxu1 %v7864_v24  ;;  %v9877_v42 = vld [vmem:[%s11298_s0 + $0x18] sm:$0xff]  ;;  %v7943_v24 = vld [vmem:[%s11299_s1 + $0xbc0] ss:$16 sps:$4 sm:$0xff]  }
 0x142   :  { %5125 = vmatmul.mubr.bf16.vlgmr.msra.gmra.mrb[0].mxu0 %v181_v45  ;;  %5658 = vmatmul.mubr.bf16.vlgmr.msra.gmra.mrb[0].mxu1 %v181_v45  ;;  %v7951_v45 = vld [vmem:[%s11299_s1 + $0xbe4] ss:$16 sps:$4 sm:$0xff]  }
 0x143   :  { %5134 = vmatpush1.bf16.msra.mxu0 %v7859_v46  ;;  %5667 = vmatpush1.bf16.msra.mxu1 %v7862_v47  ;;  %v7954_v46 = vld [vmem:[%s11299_s1 + $0xbec] ss:$16 sps:$4 sm:$0xff]   ;;  %v9893_v47 = vrot.slane %v9877_v42, %v8817_v49 }
 0x144   :  { %5135 = vmatprep.subr.bf16.mxu0 %v7867_v48  ;;  %5668 = vmatprep.subr.bf16.mxu1 %v7870_v32  ;;  %v7949_v48 = vld [vmem:[%s11299_s1 + $0xbe0] ss:$16 sps:$4 sm:$0xff]   ;;  %v7952_v32 = vld [vmem:[%s11299_s1 + $0xbe8] ss:$16 sps:$4 sm:$0xff]  }
 0x145   :  { %5165 = vmatprep.mubr.bf16.mxu0 %v184_v50  ;;  %5698 = vmatprep.mubr.bf16.mxu1 %v184_v50  ;;  %v7958_v50 = vld [vmem:[%s11299_s1 + $0xc04] ss:$16 sps:$4 sm:$0xff]  }
 0x147   :  { %5136 = vmatpush1.bf16.msra.mxu0 %v7865_v51  ;;  %5669 = vmatpush1.bf16.msra.mxu1 %v7868_v52  ;;  %v7961_v51 = vld [vmem:[%s11299_s1 + $0xc0c] ss:$16 sps:$4 sm:$0xff]   ;;  %v105_v52 = vcombine.high %v9893_v47, %v9893_v47 }
 0x148   :  { %5137 = vmatprep.subr.bf16.mxu0 %v7873_v53  ;;  %5670 = vmatprep.subr.bf16.mxu1 %v7876_v54  ;;  %v183_v53 = vpack.c.bf16 %v9688_v39, %v9688_v39  ;;  %v7956_v54 = vld [vmem:[%s11299_s1 + $0xc00] ss:$16 sps:$4 sm:$0xff]   ;;  %v7967_v39 = vld [vmem:[%s11299_s1 + $0xc2c] ss:$16 sps:$4 sm:$0xff]  }
 0x14b   :  { %5138 = vmatpush1.bf16.msra.mxu0 %v7871_v55  ;;  %5671 = vmatpush1.bf16.msra.mxu1 %v7874_v56  ;;  %v7959_v55 = vld [vmem:[%s11299_s1 + $0xc08] ss:$16 sps:$4 sm:$0xff]   ;;  %v7964_v56 = vld [vmem:[%s11299_s1 + $0xc24] ss:$16 sps:$4 sm:$0xff]  }
 0x14c   :  { %5139 = vmatprep.subr.bf16.mxu0 %v7879_v57  ;;  %5672 = vmatprep.subr.bf16.mxu1 %v7882_v58  ;;  %v186_v57 = vpack.c.bf16 %v105_v52, %v105_v52  ;;  %v7962_v58 = vld [vmem:[%s11299_s1 + $0xc20] ss:$16 sps:$4 sm:$0xff]  }
 0x14d   :  { %v8040_v52 = vld [vmem:[%s11299_s1 + $0xdc0] ss:$16 sps:$4 sm:$0xff]  }
 0x14f   :  { %5140 = vmatpush1.bf16.msra.mxu0 %v7877_v59  ;;  %5673 = vmatpush1.bf16.msra.mxu1 %v7880_v60  ;;  %v7965_v59 = vld [vmem:[%s11299_s1 + $0xc28] ss:$16 sps:$4 sm:$0xff]   ;;  %v7970_v60 = vld [vmem:[%s11299_s1 + $0xc44] ss:$16 sps:$4 sm:$0xff]  }
 0x150   :  { %5141 = vmatprep.subr.bf16.mxu0 %v7885_v61  ;;  %5674 = vmatprep.subr.bf16.mxu1 %v7888_v62  ;;  %v7973_v61 = vld [vmem:[%s11299_s1 + $0xc4c] ss:$16 sps:$4 sm:$0xff]   ;;  %v7968_v62 = vld [vmem:[%s11299_s1 + $0xc40] ss:$16 sps:$4 sm:$0xff]  }
 0x153   :  { %5142 = vmatpush1.bf16.msra.mxu0 %v7883_v63  ;;  %5675 = vmatpush1.bf16.msra.mxu1 %v7886_v0  ;;  %v7971_v63 = vld [vmem:[%s11299_s1 + $0xc48] ss:$16 sps:$4 sm:$0xff]   ;;  %v7976_v0 = vld [vmem:[%s11299_s1 + $0xc64] ss:$16 sps:$4 sm:$0xff]  }
 0x154   :  { %5143 = vmatprep.subr.bf16.mxu0 %v7891_v1  ;;  %5676 = vmatprep.subr.bf16.mxu1 %v7894_v2  ;;  %v7979_v1 = vld [vmem:[%s11299_s1 + $0xc6c] ss:$16 sps:$4 sm:$0xff]   ;;  %v7974_v2 = vld [vmem:[%s11299_s1 + $0xc60] ss:$16 sps:$4 sm:$0xff]  }
 0x157   :  { %5144 = vmatpush1.bf16.msra.mxu0 %v7889_v3  ;;  %5677 = vmatpush1.bf16.msra.mxu1 %v7892_v4  ;;  %v7977_v3 = vld [vmem:[%s11299_s1 + $0xc68] ss:$16 sps:$4 sm:$0xff]   ;;  %v7982_v4 = vld [vmem:[%s11299_s1 + $0xc84] ss:$16 sps:$4 sm:$0xff]  }
 0x158   :  { %5145 = vmatprep.subr.bf16.mxu0 %v7897_v5  ;;  %5678 = vmatprep.subr.bf16.mxu1 %v7900_v6  ;;  %v7985_v5 = vld [vmem:[%s11299_s1 + $0xc8c] ss:$16 sps:$4 sm:$0xff]   ;;  %v7980_v6 = vld [vmem:[%s11299_s1 + $0xc80] ss:$16 sps:$4 sm:$0xff]  }
 0x15b   :  { %5146 = vmatpush1.bf16.msra.mxu0 %v7895_v7  ;;  %5679 = vmatpush1.bf16.msra.mxu1 %v7898_v8  ;;  %v7983_v7 = vld [vmem:[%s11299_s1 + $0xc88] ss:$16 sps:$4 sm:$0xff]   ;;  %v7988_v8 = vld [vmem:[%s11299_s1 + $0xca4] ss:$16 sps:$4 sm:$0xff]  }
 0x15c   :  { %5147 = vmatprep.subr.bf16.mxu0 %v7903_v10  ;;  %5680 = vmatprep.subr.bf16.mxu1 %v7906_v11  ;;  %v7991_v10 = vld [vmem:[%s11299_s1 + $0xcac] ss:$16 sps:$4 sm:$0xff]   ;;  %v7986_v11 = vld [vmem:[%s11299_s1 + $0xca0] ss:$16 sps:$4 sm:$0xff]  }
 0x15f   :  { %5148 = vmatpush1.bf16.msra.mxu0 %v7901_v12  ;;  %5681 = vmatpush1.bf16.msra.mxu1 %v7904_v13  ;;  %v7989_v12 = vld [vmem:[%s11299_s1 + $0xca8] ss:$16 sps:$4 sm:$0xff]   ;;  %v7994_v13 = vld [vmem:[%s11299_s1 + $0xcc4] ss:$16 sps:$4 sm:$0xff]  }
 0x160   :  { %5149 = vmatprep.subr.bf16.mxu0 %v7909_v14  ;;  %5682 = vmatprep.subr.bf16.mxu1 %v7912_v15  ;;  %v7997_v14 = vld [vmem:[%s11299_s1 + $0xccc] ss:$16 sps:$4 sm:$0xff]   ;;  %v7992_v15 = vld [vmem:[%s11299_s1 + $0xcc0] ss:$16 sps:$4 sm:$0xff]  }
 0x163   :  { %5150 = vmatpush1.bf16.msra.mxu0 %v7907_v16  ;;  %5683 = vmatpush1.bf16.msra.mxu1 %v7910_v17  ;;  %v7995_v16 = vld [vmem:[%s11299_s1 + $0xcc8] ss:$16 sps:$4 sm:$0xff]   ;;  %v8000_v17 = vld [vmem:[%s11299_s1 + $0xce4] ss:$16 sps:$4 sm:$0xff]  }
 0x164   :  { %5151 = vmatprep.subr.bf16.mxu0 %v7915_v18  ;;  %5684 = vmatprep.subr.bf16.mxu1 %v7918_v19  ;;  %v8003_v18 = vld [vmem:[%s11299_s1 + $0xcec] ss:$16 sps:$4 sm:$0xff]   ;;  %v7998_v19 = vld [vmem:[%s11299_s1 + $0xce0] ss:$16 sps:$4 sm:$0xff]  }
 0x167   :  { %5152 = vmatpush1.bf16.msra.mxu0 %v7913_v20  ;;  %5685 = vmatpush1.bf16.msra.mxu1 %v7916_v21  ;;  %v8001_v20 = vld [vmem:[%s11299_s1 + $0xce8] ss:$16 sps:$4 sm:$0xff]   ;;  %v8006_v21 = vld [vmem:[%s11299_s1 + $0xd04] ss:$16 sps:$4 sm:$0xff]  }
 0x168   :  { %5153 = vmatprep.subr.bf16.mxu0 %v7921_v22  ;;  %5686 = vmatprep.subr.bf16.mxu1 %v7924_v23  ;;  %v8009_v22 = vld [vmem:[%s11299_s1 + $0xd0c] ss:$16 sps:$4 sm:$0xff]   ;;  %v8004_v23 = vld [vmem:[%s11299_s1 + $0xd00] ss:$16 sps:$4 sm:$0xff]  }
 0x16b   :  { %5154 = vmatpush1.bf16.msra.mxu0 %v7919_v9  ;;  %5687 = vmatpush1.bf16.msra.mxu1 %v7922_v26  ;;  %v8007_v9 = vld [vmem:[%s11299_s1 + $0xd08] ss:$16 sps:$4 sm:$0xff]   ;;  %v8012_v26 = vld [vmem:[%s11299_s1 + $0xd24] ss:$16 sps:$4 sm:$0xff]  }
 0x16c   :  { %5155 = vmatprep.subr.bf16.mxu0 %v7927_v27  ;;  %5688 = vmatprep.subr.bf16.mxu1 %v7930_v29  ;;  %v8015_v27 = vld [vmem:[%s11299_s1 + $0xd2c] ss:$16 sps:$4 sm:$0xff]   ;;  %v8010_v29 = vld [vmem:[%s11299_s1 + $0xd20] ss:$16 sps:$4 sm:$0xff]  }
 0x16f   :  { %5156 = vmatpush1.bf16.msra.mxu0 %v7925_v30  ;;  %5689 = vmatpush1.bf16.msra.mxu1 %v7928_v31  ;;  %v8013_v30 = vld [vmem:[%s11299_s1 + $0xd28] ss:$16 sps:$4 sm:$0xff]   ;;  %v8018_v31 = vld [vmem:[%s11299_s1 + $0xd44] ss:$16 sps:$4 sm:$0xff]  }
 0x170   :  { %5157 = vmatprep.subr.bf16.mxu0 %v7933_v33  ;;  %5690 = vmatprep.subr.bf16.mxu1 %v7936_v25  ;;  %v8021_v33 = vld [vmem:[%s11299_s1 + $0xd4c] ss:$16 sps:$4 sm:$0xff]   ;;  %v8016_v25 = vld [vmem:[%s11299_s1 + $0xd40] ss:$16 sps:$4 sm:$0xff]  }
 0x173   :  { %5158 = vmatpush1.bf16.msra.mxu0 %v7931_v34  ;;  %5691 = vmatpush1.bf16.msra.mxu1 %v7934_v35  ;;  %v8019_v34 = vld [vmem:[%s11299_s1 + $0xd48] ss:$16 sps:$4 sm:$0xff]   ;;  %v8024_v35 = vld [vmem:[%s11299_s1 + $0xd64] ss:$16 sps:$4 sm:$0xff]  }
 0x174   :  { %5159 = vmatprep.subr.bf16.mxu0 %v7939_v36  ;;  %5692 = vmatprep.subr.bf16.mxu1 %v7942_v37  ;;  %v8027_v36 = vld [vmem:[%s11299_s1 + $0xd6c] ss:$16 sps:$4 sm:$0xff]   ;;  %v8022_v37 = vld [vmem:[%s11299_s1 + $0xd60] ss:$16 sps:$4 sm:$0xff]  }
 0x177   :  { %5160 = vmatpush1.bf16.msra.mxu0 %v7937_v38  ;;  %5693 = vmatpush1.bf16.msra.mxu1 %v7940_v28  ;;  %v8025_v38 = vld [vmem:[%s11299_s1 + $0xd68] ss:$16 sps:$4 sm:$0xff]   ;;  %v8030_v28 = vld [vmem:[%s11299_s1 + $0xd84] ss:$16 sps:$4 sm:$0xff]  }
 0x178   :  { %5161 = vmatprep.subr.bf16.mxu0 %v7945_v40  ;;  %5694 = vmatprep.subr.bf16.mxu1 %v7948_v41  ;;  %v8033_v40 = vld [vmem:[%s11299_s1 + $0xd8c] ss:$16 sps:$4 sm:$0xff]   ;;  %v8028_v41 = vld [vmem:[%s11299_s1 + $0xd80] ss:$16 sps:$4 sm:$0xff]  }
 0x17b   :  { %5162 = vmatpush1.bf16.msra.mxu0 %v7943_v24  ;;  %5695 = vmatpush1.bf16.msra.mxu1 %v7946_v44  ;;  %v8031_v24 = vld [vmem:[%s11299_s1 + $0xd88] ss:$16 sps:$4 sm:$0xff]   ;;  %v8036_v44 = vld [vmem:[%s11299_s1 + $0xda4] ss:$16 sps:$4 sm:$0xff]  }
 0x17c   :  { %5163 = vmatprep.subr.bf16.mxu0 %v7951_v45  ;;  %5696 = vmatprep.subr.bf16.mxu1 %v7954_v46  ;;  %v8039_v45 = vld [vmem:[%s11299_s1 + $0xdac] ss:$16 sps:$4 sm:$0xff]   ;;  %v8034_v46 = vld [vmem:[%s11299_s1 + $0xda0] ss:$16 sps:$4 sm:$0xff]  }
 0x17f   :  { %5164 = vmatpush1.bf16.msra.mxu0 %v7949_v48  ;;  %5697 = vmatpush1.bf16.msra.mxu1 %v7952_v32  ;;  %v8037_v48 = vld [vmem:[%s11299_s1 + $0xda8] ss:$16 sps:$4 sm:$0xff]   ;;  %v8042_v32 = vld [vmem:[%s11299_s1 + $0xdc4] ss:$16 sps:$4 sm:$0xff]  }
 0x180   :  { %5174 = vmatprep.subr.bf16.mxu0 %v7958_v50  ;;  %5707 = vmatprep.subr.bf16.mxu1 %v7961_v51  ;;  %v8045_v50 = vld [vmem:[%s11299_s1 + $0xdcc] ss:$16 sps:$4 sm:$0xff]   ;;  %v90_v51 = vcombine.high %v9877_v42, %v9877_v42 }
 0x181   :  { %v8051_v42 = vld [vmem:[%s11299_s1 + $0xdec] ss:$16 sps:$4 sm:$0xff]  }
 0x182   :  { %5166 = vmatmul.mubr.bf16.vlgmr.msra.gmra.mrb[0].mxu0 %v183_v53  ;;  %5699 = vmatmul.mubr.bf16.vlgmr.msra.gmra.mrb[0].mxu1 %v183_v53  ;;  %v8043_v53 = vld [vmem:[%s11299_s1 + $0xdc8] ss:$16 sps:$4 sm:$0xff]  }
 0x183   :  { %5175 = vmatpush1.bf16.msra.mxu0 %v7956_v54  ;;  %5708 = vmatpush1.bf16.msra.mxu1 %v7959_v55  ;;  %v8048_v54 = vld [vmem:[%s11299_s1 + $0xde4] ss:$16 sps:$4 sm:$0xff]   ;;  %v10094_v55 = vrot.slane %v90_v51, %v8817_v49 }
 0x184   :  { %5176 = vmatprep.subr.bf16.mxu0 %v7964_v56  ;;  %5709 = vmatprep.subr.bf16.mxu1 %v7967_v39  ;;  %v8046_v56 = vld [vmem:[%s11299_s1 + $0xde0] ss:$16 sps:$4 sm:$0xff]   ;;  %v8049_v39 = vld [vmem:[%s11299_s1 + $0xde8] ss:$16 sps:$4 sm:$0xff]  }
 0x185   :  { %5206 = vmatprep.mubr.bf16.mxu0 %v186_v57  ;;  %5739 = vmatprep.mubr.bf16.mxu1 %v186_v57  ;;  %v8054_v57 = vld [vmem:[%s11299_s1 + $0xe04] ss:$16 sps:$4 sm:$0xff]  }
 0x187   :  { %5177 = vmatpush1.bf16.msra.mxu0 %v7962_v58  ;;  %5710 = vmatpush1.bf16.msra.mxu1 %v7965_v59  ;;  %v8057_v58 = vld [vmem:[%s11299_s1 + $0xe0c] ss:$16 sps:$4 sm:$0xff]   ;;  %v106_v59 = vcombine.high %v10094_v55, %v10094_v55 }
 0x188   :  { %5178 = vmatprep.subr.bf16.mxu0 %v7970_v60  ;;  %5711 = vmatprep.subr.bf16.mxu1 %v7973_v61  ;;  %v185_v60 = vpack.c.bf16 %v9893_v47, %v9893_v47  ;;  %v8052_v61 = vld [vmem:[%s11299_s1 + $0xe00] ss:$16 sps:$4 sm:$0xff]   ;;  %v8063_v47 = vld [vmem:[%s11299_s1 + $0xe2c] ss:$16 sps:$4 sm:$0xff]  }
 0x18b   :  { %5179 = vmatpush1.bf16.msra.mxu0 %v7968_v62  ;;  %5712 = vmatpush1.bf16.msra.mxu1 %v7971_v63  ;;  %v8055_v62 = vld [vmem:[%s11299_s1 + $0xe08] ss:$16 sps:$4 sm:$0xff]   ;;  %v8060_v63 = vld [vmem:[%s11299_s1 + $0xe24] ss:$16 sps:$4 sm:$0xff]  }
 0x18c   :  { %5180 = vmatprep.subr.bf16.mxu0 %v7976_v0  ;;  %5713 = vmatprep.subr.bf16.mxu1 %v7979_v1  ;;  %v188_v0 = vpack.c.bf16 %v106_v59, %v106_v59  ;;  %v8058_v1 = vld [vmem:[%s11299_s1 + $0xe20] ss:$16 sps:$4 sm:$0xff]  }
 0x18f   :  { %5181 = vmatpush1.bf16.msra.mxu0 %v7974_v2  ;;  %5714 = vmatpush1.bf16.msra.mxu1 %v7977_v3  ;;  %v8061_v2 = vld [vmem:[%s11299_s1 + $0xe28] ss:$16 sps:$4 sm:$0xff]   ;;  %v8066_v3 = vld [vmem:[%s11299_s1 + $0xe44] ss:$16 sps:$4 sm:$0xff]  }
 0x190   :  { %5182 = vmatprep.subr.bf16.mxu0 %v7982_v4  ;;  %5715 = vmatprep.subr.bf16.mxu1 %v7985_v5  ;;  %v8069_v4 = vld [vmem:[%s11299_s1 + $0xe4c] ss:$16 sps:$4 sm:$0xff]   ;;  %v8064_v5 = vld [vmem:[%s11299_s1 + $0xe40] ss:$16 sps:$4 sm:$0xff]  }
 0x193   :  { %5183 = vmatpush1.bf16.msra.mxu0 %v7980_v6  ;;  %5716 = vmatpush1.bf16.msra.mxu1 %v7983_v7  ;;  %v8067_v6 = vld [vmem:[%s11299_s1 + $0xe48] ss:$16 sps:$4 sm:$0xff]   ;;  %v8072_v7 = vld [vmem:[%s11299_s1 + $0xe64] ss:$16 sps:$4 sm:$0xff]  }
 0x194   :  { %5184 = vmatprep.subr.bf16.mxu0 %v7988_v8  ;;  %5717 = vmatprep.subr.bf16.mxu1 %v7991_v10  ;;  %v8075_v8 = vld [vmem:[%s11299_s1 + $0xe6c] ss:$16 sps:$4 sm:$0xff]   ;;  %v8070_v10 = vld [vmem:[%s11299_s1 + $0xe60] ss:$16 sps:$4 sm:$0xff]  }
 0x197   :  { %5185 = vmatpush1.bf16.msra.mxu0 %v7986_v11  ;;  %5718 = vmatpush1.bf16.msra.mxu1 %v7989_v12  ;;  %v8073_v11 = vld [vmem:[%s11299_s1 + $0xe68] ss:$16 sps:$4 sm:$0xff]   ;;  %v8078_v12 = vld [vmem:[%s11299_s1 + $0xe84] ss:$16 sps:$4 sm:$0xff]  }
 0x198   :  { %5186 = vmatprep.subr.bf16.mxu0 %v7994_v13  ;;  %5719 = vmatprep.subr.bf16.mxu1 %v7997_v14  ;;  %v8081_v13 = vld [vmem:[%s11299_s1 + $0xe8c] ss:$16 sps:$4 sm:$0xff]   ;;  %v8076_v14 = vld [vmem:[%s11299_s1 + $0xe80] ss:$16 sps:$4 sm:$0xff]  }
 0x19b   :  { %5187 = vmatpush1.bf16.msra.mxu0 %v7992_v15  ;;  %5720 = vmatpush1.bf16.msra.mxu1 %v7995_v16  ;;  %v8079_v15 = vld [vmem:[%s11299_s1 + $0xe88] ss:$16 sps:$4 sm:$0xff]   ;;  %v8084_v16 = vld [vmem:[%s11299_s1 + $0xea4] ss:$16 sps:$4 sm:$0xff]  }
 0x19c   :  { %5188 = vmatprep.subr.bf16.mxu0 %v8000_v17  ;;  %5721 = vmatprep.subr.bf16.mxu1 %v8003_v18  ;;  %v8087_v17 = vld [vmem:[%s11299_s1 + $0xeac] ss:$16 sps:$4 sm:$0xff]   ;;  %v8082_v18 = vld [vmem:[%s11299_s1 + $0xea0] ss:$16 sps:$4 sm:$0xff]  }
 0x19f   :  { %5189 = vmatpush1.bf16.msra.mxu0 %v7998_v19  ;;  %5722 = vmatpush1.bf16.msra.mxu1 %v8001_v20  ;;  %v8085_v19 = vld [vmem:[%s11299_s1 + $0xea8] ss:$16 sps:$4 sm:$0xff]   ;;  %v8090_v20 = vld [vmem:[%s11299_s1 + $0xec4] ss:$16 sps:$4 sm:$0xff]  }
 0x1a0   :  { %5190 = vmatprep.subr.bf16.mxu0 %v8006_v21  ;;  %5723 = vmatprep.subr.bf16.mxu1 %v8009_v22  ;;  %v8093_v21 = vld [vmem:[%s11299_s1 + $0xecc] ss:$16 sps:$4 sm:$0xff]   ;;  %v8088_v22 = vld [vmem:[%s11299_s1 + $0xec0] ss:$16 sps:$4 sm:$0xff]  }
 0x1a3   :  { %5191 = vmatpush1.bf16.msra.mxu0 %v8004_v23  ;;  %5724 = vmatpush1.bf16.msra.mxu1 %v8007_v9  ;;  %v8091_v23 = vld [vmem:[%s11299_s1 + $0xec8] ss:$16 sps:$4 sm:$0xff]   ;;  %v8096_v9 = vld [vmem:[%s11299_s1 + $0xee4] ss:$16 sps:$4 sm:$0xff]  }
 0x1a4   :  { %5192 = vmatprep.subr.bf16.mxu0 %v8012_v26  ;;  %5725 = vmatprep.subr.bf16.mxu1 %v8015_v27  ;;  %v8099_v26 = vld [vmem:[%s11299_s1 + $0xeec] ss:$16 sps:$4 sm:$0xff]   ;;  %v8094_v27 = vld [vmem:[%s11299_s1 + $0xee0] ss:$16 sps:$4 sm:$0xff]  }
 0x1a7   :  { %5193 = vmatpush1.bf16.msra.mxu0 %v8010_v29  ;;  %5726 = vmatpush1.bf16.msra.mxu1 %v8013_v30  ;;  %v8097_v29 = vld [vmem:[%s11299_s1 + $0xee8] ss:$16 sps:$4 sm:$0xff]   ;;  %v8102_v30 = vld [vmem:[%s11299_s1 + $0xf04] ss:$16 sps:$4 sm:$0xff]  }
 0x1a8   :  { %5194 = vmatprep.subr.bf16.mxu0 %v8018_v31  ;;  %5727 = vmatprep.subr.bf16.mxu1 %v8021_v33  ;;  %v8105_v31 = vld [vmem:[%s11299_s1 + $0xf0c] ss:$16 sps:$4 sm:$0xff]   ;;  %v8100_v33 = vld [vmem:[%s11299_s1 + $0xf00] ss:$16 sps:$4 sm:$0xff]  }
 0x1ab   :  { %5195 = vmatpush1.bf16.msra.mxu0 %v8016_v25  ;;  %5728 = vmatpush1.bf16.msra.mxu1 %v8019_v34  ;;  %v8103_v25 = vld [vmem:[%s11299_s1 + $0xf08] ss:$16 sps:$4 sm:$0xff]   ;;  %v8108_v34 = vld [vmem:[%s11299_s1 + $0xf24] ss:$16 sps:$4 sm:$0xff]  }
 0x1ac   :  { %5196 = vmatprep.subr.bf16.mxu0 %v8024_v35  ;;  %5729 = vmatprep.subr.bf16.mxu1 %v8027_v36  ;;  %v8111_v35 = vld [vmem:[%s11299_s1 + $0xf2c] ss:$16 sps:$4 sm:$0xff]   ;;  %v8106_v36 = vld [vmem:[%s11299_s1 + $0xf20] ss:$16 sps:$4 sm:$0xff]  }
 0x1af   :  { %5197 = vmatpush1.bf16.msra.mxu0 %v8022_v37  ;;  %5730 = vmatpush1.bf16.msra.mxu1 %v8025_v38  ;;  %v8109_v37 = vld [vmem:[%s11299_s1 + $0xf28] ss:$16 sps:$4 sm:$0xff]   ;;  %v8114_v38 = vld [vmem:[%s11299_s1 + $0xf44] ss:$16 sps:$4 sm:$0xff]  }
 0x1b0   :  { %5198 = vmatprep.subr.bf16.mxu0 %v8030_v28  ;;  %5731 = vmatprep.subr.bf16.mxu1 %v8033_v40  ;;  %v8117_v28 = vld [vmem:[%s11299_s1 + $0xf4c] ss:$16 sps:$4 sm:$0xff]   ;;  %v8112_v40 = vld [vmem:[%s11299_s1 + $0xf40] ss:$16 sps:$4 sm:$0xff]  }
 0x1b3   :  { %5199 = vmatpush1.bf16.msra.mxu0 %v8028_v41  ;;  %5732 = vmatpush1.bf16.msra.mxu1 %v8031_v24  ;;  %v8115_v41 = vld [vmem:[%s11299_s1 + $0xf48] ss:$16 sps:$4 sm:$0xff]   ;;  %v8120_v24 = vld [vmem:[%s11299_s1 + $0xf64] ss:$16 sps:$4 sm:$0xff]  }
 0x1b4   :  { %5200 = vmatprep.subr.bf16.mxu0 %v8036_v44  ;;  %5733 = vmatprep.subr.bf16.mxu1 %v8039_v45  ;;  %v8123_v44 = vld [vmem:[%s11299_s1 + $0xf6c] ss:$16 sps:$4 sm:$0xff]  }
 0x1b7   :  { %5201 = vmatpush1.bf16.msra.mxu0 %v8034_v46  ;;  %5734 = vmatpush1.bf16.msra.mxu1 %v8037_v48 }
 0x1b8   :  { %5202 = vmatprep.subr.bf16.mxu0 %v8042_v32  ;;  %5735 = vmatprep.subr.bf16.mxu1 %v8045_v50 }
 0x1bb   :  { %5203 = vmatpush1.bf16.msra.mxu0 %v8040_v52  ;;  %5736 = vmatpush1.bf16.msra.mxu1 %v8043_v53 }
 0x1bc   :  { %5204 = vmatprep.subr.bf16.mxu0 %v8048_v54  ;;  %5737 = vmatprep.subr.bf16.mxu1 %v8051_v42 }
 0x1bf   :  { %5205 = vmatpush1.bf16.msra.mxu0 %v8046_v56  ;;  %5738 = vmatpush1.bf16.msra.mxu1 %v8049_v39 }
 0x1c0   :  { %5215 = vmatprep.subr.bf16.mxu0 %v8054_v57  ;;  %5748 = vmatprep.subr.bf16.mxu1 %v8057_v58 }
 0x1c2   :  { %5207 = vmatmul.mubr.bf16.vlgmr.msra.gmra.mrb[0].mxu0 %v185_v60  ;;  %5740 = vmatmul.mubr.bf16.vlgmr.msra.gmra.mrb[0].mxu1 %v185_v60 }
 0x1c3   :  { %5216 = vmatpush1.bf16.msra.mxu0 %v8052_v61  ;;  %5749 = vmatpush1.bf16.msra.mxu1 %v8055_v62 }
 0x1c4   :  { %5217 = vmatprep.subr.bf16.mxu0 %v8060_v63  ;;  %5750 = vmatprep.subr.bf16.mxu1 %v8063_v47 }
 0x1c5   :  { %5247 = vmatprep.mubr.bf16.mxu0 %v188_v0  ;;  %5780 = vmatprep.mubr.bf16.mxu1 %v188_v0 }
 0x1c7   :  { %5218 = vmatpush1.bf16.msra.mxu0 %v8058_v1  ;;  %5751 = vmatpush1.bf16.msra.mxu1 %v8061_v2 }
 0x1c8   :  { %5219 = vmatprep.subr.bf16.mxu0 %v8066_v3  ;;  %5752 = vmatprep.subr.bf16.mxu1 %v8069_v4 }
 0x1cb   :  { %5220 = vmatpush1.bf16.msra.mxu0 %v8064_v5  ;;  %5753 = vmatpush1.bf16.msra.mxu1 %v8067_v6 }
 0x1cc   :  { %5221 = vmatprep.subr.bf16.mxu0 %v8072_v7  ;;  %5754 = vmatprep.subr.bf16.mxu1 %v8075_v8 }
 0x1cf   :  { %5222 = vmatpush1.bf16.msra.mxu0 %v8070_v10  ;;  %5755 = vmatpush1.bf16.msra.mxu1 %v8073_v11 }
 0x1d0   :  { %5223 = vmatprep.subr.bf16.mxu0 %v8078_v12  ;;  %5756 = vmatprep.subr.bf16.mxu1 %v8081_v13 }
 0x1d3   :  { %5224 = vmatpush1.bf16.msra.mxu0 %v8076_v14  ;;  %5757 = vmatpush1.bf16.msra.mxu1 %v8079_v15 }
 0x1d4   :  { %5225 = vmatprep.subr.bf16.mxu0 %v8084_v16  ;;  %5758 = vmatprep.subr.bf16.mxu1 %v8087_v17 }
 0x1d7   :  { %5226 = vmatpush1.bf16.msra.mxu0 %v8082_v18  ;;  %5759 = vmatpush1.bf16.msra.mxu1 %v8085_v19 }
 0x1d8   :  { %5227 = vmatprep.subr.bf16.mxu0 %v8090_v20  ;;  %5760 = vmatprep.subr.bf16.mxu1 %v8093_v21 }
 0x1db   :  { %5228 = vmatpush1.bf16.msra.mxu0 %v8088_v22  ;;  %5761 = vmatpush1.bf16.msra.mxu1 %v8091_v23 }
 0x1dc   :  { %5229 = vmatprep.subr.bf16.mxu0 %v8096_v9  ;;  %5762 = vmatprep.subr.bf16.mxu1 %v8099_v26 }
 0x1df   :  { %5230 = vmatpush1.bf16.msra.mxu0 %v8094_v27  ;;  %5763 = vmatpush1.bf16.msra.mxu1 %v8097_v29 }
 0x1e0   :  { %5231 = vmatprep.subr.bf16.mxu0 %v8102_v30  ;;  %5764 = vmatprep.subr.bf16.mxu1 %v8105_v31 }
 0x1e3   :  { %5232 = vmatpush1.bf16.msra.mxu0 %v8100_v33  ;;  %5765 = vmatpush1.bf16.msra.mxu1 %v8103_v25 }
 0x1e4   :  { %5233 = vmatprep.subr.bf16.mxu0 %v8108_v34  ;;  %5766 = vmatprep.subr.bf16.mxu1 %v8111_v35 }
 0x1e7   :  { %5234 = vmatpush1.bf16.msra.mxu0 %v8106_v36  ;;  %5767 = vmatpush1.bf16.msra.mxu1 %v8109_v37 }
 0x1e8   :  { %5235 = vmatprep.subr.bf16.mxu0 %v8114_v38  ;;  %5768 = vmatprep.subr.bf16.mxu1 %v8117_v28 }
 0x1e9   :  { %13 = vsyncpa [#allocation5], 0  ;;  %v8118_v45 = vld [vmem:[%s11299_s1 + $0xf60] ss:$16 sps:$4 sm:$0xff]   ;;  %v8121_v46 = vld [vmem:[%s11299_s1 + $0xf68] ss:$16 sps:$4 sm:$0xff]   ;;  %v187_v3 = vpack.c.bf16 %v10094_v55, %v10094_v55 }
 0x1ea   :  { %v8126_v48 = vld [vmem:[%s11299_s1 + $0xf84] ss:$16 sps:$4 sm:$0xff]   ;;  %v8129_v32 = vld [vmem:[%s11299_s1 + $0xf8c] ss:$16 sps:$4 sm:$0xff]   ;;  %v8124_v50 = vld [vmem:[%s11299_s1 + $0xf80] ss:$16 sps:$4 sm:$0xff]  }
 0x1eb   :  { %5236 = vmatpush1.bf16.msra.mxu0 %v8112_v40  ;;  %5769 = vmatpush1.bf16.msra.mxu1 %v8115_v41  ;;  %v8127_v51 = vld [vmem:[%s11299_s1 + $0xf88] ss:$16 sps:$4 sm:$0xff]   ;;  %v8132_v52 = vld [vmem:[%s11299_s1 + $0xfa4] ss:$16 sps:$4 sm:$0xff]   ;;  %v8135_v53 = vld [vmem:[%s11299_s1 + $0xfac] ss:$16 sps:$4 sm:$0xff]  }
 0x1ec   :  { %5237 = vmatprep.subr.bf16.mxu0 %v8120_v24  ;;  %5770 = vmatprep.subr.bf16.mxu1 %v8123_v44  ;;  %v8130_v54 = vld [vmem:[%s11299_s1 + $0xfa0] ss:$16 sps:$4 sm:$0xff]   ;;  %v8133_v42 = vld [vmem:[%s11299_s1 + $0xfa8] ss:$16 sps:$4 sm:$0xff]   ;;  %v8138_v56 = vld [vmem:[%s11299_s1 + $0xfc4] ss:$16 sps:$4 sm:$0xff]  }
 0x1ed   :  { %v8141_v39 = vld [vmem:[%s11299_s1 + $0xfcc] ss:$16 sps:$4 sm:$0xff]   ;;  %v10283_v57 = vld [vmem:[%s11298_s0 + $0x20] sm:$0xff]  ;;  %v8139_v59 = vld [vmem:[%s11299_s1 + $0xfc8] ss:$16 sps:$4 sm:$0xff]   ;;  %vm4924_vm0 = vcmask 523264  }
 0x1ee   :  { %v8136_v58 = vld [vmem:[%s11299_s1 + $0xfc0] ss:$16 sps:$4 sm:$0xff]   ;;  %v8144_v60 = vld [vmem:[%s11299_s1 + $0xfe4] ss:$16 sps:$4 sm:$0xff]   ;;  %v8147_v61 = vld [vmem:[%s11299_s1 + $0xfec] ss:$16 sps:$4 sm:$0xff]   ;;  %v10299_v62 = vrot.slane %v10283_v57, %v8817_v49 }
 0x1ef   :  { %5238 = vmatpush1.bf16.msra.mxu0 %v8118_v45  ;;  %5771 = vmatpush1.bf16.msra.mxu1 %v8121_v46  ;;  %v8142_v63 = vld [vmem:[%s11299_s1 + $0xfe0] ss:$16 sps:$4 sm:$0xff]   ;;  %v8145_v47 = vld [vmem:[%s11299_s1 + $0xfe8] ss:$16 sps:$4 sm:$0xff]   ;;  %v8151_v0 = vld [vmem:[%s11299_s1 + $0x1004] ss:$16 sps:$4 sm:$0xff]  }
 0x1f0   :  { %5239 = vmatprep.subr.bf16.mxu0 %v8126_v48  ;;  %5772 = vmatprep.subr.bf16.mxu1 %v8129_v32  ;;  %v8154_v1 = vld [vmem:[%s11299_s1 + $0x100c] ss:$16 sps:$4 sm:$0xff]   ;;  %v122_v2 = vcombine.high %v10299_v62, %v10299_v62  ;;  %v8149_v4 = vld [vmem:[%s11299_s1 + $0x1000] ss:$16 sps:$4 sm:$0xff]   ;;  %v8152_v5 = vld [vmem:[%s11299_s1 + $0x1008] ss:$16 sps:$4 sm:$0xff]  }
 0x1f1   :  { %v8157_v6 = vld [vmem:[%s11299_s1 + $0x1024] ss:$16 sps:$4 sm:$0xff]   ;;  %v8160_v55 = vld [vmem:[%s11299_s1 + $0x102c] ss:$16 sps:$4 sm:$0xff]   ;;  %v8155_v8 = vld [vmem:[%s11299_s1 + $0x1020] ss:$16 sps:$4 sm:$0xff]  }
 0x1f2   :  { %v190_v7 = vpack.c.bf16 %v122_v2, %v122_v2  ;;  %v8158_v10 = vld [vmem:[%s11299_s1 + $0x1028] ss:$16 sps:$4 sm:$0xff]   ;;  %v8163_v11 = vld [vmem:[%s11299_s1 + $0x1044] ss:$16 sps:$4 sm:$0xff]   ;;  %v8166_v12 = vld [vmem:[%s11299_s1 + $0x104c] ss:$16 sps:$4 sm:$0xff]  }
 0x1f3   :  { %5240 = vmatpush1.bf16.msra.mxu0 %v8124_v50  ;;  %5773 = vmatpush1.bf16.msra.mxu1 %v8127_v51  ;;  %v8161_v13 = vld [vmem:[%s11299_s1 + $0x1040] ss:$16 sps:$4 sm:$0xff]   ;;  %v8164_v14 = vld [vmem:[%s11299_s1 + $0x1048] ss:$16 sps:$4 sm:$0xff]   ;;  %v8169_v15 = vld [vmem:[%s11299_s1 + $0x1064] ss:$16 sps:$4 sm:$0xff]  }
 0x1f4   :  { %5241 = vmatprep.subr.bf16.mxu0 %v8132_v52  ;;  %5774 = vmatprep.subr.bf16.mxu1 %v8135_v53  ;;  %v8172_v16 = vld [vmem:[%s11299_s1 + $0x106c] ss:$16 sps:$4 sm:$0xff]   ;;  %v8167_v17 = vld [vmem:[%s11299_s1 + $0x1060] ss:$16 sps:$4 sm:$0xff]   ;;  %v8170_v18 = vld [vmem:[%s11299_s1 + $0x1068] ss:$16 sps:$4 sm:$0xff]  }
 0x1f5   :  { %v8175_v19 = vld [vmem:[%s11299_s1 + $0x1084] ss:$16 sps:$4 sm:$0xff]   ;;  %v8178_v20 = vld [vmem:[%s11299_s1 + $0x108c] ss:$16 sps:$4 sm:$0xff]   ;;  %v8173_v21 = vld [vmem:[%s11299_s1 + $0x1080] ss:$16 sps:$4 sm:$0xff]  }
 0x1f6   :  { %v8176_v22 = vld [vmem:[%s11299_s1 + $0x1088] ss:$16 sps:$4 sm:$0xff]   ;;  %v8181_v23 = vld [vmem:[%s11299_s1 + $0x10a4] ss:$16 sps:$4 sm:$0xff]   ;;  %v8184_v9 = vld [vmem:[%s11299_s1 + $0x10ac] ss:$16 sps:$4 sm:$0xff]  }
 0x1f7   :  { %5242 = vmatpush1.bf16.msra.mxu0 %v8130_v54  ;;  %5775 = vmatpush1.bf16.msra.mxu1 %v8133_v42  ;;  %v8179_v26 = vld [vmem:[%s11299_s1 + $0x10a0] ss:$16 sps:$4 sm:$0xff]   ;;  %v8182_v27 = vld [vmem:[%s11299_s1 + $0x10a8] ss:$16 sps:$4 sm:$0xff]   ;;  %v8187_v29 = vld [vmem:[%s11299_s1 + $0x10c4] ss:$16 sps:$4 sm:$0xff]  }
 0x1f8   :  { %5243 = vmatprep.subr.bf16.mxu0 %v8138_v56  ;;  %5776 = vmatprep.subr.bf16.mxu1 %v8141_v39  ;;  %v8190_v30 = vld [vmem:[%s11299_s1 + $0x10cc] ss:$16 sps:$4 sm:$0xff]   ;;  %v8185_v31 = vld [vmem:[%s11299_s1 + $0x10c0] ss:$16 sps:$4 sm:$0xff]   ;;  %v8188_v33 = vld [vmem:[%s11299_s1 + $0x10c8] ss:$16 sps:$4 sm:$0xff]  }
 0x1f9   :  { %v8193_v25 = vld [vmem:[%s11299_s1 + $0x10e4] ss:$16 sps:$4 sm:$0xff]   ;;  %v8196_v34 = vld [vmem:[%s11299_s1 + $0x10ec] ss:$16 sps:$4 sm:$0xff]   ;;  %v8191_v35 = vld [vmem:[%s11299_s1 + $0x10e0] ss:$16 sps:$4 sm:$0xff]  }
 0x1fa   :  { %v8194_v36 = vld [vmem:[%s11299_s1 + $0x10e8] ss:$16 sps:$4 sm:$0xff]   ;;  %v8199_v37 = vld [vmem:[%s11299_s1 + $0x1104] ss:$16 sps:$4 sm:$0xff]   ;;  %v8202_v38 = vld [vmem:[%s11299_s1 + $0x110c] ss:$16 sps:$4 sm:$0xff]  }
 0x1fb   :  { %5244 = vmatpush1.bf16.msra.mxu0 %v8136_v58  ;;  %5777 = vmatpush1.bf16.msra.mxu1 %v8139_v59  ;;  %v8197_v28 = vld [vmem:[%s11299_s1 + $0x1100] ss:$16 sps:$4 sm:$0xff]   ;;  %v8200_v40 = vld [vmem:[%s11299_s1 + $0x1108] ss:$16 sps:$4 sm:$0xff]   ;;  %v8205_v41 = vld [vmem:[%s11299_s1 + $0x1124] ss:$16 sps:$4 sm:$0xff]  }
 0x1fc   :  { %5245 = vmatprep.subr.bf16.mxu0 %v8144_v60  ;;  %5778 = vmatprep.subr.bf16.mxu1 %v8147_v61  ;;  %v8208_v24 = vld [vmem:[%s11299_s1 + $0x112c] ss:$16 sps:$4 sm:$0xff]   ;;  %v8203_v44 = vld [vmem:[%s11299_s1 + $0x1120] ss:$16 sps:$4 sm:$0xff]   ;;  %v8206_v45 = vld [vmem:[%s11299_s1 + $0x1128] ss:$16 sps:$4 sm:$0xff]  }
 0x1fd   :  { %v8211_v46 = vld [vmem:[%s11299_s1 + $0x1144] ss:$16 sps:$4 sm:$0xff]   ;;  %v8214_v48 = vld [vmem:[%s11299_s1 + $0x114c] ss:$16 sps:$4 sm:$0xff]   ;;  %v8209_v32 = vld [vmem:[%s11299_s1 + $0x1140] ss:$16 sps:$4 sm:$0xff]  }
 0x1fe   :  { %v8212_v50 = vld [vmem:[%s11299_s1 + $0x1148] ss:$16 sps:$4 sm:$0xff]   ;;  %v8217_v51 = vld [vmem:[%s11299_s1 + $0x1164] ss:$16 sps:$4 sm:$0xff]   ;;  %v8220_v52 = vld [vmem:[%s11299_s1 + $0x116c] ss:$16 sps:$4 sm:$0xff]  }
 0x1ff   :  { %5246 = vmatpush1.bf16.msra.mxu0 %v8142_v63  ;;  %5779 = vmatpush1.bf16.msra.mxu1 %v8145_v47  ;;  %v8215_v53 = vld [vmem:[%s11299_s1 + $0x1160] ss:$16 sps:$4 sm:$0xff]   ;;  %v8218_v54 = vld [vmem:[%s11299_s1 + $0x1168] ss:$16 sps:$4 sm:$0xff]   ;;  %v8223_v42 = vld [vmem:[%s11299_s1 + $0x1184] ss:$16 sps:$4 sm:$0xff]  }
 0x200   :  { %5256 = vmatprep.subr.bf16.mxu0 %v8151_v0  ;;  %5789 = vmatprep.subr.bf16.mxu1 %v8154_v1  ;;  %v8226_v56 = vld [vmem:[%s11299_s1 + $0x118c] ss:$16 sps:$4 sm:$0xff]   ;;  %v8221_v39 = vld [vmem:[%s11299_s1 + $0x1180] ss:$16 sps:$4 sm:$0xff]   ;;  %v8224_v58 = vld [vmem:[%s11299_s1 + $0x1188] ss:$16 sps:$4 sm:$0xff]   ;;  %v107_v1 = vcombine.high %v10283_v57, %v10283_v57 }
 0x201   :  { %v8229_v59 = vld [vmem:[%s11299_s1 + $0x11a4] ss:$16 sps:$4 sm:$0xff]   ;;  %v8232_v60 = vld [vmem:[%s11299_s1 + $0x11ac] ss:$16 sps:$4 sm:$0xff]   ;;  %v8227_v61 = vld [vmem:[%s11299_s1 + $0x11a0] ss:$16 sps:$4 sm:$0xff]  }
 0x202   :  { %5248 = vmatmul.mubr.bf16.vlgmr.msra.gmra.mrb[0].mxu0 %v187_v3  ;;  %5781 = vmatmul.mubr.bf16.vlgmr.msra.gmra.mrb[0].mxu1 %v187_v3  ;;  %v8230_v63 = vld [vmem:[%s11299_s1 + $0x11a8] ss:$16 sps:$4 sm:$0xff]   ;;  %v8235_v47 = vld [vmem:[%s11299_s1 + $0x11c4] ss:$16 sps:$4 sm:$0xff]   ;;  %v8238_v0 = vld [vmem:[%s11299_s1 + $0x11cc] ss:$16 sps:$4 sm:$0xff]  }
 0x203   :  { %5257 = vmatpush1.bf16.msra.mxu0 %v8149_v4  ;;  %5790 = vmatpush1.bf16.msra.mxu1 %v8152_v5  ;;  %v8233_v2 = vld [vmem:[%s11299_s1 + $0x11c0] ss:$16 sps:$4 sm:$0xff]   ;;  %v8236_v3 = vld [vmem:[%s11299_s1 + $0x11c8] ss:$16 sps:$4 sm:$0xff]   ;;  %v8241_v4 = vld [vmem:[%s11299_s1 + $0x11e4] ss:$16 sps:$4 sm:$0xff]   ;;  %v10500_v5 = vrot.slane %v107_v1, %v8817_v49 }
 0x204   :  { %5258 = vmatprep.subr.bf16.mxu0 %v8157_v6  ;;  %5791 = vmatprep.subr.bf16.mxu1 %v8160_v55  ;;  %v8244_v57 = vld [vmem:[%s11299_s1 + $0x11ec] ss:$16 sps:$4 sm:$0xff]   ;;  %v8239_v6 = vld [vmem:[%s11299_s1 + $0x11e0] ss:$16 sps:$4 sm:$0xff]   ;;  %v8242_v55 = vld [vmem:[%s11299_s1 + $0x11e8] ss:$16 sps:$4 sm:$0xff]  }
 0x205   :  { %5288 = vmatprep.mubr.bf16.mxu0 %v190_v7  ;;  %5821 = vmatprep.mubr.bf16.mxu1 %v190_v7  ;;  %v8247_v7 = vld [vmem:[%s11299_s1 + $0x1204] ss:$16 sps:$4 sm:$0xff]   ;;  %v8320_v1 = vld [vmem:[%s11299_s1 + $0x1388] ss:$16 sps:$4 sm:$0xff]   ;;  %vm6368_vm1 = vcmask 9216  }
 0x207   :  { %5259 = vmatpush1.bf16.msra.mxu0 %v8155_v8  ;;  %5792 = vmatpush1.bf16.msra.mxu1 %v8158_v10  ;;  %v8250_v8 = vld [vmem:[%s11299_s1 + $0x120c] ss:$16 sps:$4 sm:$0xff]   ;;  %v123_v10 = vcombine.high %v10500_v5, %v10500_v5 }
 0x208   :  { %5260 = vmatprep.subr.bf16.mxu0 %v8163_v11  ;;  %5793 = vmatprep.subr.bf16.mxu1 %v8166_v12  ;;  %v189_v11 = vpack.c.bf16 %v10299_v62, %v10299_v62  ;;  %v8245_v12 = vld [vmem:[%s11299_s1 + $0x1200] ss:$16 sps:$4 sm:$0xff]   ;;  %v8256_v62 = vld [vmem:[%s11299_s1 + $0x122c] ss:$16 sps:$4 sm:$0xff]  }
 0x20b   :  { %5261 = vmatpush1.bf16.msra.mxu0 %v8161_v13  ;;  %5794 = vmatpush1.bf16.msra.mxu1 %v8164_v14  ;;  %v8248_v13 = vld [vmem:[%s11299_s1 + $0x1208] ss:$16 sps:$4 sm:$0xff]   ;;  %v8253_v14 = vld [vmem:[%s11299_s1 + $0x1224] ss:$16 sps:$4 sm:$0xff]  }
 0x20c   :  { %5262 = vmatprep.subr.bf16.mxu0 %v8169_v15  ;;  %5795 = vmatprep.subr.bf16.mxu1 %v8172_v16  ;;  %v192_v15 = vpack.c.bf16 %v123_v10, %v123_v10  ;;  %v8251_v16 = vld [vmem:[%s11299_s1 + $0x1220] ss:$16 sps:$4 sm:$0xff]   ;;  %v8332_v10 = vld [vmem:[%s11299_s1 + $0x13c8] ss:$16 sps:$4 sm:$0xff]  }
 0x20f   :  { %5263 = vmatpush1.bf16.msra.mxu0 %v8167_v17  ;;  %5796 = vmatpush1.bf16.msra.mxu1 %v8170_v18  ;;  %v8254_v17 = vld [vmem:[%s11299_s1 + $0x1228] ss:$16 sps:$4 sm:$0xff]   ;;  %v8259_v18 = vld [vmem:[%s11299_s1 + $0x1244] ss:$16 sps:$4 sm:$0xff]  }
 0x210   :  { %5264 = vmatprep.subr.bf16.mxu0 %v8175_v19  ;;  %5797 = vmatprep.subr.bf16.mxu1 %v8178_v20  ;;  %v8262_v19 = vld [vmem:[%s11299_s1 + $0x124c] ss:$16 sps:$4 sm:$0xff]   ;;  %v8257_v20 = vld [vmem:[%s11299_s1 + $0x1240] ss:$16 sps:$4 sm:$0xff]  }
 0x213   :  { %5265 = vmatpush1.bf16.msra.mxu0 %v8173_v21  ;;  %5798 = vmatpush1.bf16.msra.mxu1 %v8176_v22  ;;  %v8260_v21 = vld [vmem:[%s11299_s1 + $0x1248] ss:$16 sps:$4 sm:$0xff]   ;;  %v8265_v22 = vld [vmem:[%s11299_s1 + $0x1264] ss:$16 sps:$4 sm:$0xff]  }
 0x214   :  { %5266 = vmatprep.subr.bf16.mxu0 %v8181_v23  ;;  %5799 = vmatprep.subr.bf16.mxu1 %v8184_v9  ;;  %v8268_v23 = vld [vmem:[%s11299_s1 + $0x126c] ss:$16 sps:$4 sm:$0xff]   ;;  %v8263_v9 = vld [vmem:[%s11299_s1 + $0x1260] ss:$16 sps:$4 sm:$0xff]  }
 0x217   :  { %5267 = vmatpush1.bf16.msra.mxu0 %v8179_v26  ;;  %5800 = vmatpush1.bf16.msra.mxu1 %v8182_v27  ;;  %v8266_v26 = vld [vmem:[%s11299_s1 + $0x1268] ss:$16 sps:$4 sm:$0xff]   ;;  %v8271_v27 = vld [vmem:[%s11299_s1 + $0x1284] ss:$16 sps:$4 sm:$0xff]  }
 0x218   :  { %5268 = vmatprep.subr.bf16.mxu0 %v8187_v29  ;;  %5801 = vmatprep.subr.bf16.mxu1 %v8190_v30  ;;  %v8274_v29 = vld [vmem:[%s11299_s1 + $0x128c] ss:$16 sps:$4 sm:$0xff]   ;;  %v8269_v30 = vld [vmem:[%s11299_s1 + $0x1280] ss:$16 sps:$4 sm:$0xff]  }
 0x21b   :  { %5269 = vmatpush1.bf16.msra.mxu0 %v8185_v31  ;;  %5802 = vmatpush1.bf16.msra.mxu1 %v8188_v33  ;;  %v8272_v31 = vld [vmem:[%s11299_s1 + $0x1288] ss:$16 sps:$4 sm:$0xff]   ;;  %v8277_v33 = vld [vmem:[%s11299_s1 + $0x12a4] ss:$16 sps:$4 sm:$0xff]  }
 0x21c   :  { %5270 = vmatprep.subr.bf16.mxu0 %v8193_v25  ;;  %5803 = vmatprep.subr.bf16.mxu1 %v8196_v34  ;;  %v8280_v25 = vld [vmem:[%s11299_s1 + $0x12ac] ss:$16 sps:$4 sm:$0xff]   ;;  %v8275_v34 = vld [vmem:[%s11299_s1 + $0x12a0] ss:$16 sps:$4 sm:$0xff]  }
 0x21f   :  { %5271 = vmatpush1.bf16.msra.mxu0 %v8191_v35  ;;  %5804 = vmatpush1.bf16.msra.mxu1 %v8194_v36  ;;  %v8278_v35 = vld [vmem:[%s11299_s1 + $0x12a8] ss:$16 sps:$4 sm:$0xff]   ;;  %v8283_v36 = vld [vmem:[%s11299_s1 + $0x12c4] ss:$16 sps:$4 sm:$0xff]  }
 0x220   :  { %5272 = vmatprep.subr.bf16.mxu0 %v8199_v37  ;;  %5805 = vmatprep.subr.bf16.mxu1 %v8202_v38  ;;  %v8286_v37 = vld [vmem:[%s11299_s1 + $0x12cc] ss:$16 sps:$4 sm:$0xff]   ;;  %v8281_v38 = vld [vmem:[%s11299_s1 + $0x12c0] ss:$16 sps:$4 sm:$0xff]  }
 0x223   :  { %5273 = vmatpush1.bf16.msra.mxu0 %v8197_v28  ;;  %5806 = vmatpush1.bf16.msra.mxu1 %v8200_v40  ;;  %v8284_v28 = vld [vmem:[%s11299_s1 + $0x12c8] ss:$16 sps:$4 sm:$0xff]   ;;  %v8289_v40 = vld [vmem:[%s11299_s1 + $0x12e4] ss:$16 sps:$4 sm:$0xff]  }
 0x224   :  { %5274 = vmatprep.subr.bf16.mxu0 %v8205_v41  ;;  %5807 = vmatprep.subr.bf16.mxu1 %v8208_v24  ;;  %v8292_v41 = vld [vmem:[%s11299_s1 + $0x12ec] ss:$16 sps:$4 sm:$0xff]   ;;  %v8287_v24 = vld [vmem:[%s11299_s1 + $0x12e0] ss:$16 sps:$4 sm:$0xff]  }
 0x227   :  { %5275 = vmatpush1.bf16.msra.mxu0 %v8203_v44  ;;  %5808 = vmatpush1.bf16.msra.mxu1 %v8206_v45  ;;  %v8290_v44 = vld [vmem:[%s11299_s1 + $0x12e8] ss:$16 sps:$4 sm:$0xff]   ;;  %v8295_v45 = vld [vmem:[%s11299_s1 + $0x1304] ss:$16 sps:$4 sm:$0xff]  }
 0x228   :  { %5276 = vmatprep.subr.bf16.mxu0 %v8211_v46  ;;  %5809 = vmatprep.subr.bf16.mxu1 %v8214_v48  ;;  %v8298_v46 = vld [vmem:[%s11299_s1 + $0x130c] ss:$16 sps:$4 sm:$0xff]   ;;  %v8293_v48 = vld [vmem:[%s11299_s1 + $0x1300] ss:$16 sps:$4 sm:$0xff]  }
 0x22b   :  { %5277 = vmatpush1.bf16.msra.mxu0 %v8209_v32  ;;  %5810 = vmatpush1.bf16.msra.mxu1 %v8212_v50  ;;  %v8296_v32 = vld [vmem:[%s11299_s1 + $0x1308] ss:$16 sps:$4 sm:$0xff]   ;;  %v8301_v50 = vld [vmem:[%s11299_s1 + $0x1324] ss:$16 sps:$4 sm:$0xff]  }
 0x22c   :  { %5278 = vmatprep.subr.bf16.mxu0 %v8217_v51  ;;  %5811 = vmatprep.subr.bf16.mxu1 %v8220_v52  ;;  %v8304_v51 = vld [vmem:[%s11299_s1 + $0x132c] ss:$16 sps:$4 sm:$0xff]   ;;  %v8299_v52 = vld [vmem:[%s11299_s1 + $0x1320] ss:$16 sps:$4 sm:$0xff]  }
 0x22f   :  { %5279 = vmatpush1.bf16.msra.mxu0 %v8215_v53  ;;  %5812 = vmatpush1.bf16.msra.mxu1 %v8218_v54  ;;  %v8302_v53 = vld [vmem:[%s11299_s1 + $0x1328] ss:$16 sps:$4 sm:$0xff]   ;;  %v8307_v54 = vld [vmem:[%s11299_s1 + $0x1344] ss:$16 sps:$4 sm:$0xff]  }
 0x230   :  { %5280 = vmatprep.subr.bf16.mxu0 %v8223_v42  ;;  %5813 = vmatprep.subr.bf16.mxu1 %v8226_v56  ;;  %v8310_v42 = vld [vmem:[%s11299_s1 + $0x134c] ss:$16 sps:$4 sm:$0xff]   ;;  %v8305_v56 = vld [vmem:[%s11299_s1 + $0x1340] ss:$16 sps:$4 sm:$0xff]  }
 0x233   :  { %5281 = vmatpush1.bf16.msra.mxu0 %v8221_v39  ;;  %5814 = vmatpush1.bf16.msra.mxu1 %v8224_v58  ;;  %v8308_v39 = vld [vmem:[%s11299_s1 + $0x1348] ss:$16 sps:$4 sm:$0xff]   ;;  %v8313_v58 = vld [vmem:[%s11299_s1 + $0x1364] ss:$16 sps:$4 sm:$0xff]  }
 0x234   :  { %5282 = vmatprep.subr.bf16.mxu0 %v8229_v59  ;;  %5815 = vmatprep.subr.bf16.mxu1 %v8232_v60  ;;  %v8316_v59 = vld [vmem:[%s11299_s1 + $0x136c] ss:$16 sps:$4 sm:$0xff]   ;;  %v8311_v60 = vld [vmem:[%s11299_s1 + $0x1360] ss:$16 sps:$4 sm:$0xff]  }
 0x237   :  { %5283 = vmatpush1.bf16.msra.mxu0 %v8227_v61  ;;  %5816 = vmatpush1.bf16.msra.mxu1 %v8230_v63  ;;  %v8314_v61 = vld [vmem:[%s11299_s1 + $0x1368] ss:$16 sps:$4 sm:$0xff]   ;;  %v8319_v63 = vld [vmem:[%s11299_s1 + $0x1384] ss:$16 sps:$4 sm:$0xff]  }
 0x238   :  { %5284 = vmatprep.subr.bf16.mxu0 %v8235_v47  ;;  %5817 = vmatprep.subr.bf16.mxu1 %v8238_v0  ;;  %v8322_v47 = vld [vmem:[%s11299_s1 + $0x138c] ss:$16 sps:$4 sm:$0xff]   ;;  %v8317_v0 = vld [vmem:[%s11299_s1 + $0x1380] ss:$16 sps:$4 sm:$0xff]  }
 0x23b   :  { %5285 = vmatpush1.bf16.msra.mxu0 %v8233_v2  ;;  %5818 = vmatpush1.bf16.msra.mxu1 %v8236_v3  ;;  %v8325_v2 = vld [vmem:[%s11299_s1 + $0x13a4] ss:$16 sps:$4 sm:$0xff]   ;;  %v8328_v3 = vld [vmem:[%s11299_s1 + $0x13ac] ss:$16 sps:$4 sm:$0xff]  }
 0x23c   :  { %5286 = vmatprep.subr.bf16.mxu0 %v8241_v4  ;;  %5819 = vmatprep.subr.bf16.mxu1 %v8244_v57  ;;  %v8323_v4 = vld [vmem:[%s11299_s1 + $0x13a0] ss:$16 sps:$4 sm:$0xff]   ;;  %v8326_v57 = vld [vmem:[%s11299_s1 + $0x13a8] ss:$16 sps:$4 sm:$0xff]  }
 0x23f   :  { %5287 = vmatpush1.bf16.msra.mxu0 %v8239_v6  ;;  %5820 = vmatpush1.bf16.msra.mxu1 %v8242_v55  ;;  %v8331_v6 = vld [vmem:[%s11299_s1 + $0x13c4] ss:$16 sps:$4 sm:$0xff]   ;;  %v8334_v55 = vld [vmem:[%s11299_s1 + $0x13cc] ss:$16 sps:$4 sm:$0xff]  }
 0x240   :  { %5297 = vmatprep.subr.bf16.mxu0 %v8247_v7  ;;  %5830 = vmatprep.subr.bf16.mxu1 %v8250_v8  ;;  %v10689_v7 = vld [vmem:[%s11298_s0 + $0x28] sm:$0xff]  ;;  %v8329_v8 = vld [vmem:[%s11299_s1 + $0x13c0] ss:$16 sps:$4 sm:$0xff]  }
 0x242   :  { %5289 = vmatmul.mubr.bf16.vlgmr.msra.gmra.mrb[0].mxu0 %v189_v11  ;;  %5822 = vmatmul.mubr.bf16.vlgmr.msra.gmra.mrb[0].mxu1 %v189_v11  ;;  %v8337_v11 = vld [vmem:[%s11299_s1 + $0x13e4] ss:$16 sps:$4 sm:$0xff]  }
 0x243   :  { %5298 = vmatpush1.bf16.msra.mxu0 %v8245_v12  ;;  %5831 = vmatpush1.bf16.msra.mxu1 %v8248_v13  ;;  %v8340_v12 = vld [vmem:[%s11299_s1 + $0x13ec] ss:$16 sps:$4 sm:$0xff]   ;;  %v10705_v13 = vrot.slane %v10689_v7, %v8817_v49 }
 0x244   :  { %5299 = vmatprep.subr.bf16.mxu0 %v8253_v14  ;;  %5832 = vmatprep.subr.bf16.mxu1 %v8256_v62  ;;  %v8335_v14 = vld [vmem:[%s11299_s1 + $0x13e0] ss:$16 sps:$4 sm:$0xff]   ;;  %v8338_v62 = vld [vmem:[%s11299_s1 + $0x13e8] ss:$16 sps:$4 sm:$0xff]  }
 0x245   :  { %5329 = vmatprep.mubr.bf16.mxu0 %v192_v15  ;;  %5862 = vmatprep.mubr.bf16.mxu1 %v192_v15  ;;  %v8344_v15 = vld [vmem:[%s11299_s1 + $0x1404] ss:$16 sps:$4 sm:$0xff]  }
 0x247   :  { %5300 = vmatpush1.bf16.msra.mxu0 %v8251_v16  ;;  %5833 = vmatpush1.bf16.msra.mxu1 %v8254_v17  ;;  %v8347_v16 = vld [vmem:[%s11299_s1 + $0x140c] ss:$16 sps:$4 sm:$0xff]   ;;  %v139_v17 = vcombine.high %v10705_v13, %v10705_v13 }
 0x248   :  { %5301 = vmatprep.subr.bf16.mxu0 %v8259_v18  ;;  %5834 = vmatprep.subr.bf16.mxu1 %v8262_v19  ;;  %v191_v18 = vpack.c.bf16 %v10500_v5, %v10500_v5  ;;  %v8342_v19 = vld [vmem:[%s11299_s1 + $0x1400] ss:$16 sps:$4 sm:$0xff]   ;;  %v8353_v5 = vld [vmem:[%s11299_s1 + $0x142c] ss:$16 sps:$4 sm:$0xff]  }
 0x24b   :  { %5302 = vmatpush1.bf16.msra.mxu0 %v8257_v20  ;;  %5835 = vmatpush1.bf16.msra.mxu1 %v8260_v21  ;;  %v8345_v20 = vld [vmem:[%s11299_s1 + $0x1408] ss:$16 sps:$4 sm:$0xff]   ;;  %v8350_v21 = vld [vmem:[%s11299_s1 + $0x1424] ss:$16 sps:$4 sm:$0xff]  }
 0x24c   :  { %5303 = vmatprep.subr.bf16.mxu0 %v8265_v22  ;;  %5836 = vmatprep.subr.bf16.mxu1 %v8268_v23  ;;  %v194_v22 = vpack.c.bf16 %v139_v17, %v139_v17  ;;  %v8348_v23 = vld [vmem:[%s11299_s1 + $0x1420] ss:$16 sps:$4 sm:$0xff]  }
 0x24d   :  { %v8426_v17 = vld [vmem:[%s11299_s1 + $0x15c0] ss:$16 sps:$4 sm:$0xff]  }
 0x24f   :  { %5304 = vmatpush1.bf16.msra.mxu0 %v8263_v9  ;;  %5837 = vmatpush1.bf16.msra.mxu1 %v8266_v26  ;;  %v8351_v9 = vld [vmem:[%s11299_s1 + $0x1428] ss:$16 sps:$4 sm:$0xff]   ;;  %v8356_v26 = vld [vmem:[%s11299_s1 + $0x1444] ss:$16 sps:$4 sm:$0xff]  }
 0x250   :  { %5305 = vmatprep.subr.bf16.mxu0 %v8271_v27  ;;  %5838 = vmatprep.subr.bf16.mxu1 %v8274_v29  ;;  %v8359_v27 = vld [vmem:[%s11299_s1 + $0x144c] ss:$16 sps:$4 sm:$0xff]   ;;  %v8354_v29 = vld [vmem:[%s11299_s1 + $0x1440] ss:$16 sps:$4 sm:$0xff]  }
 0x253   :  { %5306 = vmatpush1.bf16.msra.mxu0 %v8269_v30  ;;  %5839 = vmatpush1.bf16.msra.mxu1 %v8272_v31  ;;  %v8357_v30 = vld [vmem:[%s11299_s1 + $0x1448] ss:$16 sps:$4 sm:$0xff]   ;;  %v8362_v31 = vld [vmem:[%s11299_s1 + $0x1464] ss:$16 sps:$4 sm:$0xff]  }
 0x254   :  { %5307 = vmatprep.subr.bf16.mxu0 %v8277_v33  ;;  %5840 = vmatprep.subr.bf16.mxu1 %v8280_v25  ;;  %v8365_v33 = vld [vmem:[%s11299_s1 + $0x146c] ss:$16 sps:$4 sm:$0xff]   ;;  %v8360_v25 = vld [vmem:[%s11299_s1 + $0x1460] ss:$16 sps:$4 sm:$0xff]  }
 0x257   :  { %5308 = vmatpush1.bf16.msra.mxu0 %v8275_v34  ;;  %5841 = vmatpush1.bf16.msra.mxu1 %v8278_v35  ;;  %v8363_v34 = vld [vmem:[%s11299_s1 + $0x1468] ss:$16 sps:$4 sm:$0xff]   ;;  %v8368_v35 = vld [vmem:[%s11299_s1 + $0x1484] ss:$16 sps:$4 sm:$0xff]  }
 0x258   :  { %5309 = vmatprep.subr.bf16.mxu0 %v8283_v36  ;;  %5842 = vmatprep.subr.bf16.mxu1 %v8286_v37  ;;  %v8371_v36 = vld [vmem:[%s11299_s1 + $0x148c] ss:$16 sps:$4 sm:$0xff]   ;;  %v8366_v37 = vld [vmem:[%s11299_s1 + $0x1480] ss:$16 sps:$4 sm:$0xff]  }
 0x25b   :  { %5310 = vmatpush1.bf16.msra.mxu0 %v8281_v38  ;;  %5843 = vmatpush1.bf16.msra.mxu1 %v8284_v28  ;;  %v8369_v38 = vld [vmem:[%s11299_s1 + $0x1488] ss:$16 sps:$4 sm:$0xff]   ;;  %v8374_v28 = vld [vmem:[%s11299_s1 + $0x14a4] ss:$16 sps:$4 sm:$0xff]  }
 0x25c   :  { %5311 = vmatprep.subr.bf16.mxu0 %v8289_v40  ;;  %5844 = vmatprep.subr.bf16.mxu1 %v8292_v41  ;;  %v8377_v40 = vld [vmem:[%s11299_s1 + $0x14ac] ss:$16 sps:$4 sm:$0xff]   ;;  %v8372_v41 = vld [vmem:[%s11299_s1 + $0x14a0] ss:$16 sps:$4 sm:$0xff]  }
 0x25f   :  { %5312 = vmatpush1.bf16.msra.mxu0 %v8287_v24  ;;  %5845 = vmatpush1.bf16.msra.mxu1 %v8290_v44  ;;  %v8375_v24 = vld [vmem:[%s11299_s1 + $0x14a8] ss:$16 sps:$4 sm:$0xff]   ;;  %v8380_v44 = vld [vmem:[%s11299_s1 + $0x14c4] ss:$16 sps:$4 sm:$0xff]  }
 0x260   :  { %5313 = vmatprep.subr.bf16.mxu0 %v8295_v45  ;;  %5846 = vmatprep.subr.bf16.mxu1 %v8298_v46  ;;  %v8383_v45 = vld [vmem:[%s11299_s1 + $0x14cc] ss:$16 sps:$4 sm:$0xff]   ;;  %v8378_v46 = vld [vmem:[%s11299_s1 + $0x14c0] ss:$16 sps:$4 sm:$0xff]  }
 0x263   :  { %5314 = vmatpush1.bf16.msra.mxu0 %v8293_v48  ;;  %5847 = vmatpush1.bf16.msra.mxu1 %v8296_v32  ;;  %v8381_v48 = vld [vmem:[%s11299_s1 + $0x14c8] ss:$16 sps:$4 sm:$0xff]   ;;  %v8386_v32 = vld [vmem:[%s11299_s1 + $0x14e4] ss:$16 sps:$4 sm:$0xff]  }
 0x264   :  { %5315 = vmatprep.subr.bf16.mxu0 %v8301_v50  ;;  %5848 = vmatprep.subr.bf16.mxu1 %v8304_v51  ;;  %v8389_v50 = vld [vmem:[%s11299_s1 + $0x14ec] ss:$16 sps:$4 sm:$0xff]   ;;  %v8384_v51 = vld [vmem:[%s11299_s1 + $0x14e0] ss:$16 sps:$4 sm:$0xff]  }
 0x267   :  { %5316 = vmatpush1.bf16.msra.mxu0 %v8299_v52  ;;  %5849 = vmatpush1.bf16.msra.mxu1 %v8302_v53  ;;  %v8387_v52 = vld [vmem:[%s11299_s1 + $0x14e8] ss:$16 sps:$4 sm:$0xff]   ;;  %v8392_v53 = vld [vmem:[%s11299_s1 + $0x1504] ss:$16 sps:$4 sm:$0xff]  }
 0x268   :  { %5317 = vmatprep.subr.bf16.mxu0 %v8307_v54  ;;  %5850 = vmatprep.subr.bf16.mxu1 %v8310_v42  ;;  %v8395_v54 = vld [vmem:[%s11299_s1 + $0x150c] ss:$16 sps:$4 sm:$0xff]   ;;  %v8390_v42 = vld [vmem:[%s11299_s1 + $0x1500] ss:$16 sps:$4 sm:$0xff]  }
 0x26b   :  { %5318 = vmatpush1.bf16.msra.mxu0 %v8305_v56  ;;  %5851 = vmatpush1.bf16.msra.mxu1 %v8308_v39  ;;  %v8393_v56 = vld [vmem:[%s11299_s1 + $0x1508] ss:$16 sps:$4 sm:$0xff]   ;;  %v8398_v39 = vld [vmem:[%s11299_s1 + $0x1524] ss:$16 sps:$4 sm:$0xff]  }
 0x26c   :  { %5319 = vmatprep.subr.bf16.mxu0 %v8313_v58  ;;  %5852 = vmatprep.subr.bf16.mxu1 %v8316_v59  ;;  %v8401_v58 = vld [vmem:[%s11299_s1 + $0x152c] ss:$16 sps:$4 sm:$0xff]   ;;  %v8396_v59 = vld [vmem:[%s11299_s1 + $0x1520] ss:$16 sps:$4 sm:$0xff]  }
 0x26f   :  { %5320 = vmatpush1.bf16.msra.mxu0 %v8311_v60  ;;  %5853 = vmatpush1.bf16.msra.mxu1 %v8314_v61  ;;  %v8399_v60 = vld [vmem:[%s11299_s1 + $0x1528] ss:$16 sps:$4 sm:$0xff]   ;;  %v8404_v61 = vld [vmem:[%s11299_s1 + $0x1544] ss:$16 sps:$4 sm:$0xff]  }
 0x270   :  { %5321 = vmatprep.subr.bf16.mxu0 %v8319_v63  ;;  %5854 = vmatprep.subr.bf16.mxu1 %v8322_v47  ;;  %v8407_v63 = vld [vmem:[%s11299_s1 + $0x154c] ss:$16 sps:$4 sm:$0xff]   ;;  %v8402_v47 = vld [vmem:[%s11299_s1 + $0x1540] ss:$16 sps:$4 sm:$0xff]  }
 0x273   :  { %5322 = vmatpush1.bf16.msra.mxu0 %v8317_v0  ;;  %5855 = vmatpush1.bf16.msra.mxu1 %v8320_v1  ;;  %v8405_v0 = vld [vmem:[%s11299_s1 + $0x1548] ss:$16 sps:$4 sm:$0xff]   ;;  %v8410_v1 = vld [vmem:[%s11299_s1 + $0x1564] ss:$16 sps:$4 sm:$0xff]  }
 0x274   :  { %5323 = vmatprep.subr.bf16.mxu0 %v8325_v2  ;;  %5856 = vmatprep.subr.bf16.mxu1 %v8328_v3  ;;  %v8413_v2 = vld [vmem:[%s11299_s1 + $0x156c] ss:$16 sps:$4 sm:$0xff]   ;;  %v8408_v3 = vld [vmem:[%s11299_s1 + $0x1560] ss:$16 sps:$4 sm:$0xff]  }
 0x277   :  { %5324 = vmatpush1.bf16.msra.mxu0 %v8323_v4  ;;  %5857 = vmatpush1.bf16.msra.mxu1 %v8326_v57  ;;  %v8411_v4 = vld [vmem:[%s11299_s1 + $0x1568] ss:$16 sps:$4 sm:$0xff]   ;;  %v8416_v57 = vld [vmem:[%s11299_s1 + $0x1584] ss:$16 sps:$4 sm:$0xff]  }
 0x278   :  { %5325 = vmatprep.subr.bf16.mxu0 %v8331_v6  ;;  %5858 = vmatprep.subr.bf16.mxu1 %v8334_v55  ;;  %v8419_v6 = vld [vmem:[%s11299_s1 + $0x158c] ss:$16 sps:$4 sm:$0xff]   ;;  %v8414_v55 = vld [vmem:[%s11299_s1 + $0x1580] ss:$16 sps:$4 sm:$0xff]  }
 0x27b   :  { %5326 = vmatpush1.bf16.msra.mxu0 %v8329_v8  ;;  %5859 = vmatpush1.bf16.msra.mxu1 %v8332_v10  ;;  %v8417_v8 = vld [vmem:[%s11299_s1 + $0x1588] ss:$16 sps:$4 sm:$0xff]   ;;  %v8422_v10 = vld [vmem:[%s11299_s1 + $0x15a4] ss:$16 sps:$4 sm:$0xff]  }
 0x27c   :  { %5327 = vmatprep.subr.bf16.mxu0 %v8337_v11  ;;  %5860 = vmatprep.subr.bf16.mxu1 %v8340_v12  ;;  %v8425_v11 = vld [vmem:[%s11299_s1 + $0x15ac] ss:$16 sps:$4 sm:$0xff]   ;;  %v8420_v12 = vld [vmem:[%s11299_s1 + $0x15a0] ss:$16 sps:$4 sm:$0xff]  }
 0x27f   :  { %5328 = vmatpush1.bf16.msra.mxu0 %v8335_v14  ;;  %5861 = vmatpush1.bf16.msra.mxu1 %v8338_v62  ;;  %v8423_v14 = vld [vmem:[%s11299_s1 + $0x15a8] ss:$16 sps:$4 sm:$0xff]   ;;  %v8428_v62 = vld [vmem:[%s11299_s1 + $0x15c4] ss:$16 sps:$4 sm:$0xff]  }
 0x280   :  { %5338 = vmatprep.subr.bf16.mxu0 %v8344_v15  ;;  %5871 = vmatprep.subr.bf16.mxu1 %v8347_v16  ;;  %v8431_v15 = vld [vmem:[%s11299_s1 + $0x15cc] ss:$16 sps:$4 sm:$0xff]   ;;  %v124_v16 = vcombine.high %v10689_v7, %v10689_v7 }
 0x281   :  { %v8437_v7 = vld [vmem:[%s11299_s1 + $0x15ec] ss:$16 sps:$4 sm:$0xff]  }
 0x282   :  { %5330 = vmatmul.mubr.bf16.vlgmr.msra.gmra.mrb[0].mxu0 %v191_v18  ;;  %5863 = vmatmul.mubr.bf16.vlgmr.msra.gmra.mrb[0].mxu1 %v191_v18  ;;  %v8429_v18 = vld [vmem:[%s11299_s1 + $0x15c8] ss:$16 sps:$4 sm:$0xff]  }
 0x283   :  { %5339 = vmatpush1.bf16.msra.mxu0 %v8342_v19  ;;  %5872 = vmatpush1.bf16.msra.mxu1 %v8345_v20  ;;  %v8434_v19 = vld [vmem:[%s11299_s1 + $0x15e4] ss:$16 sps:$4 sm:$0xff]   ;;  %v10906_v20 = vrot.slane %v124_v16, %v8817_v49  ;;  %v8513_v16 = vld [vmem:[%s11299_s1 + $0x1788] ss:$16 sps:$4 sm:$0xff]  }
 0x284   :  { %5340 = vmatprep.subr.bf16.mxu0 %v8350_v21  ;;  %5873 = vmatprep.subr.bf16.mxu1 %v8353_v5  ;;  %v8432_v21 = vld [vmem:[%s11299_s1 + $0x15e0] ss:$16 sps:$4 sm:$0xff]   ;;  %v8435_v5 = vld [vmem:[%s11299_s1 + $0x15e8] ss:$16 sps:$4 sm:$0xff]  }
 0x285   :  { %5370 = vmatprep.mubr.bf16.mxu0 %v194_v22  ;;  %5903 = vmatprep.mubr.bf16.mxu1 %v194_v22  ;;  %v8440_v22 = vld [vmem:[%s11299_s1 + $0x1604] ss:$16 sps:$4 sm:$0xff]  }
 0x287   :  { %5341 = vmatpush1.bf16.msra.mxu0 %v8348_v23  ;;  %5874 = vmatpush1.bf16.msra.mxu1 %v8351_v9  ;;  %v8443_v23 = vld [vmem:[%s11299_s1 + $0x160c] ss:$16 sps:$4 sm:$0xff]   ;;  %v140_v9 = vcombine.high %v10906_v20, %v10906_v20 }
 0x288   :  { %5342 = vmatprep.subr.bf16.mxu0 %v8356_v26  ;;  %5875 = vmatprep.subr.bf16.mxu1 %v8359_v27  ;;  %v193_v26 = vpack.c.bf16 %v10705_v13, %v10705_v13  ;;  %v8438_v27 = vld [vmem:[%s11299_s1 + $0x1600] ss:$16 sps:$4 sm:$0xff]   ;;  %v8449_v13 = vld [vmem:[%s11299_s1 + $0x162c] ss:$16 sps:$4 sm:$0xff]  }
 0x28b   :  { %5343 = vmatpush1.bf16.msra.mxu0 %v8354_v29  ;;  %5876 = vmatpush1.bf16.msra.mxu1 %v8357_v30  ;;  %v8441_v29 = vld [vmem:[%s11299_s1 + $0x1608] ss:$16 sps:$4 sm:$0xff]   ;;  %v8446_v30 = vld [vmem:[%s11299_s1 + $0x1624] ss:$16 sps:$4 sm:$0xff]  }
 0x28c   :  { %5344 = vmatprep.subr.bf16.mxu0 %v8362_v31  ;;  %5877 = vmatprep.subr.bf16.mxu1 %v8365_v33  ;;  %v196_v31 = vpack.c.bf16 %v140_v9, %v140_v9  ;;  %v8444_v33 = vld [vmem:[%s11299_s1 + $0x1620] ss:$16 sps:$4 sm:$0xff]   ;;  %v8530_v9 = vld [vmem:[%s11299_s1 + $0x17e4] ss:$16 sps:$4 sm:$0xff]  }
 0x28f   :  { %5345 = vmatpush1.bf16.msra.mxu0 %v8360_v25  ;;  %5878 = vmatpush1.bf16.msra.mxu1 %v8363_v34  ;;  %v8447_v25 = vld [vmem:[%s11299_s1 + $0x1628] ss:$16 sps:$4 sm:$0xff]   ;;  %v8452_v34 = vld [vmem:[%s11299_s1 + $0x1644] ss:$16 sps:$4 sm:$0xff]  }
 0x290   :  { %5346 = vmatprep.subr.bf16.mxu0 %v8368_v35  ;;  %5879 = vmatprep.subr.bf16.mxu1 %v8371_v36  ;;  %v8455_v35 = vld [vmem:[%s11299_s1 + $0x164c] ss:$16 sps:$4 sm:$0xff]   ;;  %v8450_v36 = vld [vmem:[%s11299_s1 + $0x1640] ss:$16 sps:$4 sm:$0xff]  }
 0x293   :  { %5347 = vmatpush1.bf16.msra.mxu0 %v8366_v37  ;;  %5880 = vmatpush1.bf16.msra.mxu1 %v8369_v38  ;;  %v8453_v37 = vld [vmem:[%s11299_s1 + $0x1648] ss:$16 sps:$4 sm:$0xff]   ;;  %v8458_v38 = vld [vmem:[%s11299_s1 + $0x1664] ss:$16 sps:$4 sm:$0xff]  }
 0x294   :  { %5348 = vmatprep.subr.bf16.mxu0 %v8374_v28  ;;  %5881 = vmatprep.subr.bf16.mxu1 %v8377_v40  ;;  %v8461_v28 = vld [vmem:[%s11299_s1 + $0x166c] ss:$16 sps:$4 sm:$0xff]   ;;  %v8456_v40 = vld [vmem:[%s11299_s1 + $0x1660] ss:$16 sps:$4 sm:$0xff]  }
 0x297   :  { %5349 = vmatpush1.bf16.msra.mxu0 %v8372_v41  ;;  %5882 = vmatpush1.bf16.msra.mxu1 %v8375_v24  ;;  %v8459_v41 = vld [vmem:[%s11299_s1 + $0x1668] ss:$16 sps:$4 sm:$0xff]   ;;  %v8464_v24 = vld [vmem:[%s11299_s1 + $0x1684] ss:$16 sps:$4 sm:$0xff]  }
 0x298   :  { %5350 = vmatprep.subr.bf16.mxu0 %v8380_v44  ;;  %5883 = vmatprep.subr.bf16.mxu1 %v8383_v45  ;;  %v8467_v44 = vld [vmem:[%s11299_s1 + $0x168c] ss:$16 sps:$4 sm:$0xff]   ;;  %v8462_v45 = vld [vmem:[%s11299_s1 + $0x1680] ss:$16 sps:$4 sm:$0xff]  }
 0x29b   :  { %5351 = vmatpush1.bf16.msra.mxu0 %v8378_v46  ;;  %5884 = vmatpush1.bf16.msra.mxu1 %v8381_v48  ;;  %v8465_v46 = vld [vmem:[%s11299_s1 + $0x1688] ss:$16 sps:$4 sm:$0xff]   ;;  %v8470_v48 = vld [vmem:[%s11299_s1 + $0x16a4] ss:$16 sps:$4 sm:$0xff]  }
 0x29c   :  { %5352 = vmatprep.subr.bf16.mxu0 %v8386_v32  ;;  %5885 = vmatprep.subr.bf16.mxu1 %v8389_v50  ;;  %v8473_v32 = vld [vmem:[%s11299_s1 + $0x16ac] ss:$16 sps:$4 sm:$0xff]   ;;  %v8468_v50 = vld [vmem:[%s11299_s1 + $0x16a0] ss:$16 sps:$4 sm:$0xff]  }
 0x29f   :  { %5353 = vmatpush1.bf16.msra.mxu0 %v8384_v51  ;;  %5886 = vmatpush1.bf16.msra.mxu1 %v8387_v52  ;;  %v8471_v51 = vld [vmem:[%s11299_s1 + $0x16a8] ss:$16 sps:$4 sm:$0xff]   ;;  %v8476_v52 = vld [vmem:[%s11299_s1 + $0x16c4] ss:$16 sps:$4 sm:$0xff]  }
 0x2a0   :  { %5354 = vmatprep.subr.bf16.mxu0 %v8392_v53  ;;  %5887 = vmatprep.subr.bf16.mxu1 %v8395_v54  ;;  %v8479_v53 = vld [vmem:[%s11299_s1 + $0x16cc] ss:$16 sps:$4 sm:$0xff]   ;;  %v8474_v54 = vld [vmem:[%s11299_s1 + $0x16c0] ss:$16 sps:$4 sm:$0xff]  }
 0x2a3   :  { %5355 = vmatpush1.bf16.msra.mxu0 %v8390_v42  ;;  %5888 = vmatpush1.bf16.msra.mxu1 %v8393_v56  ;;  %v8477_v42 = vld [vmem:[%s11299_s1 + $0x16c8] ss:$16 sps:$4 sm:$0xff]   ;;  %v8482_v56 = vld [vmem:[%s11299_s1 + $0x16e4] ss:$16 sps:$4 sm:$0xff]  }
 0x2a4   :  { %5356 = vmatprep.subr.bf16.mxu0 %v8398_v39  ;;  %5889 = vmatprep.subr.bf16.mxu1 %v8401_v58  ;;  %v8485_v39 = vld [vmem:[%s11299_s1 + $0x16ec] ss:$16 sps:$4 sm:$0xff]   ;;  %v8480_v58 = vld [vmem:[%s11299_s1 + $0x16e0] ss:$16 sps:$4 sm:$0xff]  }
 0x2a7   :  { %5357 = vmatpush1.bf16.msra.mxu0 %v8396_v59  ;;  %5890 = vmatpush1.bf16.msra.mxu1 %v8399_v60  ;;  %v8483_v59 = vld [vmem:[%s11299_s1 + $0x16e8] ss:$16 sps:$4 sm:$0xff]   ;;  %v8488_v60 = vld [vmem:[%s11299_s1 + $0x1704] ss:$16 sps:$4 sm:$0xff]  }
 0x2a8   :  { %5358 = vmatprep.subr.bf16.mxu0 %v8404_v61  ;;  %5891 = vmatprep.subr.bf16.mxu1 %v8407_v63  ;;  %v8491_v61 = vld [vmem:[%s11299_s1 + $0x170c] ss:$16 sps:$4 sm:$0xff]   ;;  %v8486_v63 = vld [vmem:[%s11299_s1 + $0x1700] ss:$16 sps:$4 sm:$0xff]  }
 0x2ab   :  { %5359 = vmatpush1.bf16.msra.mxu0 %v8402_v47  ;;  %5892 = vmatpush1.bf16.msra.mxu1 %v8405_v0  ;;  %v8489_v47 = vld [vmem:[%s11299_s1 + $0x1708] ss:$16 sps:$4 sm:$0xff]   ;;  %v8494_v0 = vld [vmem:[%s11299_s1 + $0x1724] ss:$16 sps:$4 sm:$0xff]  }
 0x2ac   :  { %5360 = vmatprep.subr.bf16.mxu0 %v8410_v1  ;;  %5893 = vmatprep.subr.bf16.mxu1 %v8413_v2  ;;  %v8497_v1 = vld [vmem:[%s11299_s1 + $0x172c] ss:$16 sps:$4 sm:$0xff]   ;;  %v8492_v2 = vld [vmem:[%s11299_s1 + $0x1720] ss:$16 sps:$4 sm:$0xff]  }
 0x2af   :  { %5361 = vmatpush1.bf16.msra.mxu0 %v8408_v3  ;;  %5894 = vmatpush1.bf16.msra.mxu1 %v8411_v4  ;;  %v8495_v3 = vld [vmem:[%s11299_s1 + $0x1728] ss:$16 sps:$4 sm:$0xff]   ;;  %v8500_v4 = vld [vmem:[%s11299_s1 + $0x1744] ss:$16 sps:$4 sm:$0xff]  }
 0x2b0   :  { %5362 = vmatprep.subr.bf16.mxu0 %v8416_v57  ;;  %5895 = vmatprep.subr.bf16.mxu1 %v8419_v6  ;;  %v8503_v57 = vld [vmem:[%s11299_s1 + $0x174c] ss:$16 sps:$4 sm:$0xff]   ;;  %v8498_v6 = vld [vmem:[%s11299_s1 + $0x1740] ss:$16 sps:$4 sm:$0xff]  }
 0x2b3   :  { %5363 = vmatpush1.bf16.msra.mxu0 %v8414_v55  ;;  %5896 = vmatpush1.bf16.msra.mxu1 %v8417_v8  ;;  %v8501_v55 = vld [vmem:[%s11299_s1 + $0x1748] ss:$16 sps:$4 sm:$0xff]   ;;  %v8506_v8 = vld [vmem:[%s11299_s1 + $0x1764] ss:$16 sps:$4 sm:$0xff]  }
 0x2b4   :  { %5364 = vmatprep.subr.bf16.mxu0 %v8422_v10  ;;  %5897 = vmatprep.subr.bf16.mxu1 %v8425_v11  ;;  %v8509_v10 = vld [vmem:[%s11299_s1 + $0x176c] ss:$16 sps:$4 sm:$0xff]   ;;  %v8504_v11 = vld [vmem:[%s11299_s1 + $0x1760] ss:$16 sps:$4 sm:$0xff]  }
 0x2b7   :  { %5365 = vmatpush1.bf16.msra.mxu0 %v8420_v12  ;;  %5898 = vmatpush1.bf16.msra.mxu1 %v8423_v14  ;;  %v8507_v12 = vld [vmem:[%s11299_s1 + $0x1768] ss:$16 sps:$4 sm:$0xff]   ;;  %v8512_v14 = vld [vmem:[%s11299_s1 + $0x1784] ss:$16 sps:$4 sm:$0xff]  }
 0x2b8   :  { %5366 = vmatprep.subr.bf16.mxu0 %v8428_v62  ;;  %5899 = vmatprep.subr.bf16.mxu1 %v8431_v15  ;;  %v8515_v62 = vld [vmem:[%s11299_s1 + $0x178c] ss:$16 sps:$4 sm:$0xff]   ;;  %v8510_v15 = vld [vmem:[%s11299_s1 + $0x1780] ss:$16 sps:$4 sm:$0xff]  }
 0x2bb   :  { %5367 = vmatpush1.bf16.msra.mxu0 %v8426_v17  ;;  %5900 = vmatpush1.bf16.msra.mxu1 %v8429_v18  ;;  %v8518_v17 = vld [vmem:[%s11299_s1 + $0x17a4] ss:$16 sps:$4 sm:$0xff]   ;;  %v8521_v18 = vld [vmem:[%s11299_s1 + $0x17ac] ss:$16 sps:$4 sm:$0xff]  }
 0x2bc   :  { %5368 = vmatprep.subr.bf16.mxu0 %v8434_v19  ;;  %5901 = vmatprep.subr.bf16.mxu1 %v8437_v7  ;;  %v8516_v19 = vld [vmem:[%s11299_s1 + $0x17a0] ss:$16 sps:$4 sm:$0xff]   ;;  %v8519_v7 = vld [vmem:[%s11299_s1 + $0x17a8] ss:$16 sps:$4 sm:$0xff]  }
 0x2bf   :  { %5369 = vmatpush1.bf16.msra.mxu0 %v8432_v21  ;;  %5902 = vmatpush1.bf16.msra.mxu1 %v8435_v5  ;;  %v8524_v21 = vld [vmem:[%s11299_s1 + $0x17c4] ss:$16 sps:$4 sm:$0xff]   ;;  %v8527_v5 = vld [vmem:[%s11299_s1 + $0x17cc] ss:$16 sps:$4 sm:$0xff]  }
 0x2c0   :  { %5379 = vmatprep.subr.bf16.mxu0 %v8440_v22  ;;  %5912 = vmatprep.subr.bf16.mxu1 %v8443_v23  ;;  %v8522_v22 = vld [vmem:[%s11299_s1 + $0x17c0] ss:$16 sps:$4 sm:$0xff]   ;;  %v8525_v23 = vld [vmem:[%s11299_s1 + $0x17c8] ss:$16 sps:$4 sm:$0xff]  }
 0x2c2   :  { %5371 = vmatmul.mubr.bf16.vlgmr.msra.gmra.mrb[0].mxu0 %v193_v26  ;;  %5904 = vmatmul.mubr.bf16.vlgmr.msra.gmra.mrb[0].mxu1 %v193_v26  ;;  %v8533_v26 = vld [vmem:[%s11299_s1 + $0x17ec] ss:$16 sps:$4 sm:$0xff]  }
 0x2c3   :  { %5380 = vmatpush1.bf16.msra.mxu0 %v8438_v27  ;;  %5913 = vmatpush1.bf16.msra.mxu1 %v8441_v29  ;;  %v8528_v27 = vld [vmem:[%s11299_s1 + $0x17e0] ss:$16 sps:$4 sm:$0xff]   ;;  %v8531_v29 = vld [vmem:[%s11299_s1 + $0x17e8] ss:$16 sps:$4 sm:$0xff]  }
 0x2c4   :  { %5381 = vmatprep.subr.bf16.mxu0 %v8446_v30  ;;  %5914 = vmatprep.subr.bf16.mxu1 %v8449_v13  ;;  %v8537_v30 = vld [vmem:[%s11299_s1 + $0x1804] ss:$16 sps:$4 sm:$0xff]   ;;  %v8540_v13 = vld [vmem:[%s11299_s1 + $0x180c] ss:$16 sps:$4 sm:$0xff]  }
 0x2c5   :  { %5411 = vmatprep.mubr.bf16.mxu0 %v196_v31  ;;  %5944 = vmatprep.mubr.bf16.mxu1 %v196_v31  ;;  %v195_v31 = vpack.c.bf16 %v10906_v20, %v10906_v20  ;;  %v8546_v20 = vld [vmem:[%s11299_s1 + $0x182c] ss:$16 sps:$4 sm:$0xff]  }
 0x2c7   :  { %5382 = vmatpush1.bf16.msra.mxu0 %v8444_v33  ;;  %5915 = vmatpush1.bf16.msra.mxu1 %v8447_v25  ;;  %v8535_v33 = vld [vmem:[%s11299_s1 + $0x1800] ss:$16 sps:$4 sm:$0xff]   ;;  %v8538_v25 = vld [vmem:[%s11299_s1 + $0x1808] ss:$16 sps:$4 sm:$0xff]  }
 0x2c8   :  { %5383 = vmatprep.subr.bf16.mxu0 %v8452_v34  ;;  %5916 = vmatprep.subr.bf16.mxu1 %v8455_v35  ;;  %v8543_v34 = vld [vmem:[%s11299_s1 + $0x1824] ss:$16 sps:$4 sm:$0xff]   ;;  %v8541_v35 = vld [vmem:[%s11299_s1 + $0x1820] ss:$16 sps:$4 sm:$0xff]  }
 0x2cb   :  { %5384 = vmatpush1.bf16.msra.mxu0 %v8450_v36  ;;  %5917 = vmatpush1.bf16.msra.mxu1 %v8453_v37  ;;  %v8544_v36 = vld [vmem:[%s11299_s1 + $0x1828] ss:$16 sps:$4 sm:$0xff]   ;;  %v8549_v37 = vld [vmem:[%s11299_s1 + $0x1844] ss:$16 sps:$4 sm:$0xff]  }
 0x2cc   :  { %5385 = vmatprep.subr.bf16.mxu0 %v8458_v38  ;;  %5918 = vmatprep.subr.bf16.mxu1 %v8461_v28  ;;  %v8552_v38 = vld [vmem:[%s11299_s1 + $0x184c] ss:$16 sps:$4 sm:$0xff]   ;;  %v8644_v28 = vmov 0  }
 0x2cf   :  { %5386 = vmatpush1.bf16.msra.mxu0 %v8456_v40  ;;  %5919 = vmatpush1.bf16.msra.mxu1 %v8459_v41  ;;  %v8547_v40 = vld [vmem:[%s11299_s1 + $0x1840] ss:$16 sps:$4 sm:$0xff]   ;;  %v8550_v41 = vld [vmem:[%s11299_s1 + $0x1848] ss:$16 sps:$4 sm:$0xff]  }
 0x2d0   :  { %5387 = vmatprep.subr.bf16.mxu0 %v8464_v24  ;;  %5920 = vmatprep.subr.bf16.mxu1 %v8467_v44  ;;  %v8555_v24 = vld [vmem:[%s11299_s1 + $0x1864] ss:$16 sps:$4 sm:$0xff]   ;;  %v8558_v44 = vld [vmem:[%s11299_s1 + $0x186c] ss:$16 sps:$4 sm:$0xff]  }
 0x2d3   :  { %5388 = vmatpush1.bf16.msra.mxu0 %v8462_v45  ;;  %5921 = vmatpush1.bf16.msra.mxu1 %v8465_v46  ;;  %v8553_v45 = vld [vmem:[%s11299_s1 + $0x1860] ss:$16 sps:$4 sm:$0xff]   ;;  %v8556_v46 = vld [vmem:[%s11299_s1 + $0x1868] ss:$16 sps:$4 sm:$0xff]  }
 0x2d4   :  { %5389 = vmatprep.subr.bf16.mxu0 %v8470_v48  ;;  %5922 = vmatprep.subr.bf16.mxu1 %v8473_v32  ;;  %v6409_v48 = vld.sshfl [vmem:[%s11298_s0 + $0x30] sm:$0x3 pattern:$0x76325410]  ;;  %v8559_v32 = vld [vmem:[%s11301_s3 + $0x40] sm:$0xff]  }
 0x2d7   :  { %5390 = vmatpush1.bf16.msra.mxu0 %v8468_v50  ;;  %5923 = vmatpush1.bf16.msra.mxu1 %v8471_v51  ;;  %v8560_v50 = vld [vmem:[%s11301_s3 + $0xc0] sm:$0xff]   ;;  %v197_v51 = vpack.c.bf16 %v6409_v48, %v6409_v48 }
 0x2d8   :  { %5391 = vmatprep.subr.bf16.mxu0 %v8476_v52  ;;  %5924 = vmatprep.subr.bf16.mxu1 %v8479_v53  ;;  %v8561_v52 = vld [vmem:[%s11301_s3] sm:$0xff]  }
 0x2d9   :  { %v8562_v53 = vld [vmem:[%s11301_s3 + $0x80] sm:$0xff]  }
 0x2db   :  { %5392 = vmatpush1.bf16.msra.mxu0 %v8474_v54  ;;  %5925 = vmatpush1.bf16.msra.mxu1 %v8477_v42  ;;  %v8563_v54 = vld [vmem:[%s11301_s3 + $0x48] sm:$0xff]  }
 0x2dc   :  { %5393 = vmatprep.subr.bf16.mxu0 %v8482_v56  ;;  %5926 = vmatprep.subr.bf16.mxu1 %v8485_v39  ;;  %v8564_v42 = vld [vmem:[%s11301_s3 + $0xc8] sm:$0xff]  }
 0x2dd   :  { %v8565_v56 = vld [vmem:[%s11301_s3 + $0x8] sm:$0xff]  }
 0x2de   :  { %v8566_v39 = vld [vmem:[%s11301_s3 + $0x88] sm:$0xff]  }
 0x2df   :  { %5394 = vmatpush1.bf16.msra.mxu0 %v8480_v58  ;;  %5927 = vmatpush1.bf16.msra.mxu1 %v8483_v59  ;;  %v8567_v58 = vld [vmem:[%s11301_s3 + $0x50] sm:$0xff]  }
 0x2e0   :  { %5395 = vmatprep.subr.bf16.mxu0 %v8488_v60  ;;  %5928 = vmatprep.subr.bf16.mxu1 %v8491_v61  ;;  %v8568_v59 = vld [vmem:[%s11301_s3 + $0xd0] sm:$0xff]  }
 0x2e1   :  { %v8569_v60 = vld [vmem:[%s11301_s3 + $0x10] sm:$0xff]  }
 0x2e2   :  { %v8570_v61 = vld [vmem:[%s11301_s3 + $0x90] sm:$0xff]  }
 0x2e3   :  { %5396 = vmatpush1.bf16.msra.mxu0 %v8486_v63  ;;  %5929 = vmatpush1.bf16.msra.mxu1 %v8489_v47  ;;  %v8571_v63 = vld [vmem:[%s11301_s3 + $0x58] sm:$0xff]  }
 0x2e4   :  { %5397 = vmatprep.subr.bf16.mxu0 %v8494_v0  ;;  %5930 = vmatprep.subr.bf16.mxu1 %v8497_v1  ;;  %v8572_v47 = vld [vmem:[%s11301_s3 + $0xd8] sm:$0xff]  }
 0x2e5   :  { %v8573_v0 = vld [vmem:[%s11301_s3 + $0x18] sm:$0xff]  }
 0x2e6   :  { %v8574_v1 = vld [vmem:[%s11301_s3 + $0x98] sm:$0xff]  }
 0x2e7   :  { %5398 = vmatpush1.bf16.msra.mxu0 %v8492_v2  ;;  %5931 = vmatpush1.bf16.msra.mxu1 %v8495_v3  ;;  %v8575_v2 = vld [vmem:[%s11301_s3 + $0x60] sm:$0xff]  }
 0x2e8   :  { %5399 = vmatprep.subr.bf16.mxu0 %v8500_v4  ;;  %5932 = vmatprep.subr.bf16.mxu1 %v8503_v57  ;;  %v8576_v3 = vld [vmem:[%s11301_s3 + $0xe0] sm:$0xff]  }
 0x2e9   :  { %v8577_v4 = vld [vmem:[%s11301_s3 + $0x20] sm:$0xff]  }
 0x2ea   :  { %v8578_v57 = vld [vmem:[%s11301_s3 + $0xa0] sm:$0xff]  }
 0x2eb   :  { %5400 = vmatpush1.bf16.msra.mxu0 %v8498_v6  ;;  %5933 = vmatpush1.bf16.msra.mxu1 %v8501_v55  ;;  %v8579_v6 = vld [vmem:[%s11301_s3 + $0x68] sm:$0xff]  }
 0x2ec   :  { %5401 = vmatprep.subr.bf16.mxu0 %v8506_v8  ;;  %5934 = vmatprep.subr.bf16.mxu1 %v8509_v10  ;;  %v8580_v55 = vld [vmem:[%s11301_s3 + $0xe8] sm:$0xff]  }
 0x2ed   :  { %v8581_v8 = vld [vmem:[%s11301_s3 + $0x28] sm:$0xff]  }
 0x2ee   :  { %v8582_v10 = vld [vmem:[%s11301_s3 + $0xa8] sm:$0xff]  }
 0x2ef   :  { %5402 = vmatpush1.bf16.msra.mxu0 %v8504_v11  ;;  %5935 = vmatpush1.bf16.msra.mxu1 %v8507_v12  ;;  %v8583_v11 = vld [vmem:[%s11301_s3 + $0x70] sm:$0xff]  }
 0x2f0   :  { %5403 = vmatprep.subr.bf16.mxu0 %v8512_v14  ;;  %5936 = vmatprep.subr.bf16.mxu1 %v8515_v62  ;;  %v8584_v12 = vld [vmem:[%s11301_s3 + $0xf0] sm:$0xff]  }
 0x2f1   :  { %v8585_v14 = vld [vmem:[%s11301_s3 + $0x30] sm:$0xff]  }
 0x2f2   :  { %v8586_v62 = vld [vmem:[%s11301_s3 + $0xb0] sm:$0xff]  }
 0x2f3   :  { %5404 = vmatpush1.bf16.msra.mxu0 %v8510_v15  ;;  %5937 = vmatpush1.bf16.msra.mxu1 %v8513_v16  ;;  %v8587_v15 = vld [vmem:[%s11301_s3 + $0x78] sm:$0xff]  }
 0x2f4   :  { %5405 = vmatprep.subr.bf16.mxu0 %v8518_v17  ;;  %5938 = vmatprep.subr.bf16.mxu1 %v8521_v18  ;;  %v8588_v16 = vld [vmem:[%s11301_s3 + $0xf8] sm:$0xff]  }
 0x2f5   :  { %v8589_v17 = vld [vmem:[%s11301_s3 + $0x38] sm:$0xff]  }
 0x2f6   :  { %v8590_v18 = vld [vmem:[%s11301_s3 + $0xb8] sm:$0xff]  }
 0x2f7   :  { %5406 = vmatpush1.bf16.msra.mxu0 %v8516_v19  ;;  %5939 = vmatpush1.bf16.msra.mxu1 %v8519_v7  ;;  %v986_v19 = vsub.s32 0, %v8799_v43  ;;  %v994_v7 = vsub.s32 2, %v8799_v43 }
 0x2f8   :  { %5407 = vmatprep.subr.bf16.mxu0 %v8524_v21  ;;  %5940 = vmatprep.subr.bf16.mxu1 %v8527_v5  ;;  %v982_v21 = vld [vmem:[%s11300_s2] sm:$0xf]  ;;  %v990_v5 = vsub.s32 1, %v8799_v43 }
 0x2fb   :  { %5408 = vmatpush1.bf16.msra.mxu0 %v8522_v22  ;;  %5941 = vmatpush1.bf16.msra.mxu1 %v8525_v23  ;;  %v998_v22 = vsub.s32 3, %v8799_v43  ;;  %v987_v23 = vrot.slane %v982_v21, %v986_v19 }
 0x2fc   :  { %5409 = vmatprep.subr.bf16.mxu0 %v8530_v9  ;;  %5942 = vmatprep.subr.bf16.mxu1 %v8533_v26  ;;  %v995_v9 = vrot.slane %v982_v21, %v994_v7  ;;  %v991_v26 = vrot.slane %v982_v21, %v990_v5 }
 0x2ff   :  { %5410 = vmatpush1.bf16.msra.mxu0 %v8528_v27  ;;  %5943 = vmatpush1.bf16.msra.mxu1 %v8531_v29  ;;  %v999_v27 = vrot.slane %v982_v21, %v998_v22 }
 0x300   :  { %5420 = vmatprep.subr.bf16.mxu0 %v8537_v30  ;;  %5953 = vmatprep.subr.bf16.mxu1 %v8540_v13 }
 0x302   :  { %5412 = vmatmul.mubr.bf16.vlgmr.msra.gmra.mrb[0].mxu0 %v195_v31  ;;  %5945 = vmatmul.mubr.bf16.vlgmr.msra.gmra.mrb[0].mxu1 %v195_v31 }
 0x303   :  { %5421 = vmatpush1.bf16.msra.mxu0 %v8535_v33  ;;  %5954 = vmatpush1.bf16.msra.mxu1 %v8538_v25 }
 0x304   :  { %5422 = vmatprep.subr.bf16.mxu0 %v8543_v34  ;;  %5955 = vmatprep.subr.bf16.mxu1 %v8546_v20 }
 0x305   :  { %5452 = vmatprep.mubr.bf16.mxu0 %v8644_v28  ;;  %5985 = vmatprep.mubr.bf16.mxu1 %v8644_v28 }
 0x307   :  { %5423 = vmatpush1.bf16.msra.mxu0 %v8541_v35  ;;  %5956 = vmatpush1.bf16.msra.mxu1 %v8544_v36 }
 0x308   :  { %5424 = vmatprep.subr.bf16.mxu0 %v8549_v37  ;;  %5957 = vmatprep.subr.bf16.mxu1 %v8552_v38 }
 0x30b   :  { %5425 = vmatpush1.bf16.msra.mxu0 %v8547_v40  ;;  %5958 = vmatpush1.bf16.msra.mxu1 %v8550_v41 }
 0x30c   :  { %5426 = vmatprep.subr.bf16.mxu0 %v8555_v24  ;;  %5959 = vmatprep.subr.bf16.mxu1 %v8558_v44 }
 0x30f   :  { %5427 = vmatpush1.bf16.msra.mxu0 %v8553_v45  ;;  %5960 = vmatpush1.bf16.msra.mxu1 %v8556_v46 }
 0x310   :  { %7229 = vmatprep.subr.bf16.mxu0 %v8559_v32  ;;  %7251 = vmatprep.subr.bf16.mxu1 %v8560_v50 }
 0x312   :  { %7194 = vmatmul.mubr.msk.bf16.vlgmr.msra.gmra.mrb[0].mxu0 %vm4924_vm0, %v197_v51  ;;  %7195 = vmatmul.mubr.msk.bf16.vlgmr.msra.gmra.mrb[0].mxu1 %vm4924_vm0, %v197_v51 }
 0x313   :  { %7230 = vmatpush3.bf16.msra.mxu0 %v8561_v52  ;;  %7252 = vmatpush3.bf16.msra.mxu1 %v8562_v53 }
 0x314   :  { %7231 = vmatprep.subr.bf16.mxu0 %v8563_v54  ;;  %7253 = vmatprep.subr.bf16.mxu1 %v8564_v42  ;;  %v7196_v42 = vld [vmem:[%s11302_s4] ss:$0 sm:$0xff]  ;;  %s8645_s4 = smov [#allocation2]  }
 0x315   :  { %s6387_s7 = sshll.u32 %s8645_s4, 4  ;;  %s6388_s7 = int_to_ptr.vmem [resolvable:$true] %s6387_s7 }
 0x316   :  { %s8595_s8 = scalar_lea.vmem %s6388_s7, 128  ;;  %p8600_p1 = scmp.lt.s32.totalorder %s6388_s7, %s6388_s7 }
 0x317   :  { %7232 = vmatpush3.bf16.msra.mxu0 %v8565_v56  ;;  %7254 = vmatpush3.bf16.msra.mxu1 %v8566_v39  ;;  %p8596_p0 = scmp.ne.s32.totalorder %s6388_s7, %s8595_s8  ;;  %p8601_p2 = scmp.lt.s32.totalorder %s8595_s8, %s8595_s8 }
 0x318   :  { %7233 = vmatprep.subr.bf16.mxu0 %v8567_v58  ;;  %7255 = vmatprep.subr.bf16.mxu1 %v8568_v59 }
 0x319   :  { %p8602_p3 = por %p8601_p2, %p8600_p1 }
 0x31b   :  { %7234 = vmatpush3.bf16.msra.mxu0 %v8569_v60  ;;  %7256 = vmatpush3.bf16.msra.mxu1 %v8570_v61  ;;  %p8603_p4 = pnand %p8602_p3, %p8596_p0 }
 0x31c   :  { %7235 = vmatprep.subr.bf16.mxu0 %v8571_v63  ;;  %7257 = vmatprep.subr.bf16.mxu1 %v8572_v47 }
 0x31f   :  { %7236 = vmatpush3.bf16.msra.mxu0 %v8573_v0  ;;  %7258 = vmatpush3.bf16.msra.mxu1 %v8574_v1 }
 0x320   :  { %7237 = vmatprep.subr.bf16.mxu0 %v8575_v2  ;;  %7259 = vmatprep.subr.bf16.mxu1 %v8576_v3 }
 0x323   :  { %7238 = vmatpush3.bf16.msra.mxu0 %v8577_v4  ;;  %7260 = vmatpush3.bf16.msra.mxu1 %v8578_v57 }
 0x324   :  { %7239 = vmatprep.subr.bf16.mxu0 %v8579_v6  ;;  %7261 = vmatprep.subr.bf16.mxu1 %v8580_v55 }
 0x327   :  { %7240 = vmatpush3.bf16.msra.mxu0 %v8581_v8  ;;  %7262 = vmatpush3.bf16.msra.mxu1 %v8582_v10 }
 0x328   :  { %7241 = vmatprep.subr.bf16.mxu0 %v8583_v11  ;;  %7263 = vmatprep.subr.bf16.mxu1 %v8584_v12 }
 0x32b   :  { %7242 = vmatpush3.bf16.msra.mxu0 %v8585_v14  ;;  %7264 = vmatpush3.bf16.msra.mxu1 %v8586_v62 }
 0x32c   :  { %7243 = vmatprep.subr.bf16.mxu0 %v8587_v15  ;;  %7265 = vmatprep.subr.bf16.mxu1 %v8588_v16 }
 0x32f   :  { %7244 = vmatpush3.bf16.msra.mxu0 %v8589_v17  ;;  %7266 = vmatpush3.bf16.msra.mxu1 %v8590_v18 }
 0x3e5   :  { %v5454_v29 = vpop.f32.mrb[0].mxu0  ;;  %v5987_v30 = vpop.f32.mrb[0].mxu1 }
 0x3e6   :  { %v7273_v13 = vadd.f32 %v5454_v29, %v987_v23  ;;  %v7275_v31 = vadd.f32 %v5987_v30, %v995_v9  ;;  %v5456_v33 = vpop.f32.mrb[1].mxu0  ;;  %v5989_v25 = vpop.f32.mrb[1].mxu1 }
 0x3e7   :  { %v7274_v34 = vadd.f32 %v5456_v33, %v991_v26  ;;  %v7276_v20 = vadd.f32 %v5989_v25, %v999_v27  ;;  %v5458_v35 = vpop.f32.mrb[2].mxu0  ;;  %v5991_v36 = vpop.f32.mrb[2].mxu1 }
 0x3e8   :  { %v5994_v37 = vmax.f32 %v7273_v13, 0.0  ;;  %v5996_v38 = vmax.f32 %v7275_v31, 0.0  ;;  %v5459_v28 = vpop.f32.mrb[3].mxu0  ;;  %v5992_v40 = vpop.f32.mrb[3].mxu1 }
 0x3e9   :  { %v5995_v41 = vmax.f32 %v7274_v34, 0.0  ;;  %v5997_v43 = vmax.f32 %v7276_v20, 0.0 }
 0x3ea   :  { %v6021_v48 = vpack.c.bf16 %v5994_v37, %v5994_v37  ;;  %v6023_v32 = vpack.c.bf16 %v5996_v38, %v5996_v38 }
 0x3eb   :  { %v6002_v24 = vcombine.low %v5994_v37, %v5995_v41  ;;  %v6022_v44 = vpack.c.bf16 %v5995_v41, %v5995_v41  ;;  %v6003_v45 = vcombine.low %v5996_v38, %v5997_v43  ;;  %v6024_v46 = vpack.c.bf16 %v5997_v43, %v5997_v43 }
 0x3ed   :  { %6320 = vmatprep.mubr.bf16.mxu0 %v6022_v44  ;;  %6360 = vmatprep.mubr.bf16.mxu1 %v6024_v46  ;;  %v6010_v50 = vrot.slane %v6002_v24, %v8817_v49  ;;  %v6017_v51 = vrot.slane %v6003_v45, %v8817_v49 }
 0x3ee   :  { %6321 = vmatmul.mubr.bf16.vlgmr.msra.gmra.mrb[4].mxu0 %v6021_v48  ;;  %6361 = vmatmul.mubr.bf16.vlgmr.msra.gmra.mrb[4].mxu1 %v6023_v32 }
 0x3ef   :  { %v6018_v52 = vcombine.low %v6010_v50, %v6017_v51 }
 0x3f1   :  { %6020 = vst [vmem:[#allocation2] sm:$0xff] %v6018_v52 }
 0x4c1   :  { %v7245_v53 = vpop.f32.mrb[4].mxu0  ;;  %v7267_v54 = vpop.f32.mrb[4].mxu1 }
 0x4c2   :  { %v7246_v56 = vpop.f32.mrb[5].mxu0  ;;  %v7268_v39 = vpop.f32.mrb[5].mxu1 }
 0x4c3   :  { %v7247_v58 = vadd.f32 %v7246_v56, %v7245_v53  ;;  %v7269_v59 = vadd.f32 %v7268_v39, %v7267_v54  ;;  %v7248_v60 = vpop.f32.mrb[6].mxu0  ;;  %v7270_v61 = vpop.f32.mrb[6].mxu1 }
 0x4c4   :  { %v7249_v63 = vpop.f32.mrb[7].mxu0  ;;  %v7271_v47 = vpop.f32.mrb[7].mxu1 }
 0x4c5   :  { %v6323_v0 = vadd.f32 %v7247_v58, %v7196_v42 }
 0x4c7   :  { %v6363_v49 = vadd.f32 %v7269_v59, %v6323_v0 }
 0x4c9   :  { %v6369_v1 = vsel %vm6368_vm1, %v6363_v49, -inf }
 0x4ca   :  { %6370 = vmax.xlane.f32.xlu0 %v6369_v1 }
 0x557   :  { %v6371_v2 = vpop.xlane.xlu0 %6370 }
 0x558   :  { %v6372_v3 = vsub.f32 %v6363_v49, %v6371_v2 }
 0x55a   :  { %v6373_v4 = vmul.f32 1.442695, %v6372_v3 }
 0x55c   :  { %8591 = vpow2.f32 %v6373_v4 }
 0x566   :  { %v8592_v57 = vpop.eup %8591 }
 0x567   :  { %v6375_v6 = vsel %vm6368_vm1, %v8592_v57, 0.0 }
 0x568   :  { %6376 = vadd.xlane.f32.xlu0 %v6375_v6 }
 0x569   :  { %8606 = shalt.err (!%p8603_p4)
}
 0x56a   :  { %s8607_s11 = scalar_lea.hbm %s11303_s5, 128 }
 0x56b   :  { %p8608_p5 = scmp.ne.s32.totalorder %s11303_s5, %s8607_s11  ;;  %p8611_p6 = scmp.lt.u32.totalorder %s8607_s11, %s11303_s5 }
 0x56d   :  { %p8613_p7 = pnand %p8611_p6, %p8608_p5 }
 0x56f   :  { %8616 = shalt.err (!%p8613_p7)
}
 0x570   :  { %6390 = dma.vmem_to_hbm [thread:$0]  %s6388_s7, 128, %s11303_s5, [#allocation3]  }
 0x571   :  { %s8646_s18 = smov [#allocation4]  }
 0x572   :  { %s6397_s19 = sshll.u32 %s8646_s18, 4  ;;  %s6398_s19 = int_to_ptr.vmem [resolvable:$true] %s6397_s19 }
 0x573   :  { %s8617_s20 = scalar_lea.vmem %s6398_s19, 32  ;;  %p8622_p9 = scmp.lt.s32.totalorder %s6398_s19, %s6398_s19 }
 0x574   :  { %p8618_p8 = scmp.ne.s32.totalorder %s6398_s19, %s8617_s20  ;;  %p8623_p10 = scmp.lt.s32.totalorder %s8617_s20, %s8617_s20 }
 0x576   :  { %p8624_p11 = por %p8623_p10, %p8622_p9 }
 0x578   :  { %p8625_p12 = pnand %p8624_p11, %p8618_p8 }
 0x5f5   :  { %v6377_v55 = vpop.xlane.xlu0 %6376 }
 0x5f6   :  { %8593 = vrcp.f32 %v6377_v55 }
 0x600   :  { %v8594_v8 = vpop.eup %8593 }
 0x601   :  { %v6379_v10 = vmul.f32 %v8594_v8, %v8592_v57 }
 0x603   :  { %6380 = vst.msk [vmem:[#allocation4] sm:$0x3] %vm6368_vm1, %v6379_v10 }
 0x604   :  { %8628 = shalt.err (!%p8625_p12)
}
 0x605   :  { %s8629_s5 = scalar_lea.hbm %s11304_s6, 32 }
 0x606   :  { %p8630_p13 = scmp.ne.s32.totalorder %s11304_s6, %s8629_s5  ;;  %p8633_p0 = scmp.lt.u32.totalorder %s8629_s5, %s11304_s6 }
 0x608   :  { %p8635_p1 = pnand %p8633_p0, %p8630_p13 }
 0x60a   :  { %8638 = shalt.err (!%p8635_p1)
}
 0x60b   :  { %6400 = dma.vmem_to_hbm [thread:$0]  %s6398_s19, 32, %s11304_s6, [#allocation5]  }
 0x60c   :  { %8639 = dma.done.wait [#allocation3], 128  }
 0x60d   :  { %8640 = vsyncadd [#allocation3], 4294967168 }
 0x60e   :  { %8641 = dma.done.wait [#allocation5], 32  }
 0x60f   :  { %8642 = vsyncadd [#allocation5], 4294967264 }
 0x610   :  { %6407 = vsyncpa [#allocation3], 1 }
 0x611   :  { %6408 = vsyncpa [#allocation5], 1 }

</bundles_post_ra>
